<compile_context>
chip_gen: v6e
topology: v6e:2x2x1
jax: 0.10.0
libtpu: 0.0.40
codegen_flags: <defaults>
</compile_context>

<pallas_src>
import functools

import numpy as np

import jax
import jax.numpy as jnp
from jax import lax
from jax.experimental import pallas as pl
from jax.experimental.pallas import tpu as pltpu

# NLE-like constants (synthetic, small vocabulary for this self-contained script)
MAX_GLYPH = 63            # vocabulary size is MAX_GLYPH + 1 (padding uses MAX_GLYPH)
NLE_BL_X = 0              # blstats column index of hero X (column)
NLE_BL_Y = 1              # blstats column index of hero Y (row)
N_BLSTATS = 8             # number of bottom-line stats (only X/Y used)


def _glyph_kernel(yx_ref,        # SMEM (2*TBp,) int32        -- [y, x] per row (prefetch)
                  scr_ids_ref,   # VMEM (1, TBLK*R*C) int32   -- screen glyph ids
                  inv_ids_ref,   # VMEM (1, TBLK*N) int32     -- inventory glyph ids
                  emb_t_ref,     # VMEM (F, V) bf16           -- transposed embedding table
                  screen_ref,    # VMEM (TBLK, F, R*C) bf16 out
                  vic_ref,       # VMEM (TBLK, F, W*W) bf16 out
                  inv_ref,       # VMEM (TBLK, F, N)   bf16 out
                  *, TBLK, R, C, N, W, k, V, F, V_CHUNK):
    g = pl.program_id(0)
    RC = R * C
    WW = W * W

    def onehot_embed(ids_row, m):
        # E^T columns selected by ids: (F, m) f32.  V-chunked so the one-hot
        # never exceeds (V_CHUNK, m) even at real NLE vocab sizes (~6k).
        acc = jnp.zeros((F, m), jnp.float32)
        for c0 in range(0, V, V_CHUNK):
            vc = min(V_CHUNK, V - c0)
            iota = c0 + lax.broadcasted_iota(jnp.int32, (vc, m), 0)
            oh = (ids_row == iota).astype(jnp.bfloat16)            # exact selection
            acc = acc + jnp.dot(emb_t_ref[:, c0:c0 + vc], oh,
                                preferred_element_type=jnp.float32)
        return acc

    # ---- screen & inventory: value one-hot matmuls over the whole block ------
    scr_t = onehot_embed(scr_ids_ref[...], TBLK * RC)              # (F, TBLK*RC) f32
    inv_t = onehot_embed(inv_ids_ref[...], TBLK * N)               # (F, TBLK*N)  f32
    scr_bf = scr_t.astype(jnp.bfloat16)                            # exact (bf16 table)
    inv_bf = inv_t.astype(jnp.bfloat16)

    for tb in range(TBLK):                                         # TBLK is small (<=16)
        screen_ref[tb, :, :] = scr_bf[:, tb * RC:(tb + 1) * RC]    # lane-dense stores
        inv_ref[tb, :, :] = inv_bf[:, tb * N:(tb + 1) * N]

    # ---- vicinity: per-row (RC, W*W) position one-hot -> one small MXU push ---
    # window offset constants (tiny, hoisted out of the per-row loop)
    loc = lax.broadcasted_iota(jnp.int32, (1, WW), 1)              # 0..W*W-1
    di = jnp.zeros((1, WW), jnp.int32)
    for i in range(1, W):
        di = di + (loc >= i * W).astype(jnp.int32)                 # loc // W
    dj = loc - di * W                                              # loc % W
    di = di - k
    dj = dj - k
    col_iota = lax.broadcasted_iota(jnp.int32, (RC, WW), 0)
    e_sent = emb_t_ref[:, MAX_GLYPH:MAX_GLYPH + 1].astype(jnp.float32)   # (F, 1)

    for tb in range(TBLK):
        base = (g * TBLK + tb) * 2
        y = yx_ref[base + 0]                                       # SMEM scalar reads
        x = yx_ref[base + 1]
        rr = y + di                                                # (1, WW) un-padded row
        cc = x + dj                                                # (1, WW) un-padded col
        valid = (rr >= 0) & (rr < R) & (cc >= 0) & (cc < C)
        src = jnp.where(valid, rr * C + cc, RC)                    # RC == "no match"
        oh = (src == col_iota).astype(jnp.bfloat16)                # (RC, WW)
        vt = jnp.dot(scr_bf[:, tb * RC:(tb + 1) * RC], oh,
                     preferred_element_type=jnp.float32)           # (F, WW)
        vt = jnp.where(valid, vt, e_sent)                          # OOB -> MAX_GLYPH emb
        vic_ref[tb, :, :] = vt.astype(vic_ref.dtype)


def glyph_feature_extractor(obs, emb_table, *, window=1, tblk=8, v_chunk=512):
    """Pallas equivalent of GlyphFeatureExtractor.forward (channel-first outputs)."""
    k = window
    W = 2 * k + 1
    glyphs = obs['glyphs']           # (T, B, R, C) int
    inv = obs['inv_glyphs']          # (T, B, N)    int
    bls = obs['blstats']             # (T, B, S)    int
    T_, B_, R, C = glyphs.shape
    N = inv.shape[-1]
    V, F = emb_table.shape
    TB = T_ * B_
    RC = R * C

    # fine tiling of the flattened (T*B) axis -> real pipeline depth
    TBLK = max(1, min(tblk, TB))
    NBLK = pl.cdiv(TB, TBLK)
    TBp = NBLK * TBLK

    scr_ids = glyphs.reshape(TB, RC).astype(jnp.int32)
    inv_ids = inv.reshape(TB, N).astype(jnp.int32)
    ys = bls[..., NLE_BL_Y].reshape(TB).astype(jnp.int32)
    xs = bls[..., NLE_BL_X].reshape(TB).astype(jnp.int32)
    yx = jnp.stack([ys, xs], axis=-1).reshape(TB * 2)              # [y0,x0,y1,x1,...]

    if TBp != TB:                                                  # ragged tail -> sentinel rows
        pad = TBp - TB
        scr_ids = jnp.concatenate(
            [scr_ids, jnp.full((pad, RC), MAX_GLYPH, jnp.int32)], axis=0)
        inv_ids = jnp.concatenate(
            [inv_ids, jnp.full((pad, N), MAX_GLYPH, jnp.int32)], axis=0)
        yx = jnp.concatenate([yx, jnp.zeros((pad * 2,), jnp.int32)], axis=0)

    scr_ids = scr_ids.reshape(NBLK, 1, TBLK * RC)                  # metadata-only reshapes
    inv_ids = inv_ids.reshape(NBLK, 1, TBLK * N)
    emb_t = emb_table.T.astype(jnp.bfloat16)                       # (F, V) resident table

    kernel = functools.partial(_glyph_kernel, TBLK=TBLK, R=R, C=C, N=N, W=W, k=k,
                               V=V, F=F, V_CHUNK=max(1, min(v_chunk, V)))

    out_shapes = (
        jax.ShapeDtypeStruct((TBp, F, RC), jnp.bfloat16),          # screen   (channel-first)
        jax.ShapeDtypeStruct((TBp, F, W * W), jnp.bfloat16),       # vicinity (channel-first)
        jax.ShapeDtypeStruct((TBp, F, N), jnp.bfloat16),           # inventory(channel-first)
    )

    grid_spec = pltpu.PrefetchScalarGridSpec(
        num_scalar_prefetch=1,                                     # (y, x) pairs -> SMEM
        grid=(NBLK,),
        in_specs=[
            pl.BlockSpec((None, 1, TBLK * RC), lambda g, yx: (g, 0, 0)),
            pl.BlockSpec((None, 1, TBLK * N), lambda g, yx: (g, 0, 0)),
            pl.BlockSpec((F, V), lambda g, yx: (0, 0)),            # resident transposed table
        ],
        out_specs=[
            pl.BlockSpec((TBLK, F, RC), lambda g, yx: (g, 0, 0)),
            pl.BlockSpec((TBLK, F, W * W), lambda g, yx: (g, 0, 0)),
            pl.BlockSpec((TBLK, F, N), lambda g, yx: (g, 0, 0)),
        ],
    )

    screen_r, vic_r, inv_r = pl.pallas_call(
        kernel,
        out_shape=out_shapes,
        grid_spec=grid_spec,
        compiler_params=pltpu.CompilerParams(
            dimension_semantics=("parallel",),
            vmem_limit_bytes=48 * 1024 * 1024),                    # fits v7x's 64 MiB VMEM
    )(yx, scr_ids, inv_ids, emb_t)

    # glue: metadata-only slices/reshapes back to the module's layouts
    screen = screen_r[:TB].reshape(T_, B_, F, R, C)                # T B F R C
    vicinity = vic_r[:TB].reshape(T_, B_, F, W, W)                 # T B F W W
    inventory = inv_r[:TB].reshape(T_, B_, F, N)                   # T B F N
    self_ = vicinity[..., k, k]                                    # T B F
    return dict(screen=screen, vicinity=vicinity, inventory=inventory, self=self_)


if __name__ == "__main__":
    T, B = 8, 4          # seq, batch  -> 32 rows, 4 grid steps of 8
    R, C = 16, 16        # screen rows / cols
    N = 8                # inventory slots
    F = 32               # embedding features
    V = MAX_GLYPH + 1    # vocabulary
    k = 1                # window radius
    W = 2 * k + 1

    key = jax.random.PRNGKey(0)
    k1, k2, k3, k4, k5 = jax.random.split(key, 5)
    glyphs = jax.random.randint(k1, (T, B, R, C), 0, MAX_GLYPH + 1, dtype=jnp.int32)
    inv_glyphs = jax.random.randint(k2, (T, B, N), 0, MAX_GLYPH + 1, dtype=jnp.int32)
    ys = jax.random.randint(k3, (T, B), 0, R, dtype=jnp.int32)
    xs = jax.random.randint(k4, (T, B), 0, C, dtype=jnp.int32)
    blstats = jnp.zeros((T, B, N_BLSTATS), jnp.int32)
    blstats = blstats.at[..., NLE_BL_X].set(xs)
    blstats = blstats.at[..., NLE_BL_Y].set(ys)
    emb_table = jax.random.normal(k5, (V, F), dtype=jnp.float32)   # stands in for self.glyphs

    obs = dict(glyphs=glyphs, blstats=blstats, inv_glyphs=inv_glyphs)
    out = glyph_feature_extractor(obs, emb_table, window=k, tblk=8)
    out = jax.block_until_ready(out)

    # ---- numpy reference of the PyTorch forward (against the bf16-rounded table;
    #      one-hot selection + bf16 stores are exact given bf16 table values) ----
    e = np.asarray(emb_table.astype(jnp.bfloat16).astype(jnp.float32))
    g = np.asarray(glyphs); bl = np.asarray(blstats); iv = np.asarray(inv_glyphs)
    pad = np.pad(g, ((0, 0), (0, 0), (k, k), (k, k)), constant_values=MAX_GLYPH)
    Ep = e[pad]                                                    # (T,B,Rp,Cp,F)
    ref_screen = np.transpose(Ep[:, :, k:k + R, k:k + C], (0, 1, 4, 2, 3))
    ref_vic = np.zeros((T, B, F, W, W), np.float32)
    for t in range(T):
        for b in range(B):
            y = int(bl[t, b, NLE_BL_Y]); x = int(bl[t, b, NLE_BL_X])
            ref_vic[t, b] = np.transpose(Ep[t, b, y:y + W, x:x + W], (2, 0, 1))
    ref_self = ref_vic[:, :, :, k, k]
    ref_inv = np.transpose(e[iv], (0, 1, 3, 2))

    got_screen = np.asarray(out['screen'].astype(jnp.float32))
    got_vic = np.asarray(out['vicinity'].astype(jnp.float32))
    got_inv = np.asarray(out['inventory'].astype(jnp.float32))
    got_self = np.asarray(out['self'].astype(jnp.float32))

    assert got_screen.shape == ref_screen.shape
    assert got_vic.shape == ref_vic.shape
    assert got_inv.shape == ref_inv.shape
    assert got_self.shape == ref_self.shape
    assert np.allclose(got_screen, ref_screen, atol=1e-5), "screen mismatch"
    assert np.allclose(got_vic, ref_vic, atol=1e-5), "vicinity mismatch"
    assert np.allclose(got_inv, ref_inv, atol=1e-5), "inventory mismatch"
    assert np.allclose(got_self, ref_self, atol=1e-5), "self mismatch"

    print("KERNEL_OK")
</pallas_src>

<mosaic_0001>
module attributes {stable_mosaic.version = 11 : i64} {
  func.func @_glyph_kernel(%arg0: i32, %arg1: memref<64xi32, #tpu.memory_space<smem>>, %arg2: memref<1x1x2048xi32, #tpu.memory_space<vmem>>, %arg3: memref<1x1x64xi32, #tpu.memory_space<vmem>>, %arg4: memref<32x64xbf16, #tpu.memory_space<vmem>>, %arg5: memref<8x32x256xbf16, #tpu.memory_space<vmem>>, %arg6: memref<8x32x9xbf16, #tpu.memory_space<vmem>>, %arg7: memref<8x32x8xbf16, #tpu.memory_space<vmem>>) attributes {dimension_semantics = [#tpu.dimension_semantics<parallel>], iteration_bounds = array<i64: 4>, scalar_prefetch = 1 : i64, scratch_operands = 0 : i64, tpu.core_type = #tpu.core_type<tc>, window_params = [{transform_indices = @transform_0, window_bounds = array<i64: 1, 1, 2048>}, {transform_indices = @transform_1, window_bounds = array<i64: 1, 1, 64>}, {pipeline_mode = #tpu.pipeline_mode<synchronous>, transform_indices = @transform_2, window_bounds = array<i64: 32, 64>}, {transform_indices = @transform_3, window_bounds = array<i64: 8, 32, 256>}, {transform_indices = @transform_4, window_bounds = array<i64: 8, 32, 9>}, {transform_indices = @transform_5, window_bounds = array<i64: 8, 32, 8>}]} {
    %c0 = arith.constant 0 : index
    %c0_0 = arith.constant 0 : index
    %c0_1 = arith.constant 0 : index
    %0 = vector.load %arg2[%c0, %c0_0, %c0_1] : memref<1x1x2048xi32, #tpu.memory_space<vmem>>, vector<1x1x2048xi32>
    %1 = vector.shape_cast %0 : vector<1x1x2048xi32> to vector<1x2048xi32>
    %cst = arith.constant 0.000000e+00 : f32
    %2 = vector.broadcast %cst : f32 to vector<32x2048xf32>
    %3 = tpu.iota {dimensions = array<i32: 0>} : vector<64x2048xi32>
    %c0_i32 = arith.constant 0 : i32
    %4 = vector.broadcast %c0_i32 : i32 to vector<64x2048xi32>
    %5 = arith.addi %4, %3 : vector<64x2048xi32>
    %6 = vector.broadcast %1 : vector<1x2048xi32> to vector<64x2048xi32>
    %7 = arith.cmpi eq, %6, %5 : vector<64x2048xi32>
    %8 = arith.extui %7 : vector<64x2048xi1> to vector<64x2048xi32>
    %9 = arith.sitofp %8 : vector<64x2048xi32> to vector<64x2048xf32>
    %10 = arith.truncf %9 : vector<64x2048xf32> to vector<64x2048xbf16>
    %c0_2 = arith.constant 0 : index
    %c0_3 = arith.constant 0 : index
    %11 = vector.load %arg4[%c0_2, %c0_3] : memref<32x64xbf16, #tpu.memory_space<vmem>>, vector<32x64xbf16>
    %cst_4 = arith.constant dense<0.000000e+00> : vector<32x2048xf32>
    %12 = tpu.matmul %11, %10, %cst_4 {dimension_numbers = #tpu.dot_dimension_numbers<[1], [0], [0], [1], [0, 0, 1, 1], [], []>} : vector<32x64xbf16>, vector<64x2048xbf16>, vector<32x2048xf32> -> vector<32x2048xf32>
    %13 = arith.addf %2, %12 : vector<32x2048xf32>
    %c0_5 = arith.constant 0 : index
    %c0_6 = arith.constant 0 : index
    %c0_7 = arith.constant 0 : index
    %14 = vector.load %arg3[%c0_5, %c0_6, %c0_7] : memref<1x1x64xi32, #tpu.memory_space<vmem>>, vector<1x1x64xi32>
    %15 = vector.shape_cast %14 : vector<1x1x64xi32> to vector<1x64xi32>
    %cst_8 = arith.constant 0.000000e+00 : f32
    %16 = vector.broadcast %cst_8 : f32 to vector<32x64xf32>
    %17 = tpu.iota {dimensions = array<i32: 0>} : vector<64x64xi32>
    %c0_i32_9 = arith.constant 0 : i32
    %18 = vector.broadcast %c0_i32_9 : i32 to vector<64x64xi32>
    %19 = arith.addi %18, %17 : vector<64x64xi32>
    %20 = vector.broadcast %15 : vector<1x64xi32> to vector<64x64xi32>
    %21 = arith.cmpi eq, %20, %19 : vector<64x64xi32>
    %22 = arith.extui %21 : vector<64x64xi1> to vector<64x64xi32>
    %23 = arith.sitofp %22 : vector<64x64xi32> to vector<64x64xf32>
    %24 = arith.truncf %23 : vector<64x64xf32> to vector<64x64xbf16>
    %c0_10 = arith.constant 0 : index
    %c0_11 = arith.constant 0 : index
    %25 = vector.load %arg4[%c0_10, %c0_11] : memref<32x64xbf16, #tpu.memory_space<vmem>>, vector<32x64xbf16>
    %cst_12 = arith.constant dense<0.000000e+00> : vector<32x64xf32>
    %26 = tpu.matmul %25, %24, %cst_12 {dimension_numbers = #tpu.dot_dimension_numbers<[1], [0], [0], [1], [0, 0, 1, 1], [], []>} : vector<32x64xbf16>, vector<64x64xbf16>, vector<32x64xf32> -> vector<32x64xf32>
    %27 = arith.addf %16, %26 : vector<32x64xf32>
    %28 = arith.truncf %13 : vector<32x2048xf32> to vector<32x2048xbf16>
    %29 = arith.truncf %27 : vector<32x64xf32> to vector<32x64xbf16>
    %30 = vector.extract_strided_slice %28 {offsets = [0, 0], sizes = [32, 256], strides = [1, 1]} : vector<32x2048xbf16> to vector<32x256xbf16>
    %c0_13 = arith.constant 0 : index
    %c0_14 = arith.constant 0 : index
    %c0_15 = arith.constant 0 : index
    %31 = vector.load %arg5[%c0_13, %c0_14, %c0_15] : memref<8x32x256xbf16, #tpu.memory_space<vmem>>, vector<1x32x256xbf16>
    %32 = vector.shape_cast %31 : vector<1x32x256xbf16> to vector<32x256xbf16>
    %33 = vector.shape_cast %30 : vector<32x256xbf16> to vector<1x32x256xbf16>
    tpu.vector_store %arg5[%c0_13, %c0_14, %c0_15], %33 {strides = array<i32>} : memref<8x32x256xbf16, #tpu.memory_space<vmem>>, vector<1x32x256xbf16>,
    %34 = vector.extract_strided_slice %29 {offsets = [0, 0], sizes = [32, 8], strides = [1, 1]} : vector<32x64xbf16> to vector<32x8xbf16>
    %c0_16 = arith.constant 0 : index
    %c0_17 = arith.constant 0 : index
    %c0_18 = arith.constant 0 : index
    %35 = vector.load %arg7[%c0_16, %c0_17, %c0_18] : memref<8x32x8xbf16, #tpu.memory_space<vmem>>, vector<1x32x8xbf16>
    %36 = vector.shape_cast %35 : vector<1x32x8xbf16> to vector<32x8xbf16>
    %37 = vector.shape_cast %34 : vector<32x8xbf16> to vector<1x32x8xbf16>
    tpu.vector_store %arg7[%c0_16, %c0_17, %c0_18], %37 {strides = array<i32>} : memref<8x32x8xbf16, #tpu.memory_space<vmem>>, vector<1x32x8xbf16>,
    %38 = vector.extract_strided_slice %28 {offsets = [0, 256], sizes = [32, 256], strides = [1, 1]} : vector<32x2048xbf16> to vector<32x256xbf16>
    %c1 = arith.constant 1 : index
    %c0_19 = arith.constant 0 : index
    %c0_20 = arith.constant 0 : index
    %39 = vector.load %arg5[%c1, %c0_19, %c0_20] : memref<8x32x256xbf16, #tpu.memory_space<vmem>>, vector<1x32x256xbf16>
    %40 = vector.shape_cast %39 : vector<1x32x256xbf16> to vector<32x256xbf16>
    %41 = vector.shape_cast %38 : vector<32x256xbf16> to vector<1x32x256xbf16>
    tpu.vector_store %arg5[%c1, %c0_19, %c0_20], %41 {strides = array<i32>} : memref<8x32x256xbf16, #tpu.memory_space<vmem>>, vector<1x32x256xbf16>,
    %42 = vector.extract_strided_slice %29 {offsets = [0, 8], sizes = [32, 8], strides = [1, 1]} : vector<32x64xbf16> to vector<32x8xbf16>
    %c1_21 = arith.constant 1 : index
    %c0_22 = arith.constant 0 : index
    %c0_23 = arith.constant 0 : index
    %43 = vector.load %arg7[%c1_21, %c0_22, %c0_23] : memref<8x32x8xbf16, #tpu.memory_space<vmem>>, vector<1x32x8xbf16>
    %44 = vector.shape_cast %43 : vector<1x32x8xbf16> to vector<32x8xbf16>
    %45 = vector.shape_cast %42 : vector<32x8xbf16> to vector<1x32x8xbf16>
    tpu.vector_store %arg7[%c1_21, %c0_22, %c0_23], %45 {strides = array<i32>} : memref<8x32x8xbf16, #tpu.memory_space<vmem>>, vector<1x32x8xbf16>,
    %46 = vector.extract_strided_slice %28 {offsets = [0, 512], sizes = [32, 256], strides = [1, 1]} : vector<32x2048xbf16> to vector<32x256xbf16>
    %c2 = arith.constant 2 : index
    %c0_24 = arith.constant 0 : index
    %c0_25 = arith.constant 0 : index
    %47 = vector.load %arg5[%c2, %c0_24, %c0_25] : memref<8x32x256xbf16, #tpu.memory_space<vmem>>, vector<1x32x256xbf16>
    %48 = vector.shape_cast %47 : vector<1x32x256xbf16> to vector<32x256xbf16>
    %49 = vector.shape_cast %46 : vector<32x256xbf16> to vector<1x32x256xbf16>
    tpu.vector_store %arg5[%c2, %c0_24, %c0_25], %49 {strides = array<i32>} : memref<8x32x256xbf16, #tpu.memory_space<vmem>>, vector<1x32x256xbf16>,
    %50 = vector.extract_strided_slice %29 {offsets = [0, 16], sizes = [32, 8], strides = [1, 1]} : vector<32x64xbf16> to vector<32x8xbf16>
    %c2_26 = arith.constant 2 : index
    %c0_27 = arith.constant 0 : index
    %c0_28 = arith.constant 0 : index
    %51 = vector.load %arg7[%c2_26, %c0_27, %c0_28] : memref<8x32x8xbf16, #tpu.memory_space<vmem>>, vector<1x32x8xbf16>
    %52 = vector.shape_cast %51 : vector<1x32x8xbf16> to vector<32x8xbf16>
    %53 = vector.shape_cast %50 : vector<32x8xbf16> to vector<1x32x8xbf16>
    tpu.vector_store %arg7[%c2_26, %c0_27, %c0_28], %53 {strides = array<i32>} : memref<8x32x8xbf16, #tpu.memory_space<vmem>>, vector<1x32x8xbf16>,
    %54 = vector.extract_strided_slice %28 {offsets = [0, 768], sizes = [32, 256], strides = [1, 1]} : vector<32x2048xbf16> to vector<32x256xbf16>
    %c3 = arith.constant 3 : index
    %c0_29 = arith.constant 0 : index
    %c0_30 = arith.constant 0 : index
    %55 = vector.load %arg5[%c3, %c0_29, %c0_30] : memref<8x32x256xbf16, #tpu.memory_space<vmem>>, vector<1x32x256xbf16>
    %56 = vector.shape_cast %55 : vector<1x32x256xbf16> to vector<32x256xbf16>
    %57 = vector.shape_cast %54 : vector<32x256xbf16> to vector<1x32x256xbf16>
    tpu.vector_store %arg5[%c3, %c0_29, %c0_30], %57 {strides = array<i32>} : memref<8x32x256xbf16, #tpu.memory_space<vmem>>, vector<1x32x256xbf16>,
    %58 = vector.extract_strided_slice %29 {offsets = [0, 24], sizes = [32, 8], strides = [1, 1]} : vector<32x64xbf16> to vector<32x8xbf16>
    %c3_31 = arith.constant 3 : index
    %c0_32 = arith.constant 0 : index
    %c0_33 = arith.constant 0 : index
    %59 = vector.load %arg7[%c3_31, %c0_32, %c0_33] : memref<8x32x8xbf16, #tpu.memory_space<vmem>>, vector<1x32x8xbf16>
    %60 = vector.shape_cast %59 : vector<1x32x8xbf16> to vector<32x8xbf16>
    %61 = vector.shape_cast %58 : vector<32x8xbf16> to vector<1x32x8xbf16>
    tpu.vector_store %arg7[%c3_31, %c0_32, %c0_33], %61 {strides = array<i32>} : memref<8x32x8xbf16, #tpu.memory_space<vmem>>, vector<1x32x8xbf16>,
    %62 = vector.extract_strided_slice %28 {offsets = [0, 1024], sizes = [32, 256], strides = [1, 1]} : vector<32x2048xbf16> to vector<32x256xbf16>
    %c4 = arith.constant 4 : index
    %c0_34 = arith.constant 0 : index
    %c0_35 = arith.constant 0 : index
    %63 = vector.load %arg5[%c4, %c0_34, %c0_35] : memref<8x32x256xbf16, #tpu.memory_space<vmem>>, vector<1x32x256xbf16>
    %64 = vector.shape_cast %63 : vector<1x32x256xbf16> to vector<32x256xbf16>
    %65 = vector.shape_cast %62 : vector<32x256xbf16> to vector<1x32x256xbf16>
    tpu.vector_store %arg5[%c4, %c0_34, %c0_35], %65 {strides = array<i32>} : memref<8x32x256xbf16, #tpu.memory_space<vmem>>, vector<1x32x256xbf16>,
    %66 = vector.extract_strided_slice %29 {offsets = [0, 32], sizes = [32, 8], strides = [1, 1]} : vector<32x64xbf16> to vector<32x8xbf16>
    %c4_36 = arith.constant 4 : index
    %c0_37 = arith.constant 0 : index
    %c0_38 = arith.constant 0 : index
    %67 = vector.load %arg7[%c4_36, %c0_37, %c0_38] : memref<8x32x8xbf16, #tpu.memory_space<vmem>>, vector<1x32x8xbf16>
    %68 = vector.shape_cast %67 : vector<1x32x8xbf16> to vector<32x8xbf16>
    %69 = vector.shape_cast %66 : vector<32x8xbf16> to vector<1x32x8xbf16>
    tpu.vector_store %arg7[%c4_36, %c0_37, %c0_38], %69 {strides = array<i32>} : memref<8x32x8xbf16, #tpu.memory_space<vmem>>, vector<1x32x8xbf16>,
    %70 = vector.extract_strided_slice %28 {offsets = [0, 1280], sizes = [32, 256], strides = [1, 1]} : vector<32x2048xbf16> to vector<32x256xbf16>
    %c5 = arith.constant 5 : index
    %c0_39 = arith.constant 0 : index
    %c0_40 = arith.constant 0 : index
    %71 = vector.load %arg5[%c5, %c0_39, %c0_40] : memref<8x32x256xbf16, #tpu.memory_space<vmem>>, vector<1x32x256xbf16>
    %72 = vector.shape_cast %71 : vector<1x32x256xbf16> to vector<32x256xbf16>
    %73 = vector.shape_cast %70 : vector<32x256xbf16> to vector<1x32x256xbf16>
    tpu.vector_store %arg5[%c5, %c0_39, %c0_40], %73 {strides = array<i32>} : memref<8x32x256xbf16, #tpu.memory_space<vmem>>, vector<1x32x256xbf16>,
    %74 = vector.extract_strided_slice %29 {offsets = [0, 40], sizes = [32, 8], strides = [1, 1]} : vector<32x64xbf16> to vector<32x8xbf16>
    %c5_41 = arith.constant 5 : index
    %c0_42 = arith.constant 0 : index
    %c0_43 = arith.constant 0 : index
    %75 = vector.load %arg7[%c5_41, %c0_42, %c0_43] : memref<8x32x8xbf16, #tpu.memory_space<vmem>>, vector<1x32x8xbf16>
    %76 = vector.shape_cast %75 : vector<1x32x8xbf16> to vector<32x8xbf16>
    %77 = vector.shape_cast %74 : vector<32x8xbf16> to vector<1x32x8xbf16>
    tpu.vector_store %arg7[%c5_41, %c0_42, %c0_43], %77 {strides = array<i32>} : memref<8x32x8xbf16, #tpu.memory_space<vmem>>, vector<1x32x8xbf16>,
    %78 = vector.extract_strided_slice %28 {offsets = [0, 1536], sizes = [32, 256], strides = [1, 1]} : vector<32x2048xbf16> to vector<32x256xbf16>
    %c6 = arith.constant 6 : index
    %c0_44 = arith.constant 0 : index
    %c0_45 = arith.constant 0 : index
    %79 = vector.load %arg5[%c6, %c0_44, %c0_45] : memref<8x32x256xbf16, #tpu.memory_space<vmem>>, vector<1x32x256xbf16>
    %80 = vector.shape_cast %79 : vector<1x32x256xbf16> to vector<32x256xbf16>
    %81 = vector.shape_cast %78 : vector<32x256xbf16> to vector<1x32x256xbf16>
    tpu.vector_store %arg5[%c6, %c0_44, %c0_45], %81 {strides = array<i32>} : memref<8x32x256xbf16, #tpu.memory_space<vmem>>, vector<1x32x256xbf16>,
    %82 = vector.extract_strided_slice %29 {offsets = [0, 48], sizes = [32, 8], strides = [1, 1]} : vector<32x64xbf16> to vector<32x8xbf16>
    %c6_46 = arith.constant 6 : index
    %c0_47 = arith.constant 0 : index
    %c0_48 = arith.constant 0 : index
    %83 = vector.load %arg7[%c6_46, %c0_47, %c0_48] : memref<8x32x8xbf16, #tpu.memory_space<vmem>>, vector<1x32x8xbf16>
    %84 = vector.shape_cast %83 : vector<1x32x8xbf16> to vector<32x8xbf16>
    %85 = vector.shape_cast %82 : vector<32x8xbf16> to vector<1x32x8xbf16>
    tpu.vector_store %arg7[%c6_46, %c0_47, %c0_48], %85 {strides = array<i32>} : memref<8x32x8xbf16, #tpu.memory_space<vmem>>, vector<1x32x8xbf16>,
    %86 = vector.extract_strided_slice %28 {offsets = [0, 1792], sizes = [32, 256], strides = [1, 1]} : vector<32x2048xbf16> to vector<32x256xbf16>
    %c7 = arith.constant 7 : index
    %c0_49 = arith.constant 0 : index
    %c0_50 = arith.constant 0 : index
    %87 = vector.load %arg5[%c7, %c0_49, %c0_50] : memref<8x32x256xbf16, #tpu.memory_space<vmem>>, vector<1x32x256xbf16>
    %88 = vector.shape_cast %87 : vector<1x32x256xbf16> to vector<32x256xbf16>
    %89 = vector.shape_cast %86 : vector<32x256xbf16> to vector<1x32x256xbf16>
    tpu.vector_store %arg5[%c7, %c0_49, %c0_50], %89 {strides = array<i32>} : memref<8x32x256xbf16, #tpu.memory_space<vmem>>, vector<1x32x256xbf16>,
    %90 = vector.extract_strided_slice %29 {offsets = [0, 56], sizes = [32, 8], strides = [1, 1]} : vector<32x64xbf16> to vector<32x8xbf16>
    %c7_51 = arith.constant 7 : index
    %c0_52 = arith.constant 0 : index
    %c0_53 = arith.constant 0 : index
    %91 = vector.load %arg7[%c7_51, %c0_52, %c0_53] : memref<8x32x8xbf16, #tpu.memory_space<vmem>>, vector<1x32x8xbf16>
    %92 = vector.shape_cast %91 : vector<1x32x8xbf16> to vector<32x8xbf16>
    %93 = vector.shape_cast %90 : vector<32x8xbf16> to vector<1x32x8xbf16>
    tpu.vector_store %arg7[%c7_51, %c0_52, %c0_53], %93 {strides = array<i32>} : memref<8x32x8xbf16, #tpu.memory_space<vmem>>, vector<1x32x8xbf16>,
    %94 = tpu.iota {dimensions = array<i32: 1>} : vector<1x9xi32>
    %c0_i32_54 = arith.constant 0 : i32
    %95 = vector.broadcast %c0_i32_54 : i32 to vector<1x9xi32>
    %c3_i32 = arith.constant 3 : i32
    %96 = vector.broadcast %c3_i32 : i32 to vector<1x9xi32>
    %97 = arith.cmpi sge, %94, %96 : vector<1x9xi32>
    %98 = arith.extui %97 : vector<1x9xi1> to vector<1x9xi32>
    %99 = arith.addi %95, %98 : vector<1x9xi32>
    %c6_i32 = arith.constant 6 : i32
    %100 = vector.broadcast %c6_i32 : i32 to vector<1x9xi32>
    %101 = arith.cmpi sge, %94, %100 : vector<1x9xi32>
    %102 = arith.extui %101 : vector<1x9xi1> to vector<1x9xi32>
    %103 = arith.addi %99, %102 : vector<1x9xi32>
    %c3_i32_55 = arith.constant 3 : i32
    %104 = vector.broadcast %c3_i32_55 : i32 to vector<1x9xi32>
    %105 = arith.muli %103, %104 : vector<1x9xi32>
    %106 = arith.subi %94, %105 : vector<1x9xi32>
    %c1_i32 = arith.constant 1 : i32
    %107 = vector.broadcast %c1_i32 : i32 to vector<1x9xi32>
    %108 = arith.subi %103, %107 : vector<1x9xi32>
    %c1_i32_56 = arith.constant 1 : i32
    %109 = vector.broadcast %c1_i32_56 : i32 to vector<1x9xi32>
    %110 = arith.subi %106, %109 : vector<1x9xi32>
    %111 = tpu.iota {dimensions = array<i32: 0>} : vector<256x9xi32>
    %c0_57 = arith.constant 0 : index
    %c63 = arith.constant 63 : index
    %112 = vector.load %arg4[%c0_57, %c63] : memref<32x64xbf16, #tpu.memory_space<vmem>>, vector<32x1xbf16>
    %113 = arith.extf %112 : vector<32x1xbf16> to vector<32x1xf32>
    %c8_i32 = arith.constant 8 : i32
    %114 = arith.muli %arg0, %c8_i32 : i32
    %c0_i32_58 = arith.constant 0 : i32
    %115 = arith.addi %114, %c0_i32_58 : i32
    %c2_i32 = arith.constant 2 : i32
    %116 = arith.muli %115, %c2_i32 : i32
    %c0_i32_59 = arith.constant 0 : i32
    %117 = arith.addi %116, %c0_i32_59 : i32
    %118 = arith.index_cast %117 : i32 to index
    %119 = memref.load %arg1[%118] : memref<64xi32, #tpu.memory_space<smem>>
    %c1_i32_60 = arith.constant 1 : i32
    %120 = arith.addi %116, %c1_i32_60 : i32
    %121 = arith.index_cast %120 : i32 to index
    %122 = memref.load %arg1[%121] : memref<64xi32, #tpu.memory_space<smem>>
    %123 = vector.broadcast %119 : i32 to vector<1x9xi32>
    %124 = arith.addi %123, %108 : vector<1x9xi32>
    %125 = vector.broadcast %122 : i32 to vector<1x9xi32>
    %126 = arith.addi %125, %110 : vector<1x9xi32>
    %c0_i32_61 = arith.constant 0 : i32
    %127 = vector.broadcast %c0_i32_61 : i32 to vector<1x9xi32>
    %128 = arith.cmpi sge, %124, %127 : vector<1x9xi32>
    %c16_i32 = arith.constant 16 : i32
    %129 = vector.broadcast %c16_i32 : i32 to vector<1x9xi32>
    %130 = arith.cmpi slt, %124, %129 : vector<1x9xi32>
    %131 = arith.andi %128, %130 : vector<1x9xi1>
    %c0_i32_62 = arith.constant 0 : i32
    %132 = vector.broadcast %c0_i32_62 : i32 to vector<1x9xi32>
    %133 = arith.cmpi sge, %126, %132 : vector<1x9xi32>
    %134 = arith.andi %131, %133 : vector<1x9xi1>
    %c16_i32_63 = arith.constant 16 : i32
    %135 = vector.broadcast %c16_i32_63 : i32 to vector<1x9xi32>
    %136 = arith.cmpi slt, %126, %135 : vector<1x9xi32>
    %137 = arith.andi %134, %136 : vector<1x9xi1>
    %c16_i32_64 = arith.constant 16 : i32
    %138 = vector.broadcast %c16_i32_64 : i32 to vector<1x9xi32>
    %139 = arith.muli %124, %138 : vector<1x9xi32>
    %140 = arith.addi %139, %126 : vector<1x9xi32>
    %c256_i32 = arith.constant 256 : i32
    %141 = vector.broadcast %c256_i32 : i32 to vector<1x9xi32>
    %142 = arith.select %137, %140, %141 : vector<1x9xi1>, vector<1x9xi32>
    %143 = vector.broadcast %142 : vector<1x9xi32> to vector<256x9xi32>
    %144 = arith.cmpi eq, %143, %111 : vector<256x9xi32>
    %145 = arith.extui %144 : vector<256x9xi1> to vector<256x9xi32>
    %146 = arith.sitofp %145 : vector<256x9xi32> to vector<256x9xf32>
    %147 = arith.truncf %146 : vector<256x9xf32> to vector<256x9xbf16>
    %148 = vector.extract_strided_slice %28 {offsets = [0, 0], sizes = [32, 256], strides = [1, 1]} : vector<32x2048xbf16> to vector<32x256xbf16>
    %cst_65 = arith.constant dense<0.000000e+00> : vector<32x9xf32>
    %149 = tpu.matmul %148, %147, %cst_65 {dimension_numbers = #tpu.dot_dimension_numbers<[1], [0], [0], [1], [0, 0, 1, 1], [], []>} : vector<32x256xbf16>, vector<256x9xbf16>, vector<32x9xf32> -> vector<32x9xf32>
    %150 = vector.shape_cast %137 : vector<1x9xi1> to vector<1x9xi1>
    %151 = vector.broadcast %150 : vector<1x9xi1> to vector<32x9xi1>
    %152 = vector.shape_cast %113 : vector<32x1xf32> to vector<32x1xf32>
    %153 = vector.broadcast %152 : vector<32x1xf32> to vector<32x9xf32>
    %154 = arith.select %151, %149, %153 : vector<32x9xi1>, vector<32x9xf32>
    %155 = arith.truncf %154 : vector<32x9xf32> to vector<32x9xbf16>
    %c0_66 = arith.constant 0 : index
    %c0_67 = arith.constant 0 : index
    %c0_68 = arith.constant 0 : index
    %156 = vector.load %arg6[%c0_66, %c0_67, %c0_68] : memref<8x32x9xbf16, #tpu.memory_space<vmem>>, vector<1x32x9xbf16>
    %157 = vector.shape_cast %156 : vector<1x32x9xbf16> to vector<32x9xbf16>
    %158 = vector.shape_cast %155 : vector<32x9xbf16> to vector<1x32x9xbf16>
    tpu.vector_store %arg6[%c0_66, %c0_67, %c0_68], %158 {strides = array<i32>} : memref<8x32x9xbf16, #tpu.memory_space<vmem>>, vector<1x32x9xbf16>,
    %c8_i32_69 = arith.constant 8 : i32
    %159 = arith.muli %arg0, %c8_i32_69 : i32
    %c1_i32_70 = arith.constant 1 : i32
    %160 = arith.addi %159, %c1_i32_70 : i32
    %c2_i32_71 = arith.constant 2 : i32
    %161 = arith.muli %160, %c2_i32_71 : i32
    %c0_i32_72 = arith.constant 0 : i32
    %162 = arith.addi %161, %c0_i32_72 : i32
    %163 = arith.index_cast %162 : i32 to index
    %164 = memref.load %arg1[%163] : memref<64xi32, #tpu.memory_space<smem>>
    %c1_i32_73 = arith.constant 1 : i32
    %165 = arith.addi %161, %c1_i32_73 : i32
    %166 = arith.index_cast %165 : i32 to index
    %167 = memref.load %arg1[%166] : memref<64xi32, #tpu.memory_space<smem>>
    %168 = vector.broadcast %164 : i32 to vector<1x9xi32>
    %169 = arith.addi %168, %108 : vector<1x9xi32>
    %170 = vector.broadcast %167 : i32 to vector<1x9xi32>
    %171 = arith.addi %170, %110 : vector<1x9xi32>
    %c0_i32_74 = arith.constant 0 : i32
    %172 = vector.broadcast %c0_i32_74 : i32 to vector<1x9xi32>
    %173 = arith.cmpi sge, %169, %172 : vector<1x9xi32>
    %c16_i32_75 = arith.constant 16 : i32
    %174 = vector.broadcast %c16_i32_75 : i32 to vector<1x9xi32>
    %175 = arith.cmpi slt, %169, %174 : vector<1x9xi32>
    %176 = arith.andi %173, %175 : vector<1x9xi1>
    %c0_i32_76 = arith.constant 0 : i32
    %177 = vector.broadcast %c0_i32_76 : i32 to vector<1x9xi32>
    %178 = arith.cmpi sge, %171, %177 : vector<1x9xi32>
    %179 = arith.andi %176, %178 : vector<1x9xi1>
    %c16_i32_77 = arith.constant 16 : i32
    %180 = vector.broadcast %c16_i32_77 : i32 to vector<1x9xi32>
    %181 = arith.cmpi slt, %171, %180 : vector<1x9xi32>
    %182 = arith.andi %179, %181 : vector<1x9xi1>
    %c16_i32_78 = arith.constant 16 : i32
    %183 = vector.broadcast %c16_i32_78 : i32 to vector<1x9xi32>
    %184 = arith.muli %169, %183 : vector<1x9xi32>
    %185 = arith.addi %184, %171 : vector<1x9xi32>
    %c256_i32_79 = arith.constant 256 : i32
    %186 = vector.broadcast %c256_i32_79 : i32 to vector<1x9xi32>
    %187 = arith.select %182, %185, %186 : vector<1x9xi1>, vector<1x9xi32>
    %188 = vector.broadcast %187 : vector<1x9xi32> to vector<256x9xi32>
    %189 = arith.cmpi eq, %188, %111 : vector<256x9xi32>
    %190 = arith.extui %189 : vector<256x9xi1> to vector<256x9xi32>
    %191 = arith.sitofp %190 : vector<256x9xi32> to vector<256x9xf32>
    %192 = arith.truncf %191 : vector<256x9xf32> to vector<256x9xbf16>
    %193 = vector.extract_strided_slice %28 {offsets = [0, 256], sizes = [32, 256], strides = [1, 1]} : vector<32x2048xbf16> to vector<32x256xbf16>
    %cst_80 = arith.constant dense<0.000000e+00> : vector<32x9xf32>
    %194 = tpu.matmul %193, %192, %cst_80 {dimension_numbers = #tpu.dot_dimension_numbers<[1], [0], [0], [1], [0, 0, 1, 1], [], []>} : vector<32x256xbf16>, vector<256x9xbf16>, vector<32x9xf32> -> vector<32x9xf32>
    %195 = vector.shape_cast %182 : vector<1x9xi1> to vector<1x9xi1>
    %196 = vector.broadcast %195 : vector<1x9xi1> to vector<32x9xi1>
    %197 = vector.shape_cast %113 : vector<32x1xf32> to vector<32x1xf32>
    %198 = vector.broadcast %197 : vector<32x1xf32> to vector<32x9xf32>
    %199 = arith.select %196, %194, %198 : vector<32x9xi1>, vector<32x9xf32>
    %200 = arith.truncf %199 : vector<32x9xf32> to vector<32x9xbf16>
    %c1_81 = arith.constant 1 : index
    %c0_82 = arith.constant 0 : index
    %c0_83 = arith.constant 0 : index
    %201 = vector.load %arg6[%c1_81, %c0_82, %c0_83] : memref<8x32x9xbf16, #tpu.memory_space<vmem>>, vector<1x32x9xbf16>
    %202 = vector.shape_cast %201 : vector<1x32x9xbf16> to vector<32x9xbf16>
    %203 = vector.shape_cast %200 : vector<32x9xbf16> to vector<1x32x9xbf16>
    tpu.vector_store %arg6[%c1_81, %c0_82, %c0_83], %203 {strides = array<i32>} : memref<8x32x9xbf16, #tpu.memory_space<vmem>>, vector<1x32x9xbf16>,
    %c8_i32_84 = arith.constant 8 : i32
    %204 = arith.muli %arg0, %c8_i32_84 : i32
    %c2_i32_85 = arith.constant 2 : i32
    %205 = arith.addi %204, %c2_i32_85 : i32
    %c2_i32_86 = arith.constant 2 : i32
    %206 = arith.muli %205, %c2_i32_86 : i32
    %c0_i32_87 = arith.constant 0 : i32
    %207 = arith.addi %206, %c0_i32_87 : i32
    %208 = arith.index_cast %207 : i32 to index
    %209 = memref.load %arg1[%208] : memref<64xi32, #tpu.memory_space<smem>>
    %c1_i32_88 = arith.constant 1 : i32
    %210 = arith.addi %206, %c1_i32_88 : i32
    %211 = arith.index_cast %210 : i32 to index
    %212 = memref.load %arg1[%211] : memref<64xi32, #tpu.memory_space<smem>>
    %213 = vector.broadcast %209 : i32 to vector<1x9xi32>
    %214 = arith.addi %213, %108 : vector<1x9xi32>
    %215 = vector.broadcast %212 : i32 to vector<1x9xi32>
    %216 = arith.addi %215, %110 : vector<1x9xi32>
    %c0_i32_89 = arith.constant 0 : i32
    %217 = vector.broadcast %c0_i32_89 : i32 to vector<1x9xi32>
    %218 = arith.cmpi sge, %214, %217 : vector<1x9xi32>
    %c16_i32_90 = arith.constant 16 : i32
    %219 = vector.broadcast %c16_i32_90 : i32 to vector<1x9xi32>
    %220 = arith.cmpi slt, %214, %219 : vector<1x9xi32>
    %221 = arith.andi %218, %220 : vector<1x9xi1>
    %c0_i32_91 = arith.constant 0 : i32
    %222 = vector.broadcast %c0_i32_91 : i32 to vector<1x9xi32>
    %223 = arith.cmpi sge, %216, %222 : vector<1x9xi32>
    %224 = arith.andi %221, %223 : vector<1x9xi1>
    %c16_i32_92 = arith.constant 16 : i32
    %225 = vector.broadcast %c16_i32_92 : i32 to vector<1x9xi32>
    %226 = arith.cmpi slt, %216, %225 : vector<1x9xi32>
    %227 = arith.andi %224, %226 : vector<1x9xi1>
    %c16_i32_93 = arith.constant 16 : i32
    %228 = vector.broadcast %c16_i32_93 : i32 to vector<1x9xi32>
    %229 = arith.muli %214, %228 : vector<1x9xi32>
    %230 = arith.addi %229, %216 : vector<1x9xi32>
    %c256_i32_94 = arith.constant 256 : i32
    %231 = vector.broadcast %c256_i32_94 : i32 to vector<1x9xi32>
    %232 = arith.select %227, %230, %231 : vector<1x9xi1>, vector<1x9xi32>
    %233 = vector.broadcast %232 : vector<1x9xi32> to vector<256x9xi32>
    %234 = arith.cmpi eq, %233, %111 : vector<256x9xi32>
    %235 = arith.extui %234 : vector<256x9xi1> to vector<256x9xi32>
    %236 = arith.sitofp %235 : vector<256x9xi32> to vector<256x9xf32>
    %237 = arith.truncf %236 : vector<256x9xf32> to vector<256x9xbf16>
    %238 = vector.extract_strided_slice %28 {offsets = [0, 512], sizes = [32, 256], strides = [1, 1]} : vector<32x2048xbf16> to vector<32x256xbf16>
    %cst_95 = arith.constant dense<0.000000e+00> : vector<32x9xf32>
    %239 = tpu.matmul %238, %237, %cst_95 {dimension_numbers = #tpu.dot_dimension_numbers<[1], [0], [0], [1], [0, 0, 1, 1], [], []>} : vector<32x256xbf16>, vector<256x9xbf16>, vector<32x9xf32> -> vector<32x9xf32>
    %240 = vector.shape_cast %227 : vector<1x9xi1> to vector<1x9xi1>
    %241 = vector.broadcast %240 : vector<1x9xi1> to vector<32x9xi1>
    %242 = vector.shape_cast %113 : vector<32x1xf32> to vector<32x1xf32>
    %243 = vector.broadcast %242 : vector<32x1xf32> to vector<32x9xf32>
    %244 = arith.select %241, %239, %243 : vector<32x9xi1>, vector<32x9xf32>
    %245 = arith.truncf %244 : vector<32x9xf32> to vector<32x9xbf16>
    %c2_96 = arith.constant 2 : index
    %c0_97 = arith.constant 0 : index
    %c0_98 = arith.constant 0 : index
    %246 = vector.load %arg6[%c2_96, %c0_97, %c0_98] : memref<8x32x9xbf16, #tpu.memory_space<vmem>>, vector<1x32x9xbf16>
    %247 = vector.shape_cast %246 : vector<1x32x9xbf16> to vector<32x9xbf16>
    %248 = vector.shape_cast %245 : vector<32x9xbf16> to vector<1x32x9xbf16>
    tpu.vector_store %arg6[%c2_96, %c0_97, %c0_98], %248 {strides = array<i32>} : memref<8x32x9xbf16, #tpu.memory_space<vmem>>, vector<1x32x9xbf16>,
    %c8_i32_99 = arith.constant 8 : i32
    %249 = arith.muli %arg0, %c8_i32_99 : i32
    %c3_i32_100 = arith.constant 3 : i32
    %250 = arith.addi %249, %c3_i32_100 : i32
    %c2_i32_101 = arith.constant 2 : i32
    %251 = arith.muli %250, %c2_i32_101 : i32
    %c0_i32_102 = arith.constant 0 : i32
    %252 = arith.addi %251, %c0_i32_102 : i32
    %253 = arith.index_cast %252 : i32 to index
    %254 = memref.load %arg1[%253] : memref<64xi32, #tpu.memory_space<smem>>
    %c1_i32_103 = arith.constant 1 : i32
    %255 = arith.addi %251, %c1_i32_103 : i32
    %256 = arith.index_cast %255 : i32 to index
    %257 = memref.load %arg1[%256] : memref<64xi32, #tpu.memory_space<smem>>
    %258 = vector.broadcast %254 : i32 to vector<1x9xi32>
    %259 = arith.addi %258, %108 : vector<1x9xi32>
    %260 = vector.broadcast %257 : i32 to vector<1x9xi32>
    %261 = arith.addi %260, %110 : vector<1x9xi32>
    %c0_i32_104 = arith.constant 0 : i32
    %262 = vector.broadcast %c0_i32_104 : i32 to vector<1x9xi32>
    %263 = arith.cmpi sge, %259, %262 : vector<1x9xi32>
    %c16_i32_105 = arith.constant 16 : i32
    %264 = vector.broadcast %c16_i32_105 : i32 to vector<1x9xi32>
    %265 = arith.cmpi slt, %259, %264 : vector<1x9xi32>
    %266 = arith.andi %263, %265 : vector<1x9xi1>
    %c0_i32_106 = arith.constant 0 : i32
    %267 = vector.broadcast %c0_i32_106 : i32 to vector<1x9xi32>
    %268 = arith.cmpi sge, %261, %267 : vector<1x9xi32>
    %269 = arith.andi %266, %268 : vector<1x9xi1>
    %c16_i32_107 = arith.constant 16 : i32
    %270 = vector.broadcast %c16_i32_107 : i32 to vector<1x9xi32>
    %271 = arith.cmpi slt, %261, %270 : vector<1x9xi32>
    %272 = arith.andi %269, %271 : vector<1x9xi1>
    %c16_i32_108 = arith.constant 16 : i32
    %273 = vector.broadcast %c16_i32_108 : i32 to vector<1x9xi32>
    %274 = arith.muli %259, %273 : vector<1x9xi32>
    %275 = arith.addi %274, %261 : vector<1x9xi32>
    %c256_i32_109 = arith.constant 256 : i32
    %276 = vector.broadcast %c256_i32_109 : i32 to vector<1x9xi32>
    %277 = arith.select %272, %275, %276 : vector<1x9xi1>, vector<1x9xi32>
    %278 = vector.broadcast %277 : vector<1x9xi32> to vector<256x9xi32>
    %279 = arith.cmpi eq, %278, %111 : vector<256x9xi32>
    %280 = arith.extui %279 : vector<256x9xi1> to vector<256x9xi32>
    %281 = arith.sitofp %280 : vector<256x9xi32> to vector<256x9xf32>
    %282 = arith.truncf %281 : vector<256x9xf32> to vector<256x9xbf16>
    %283 = vector.extract_strided_slice %28 {offsets = [0, 768], sizes = [32, 256], strides = [1, 1]} : vector<32x2048xbf16> to vector<32x256xbf16>
    %cst_110 = arith.constant dense<0.000000e+00> : vector<32x9xf32>
    %284 = tpu.matmul %283, %282, %cst_110 {dimension_numbers = #tpu.dot_dimension_numbers<[1], [0], [0], [1], [0, 0, 1, 1], [], []>} : vector<32x256xbf16>, vector<256x9xbf16>, vector<32x9xf32> -> vector<32x9xf32>
    %285 = vector.shape_cast %272 : vector<1x9xi1> to vector<1x9xi1>
    %286 = vector.broadcast %285 : vector<1x9xi1> to vector<32x9xi1>
    %287 = vector.shape_cast %113 : vector<32x1xf32> to vector<32x1xf32>
    %288 = vector.broadcast %287 : vector<32x1xf32> to vector<32x9xf32>
    %289 = arith.select %286, %284, %288 : vector<32x9xi1>, vector<32x9xf32>
    %290 = arith.truncf %289 : vector<32x9xf32> to vector<32x9xbf16>
    %c3_111 = arith.constant 3 : index
    %c0_112 = arith.constant 0 : index
    %c0_113 = arith.constant 0 : index
    %291 = vector.load %arg6[%c3_111, %c0_112, %c0_113] : memref<8x32x9xbf16, #tpu.memory_space<vmem>>, vector<1x32x9xbf16>
    %292 = vector.shape_cast %291 : vector<1x32x9xbf16> to vector<32x9xbf16>
    %293 = vector.shape_cast %290 : vector<32x9xbf16> to vector<1x32x9xbf16>
    tpu.vector_store %arg6[%c3_111, %c0_112, %c0_113], %293 {strides = array<i32>} : memref<8x32x9xbf16, #tpu.memory_space<vmem>>, vector<1x32x9xbf16>,
    %c8_i32_114 = arith.constant 8 : i32
    %294 = arith.muli %arg0, %c8_i32_114 : i32
    %c4_i32 = arith.constant 4 : i32
    %295 = arith.addi %294, %c4_i32 : i32
    %c2_i32_115 = arith.constant 2 : i32
    %296 = arith.muli %295, %c2_i32_115 : i32
    %c0_i32_116 = arith.constant 0 : i32
    %297 = arith.addi %296, %c0_i32_116 : i32
    %298 = arith.index_cast %297 : i32 to index
    %299 = memref.load %arg1[%298] : memref<64xi32, #tpu.memory_space<smem>>
    %c1_i32_117 = arith.constant 1 : i32
    %300 = arith.addi %296, %c1_i32_117 : i32
    %301 = arith.index_cast %300 : i32 to index
    %302 = memref.load %arg1[%301] : memref<64xi32, #tpu.memory_space<smem>>
    %303 = vector.broadcast %299 : i32 to vector<1x9xi32>
    %304 = arith.addi %303, %108 : vector<1x9xi32>
    %305 = vector.broadcast %302 : i32 to vector<1x9xi32>
    %306 = arith.addi %305, %110 : vector<1x9xi32>
    %c0_i32_118 = arith.constant 0 : i32
    %307 = vector.broadcast %c0_i32_118 : i32 to vector<1x9xi32>
    %308 = arith.cmpi sge, %304, %307 : vector<1x9xi32>
    %c16_i32_119 = arith.constant 16 : i32
    %309 = vector.broadcast %c16_i32_119 : i32 to vector<1x9xi32>
    %310 = arith.cmpi slt, %304, %309 : vector<1x9xi32>
    %311 = arith.andi %308, %310 : vector<1x9xi1>
    %c0_i32_120 = arith.constant 0 : i32
    %312 = vector.broadcast %c0_i32_120 : i32 to vector<1x9xi32>
    %313 = arith.cmpi sge, %306, %312 : vector<1x9xi32>
    %314 = arith.andi %311, %313 : vector<1x9xi1>
    %c16_i32_121 = arith.constant 16 : i32
    %315 = vector.broadcast %c16_i32_121 : i32 to vector<1x9xi32>
    %316 = arith.cmpi slt, %306, %315 : vector<1x9xi32>
    %317 = arith.andi %314, %316 : vector<1x9xi1>
    %c16_i32_122 = arith.constant 16 : i32
    %318 = vector.broadcast %c16_i32_122 : i32 to vector<1x9xi32>
    %319 = arith.muli %304, %318 : vector<1x9xi32>
    %320 = arith.addi %319, %306 : vector<1x9xi32>
    %c256_i32_123 = arith.constant 256 : i32
    %321 = vector.broadcast %c256_i32_123 : i32 to vector<1x9xi32>
    %322 = arith.select %317, %320, %321 : vector<1x9xi1>, vector<1x9xi32>
    %323 = vector.broadcast %322 : vector<1x9xi32> to vector<256x9xi32>
    %324 = arith.cmpi eq, %323, %111 : vector<256x9xi32>
    %325 = arith.extui %324 : vector<256x9xi1> to vector<256x9xi32>
    %326 = arith.sitofp %325 : vector<256x9xi32> to vector<256x9xf32>
    %327 = arith.truncf %326 : vector<256x9xf32> to vector<256x9xbf16>
    %328 = vector.extract_strided_slice %28 {offsets = [0, 1024], sizes = [32, 256], strides = [1, 1]} : vector<32x2048xbf16> to vector<32x256xbf16>
    %cst_124 = arith.constant dense<0.000000e+00> : vector<32x9xf32>
    %329 = tpu.matmul %328, %327, %cst_124 {dimension_numbers = #tpu.dot_dimension_numbers<[1], [0], [0], [1], [0, 0, 1, 1], [], []>} : vector<32x256xbf16>, vector<256x9xbf16>, vector<32x9xf32> -> vector<32x9xf32>
    %330 = vector.shape_cast %317 : vector<1x9xi1> to vector<1x9xi1>
    %331 = vector.broadcast %330 : vector<1x9xi1> to vector<32x9xi1>
    %332 = vector.shape_cast %113 : vector<32x1xf32> to vector<32x1xf32>
    %333 = vector.broadcast %332 : vector<32x1xf32> to vector<32x9xf32>
    %334 = arith.select %331, %329, %333 : vector<32x9xi1>, vector<32x9xf32>
    %335 = arith.truncf %334 : vector<32x9xf32> to vector<32x9xbf16>
    %c4_125 = arith.constant 4 : index
    %c0_126 = arith.constant 0 : index
    %c0_127 = arith.constant 0 : index
    %336 = vector.load %arg6[%c4_125, %c0_126, %c0_127] : memref<8x32x9xbf16, #tpu.memory_space<vmem>>, vector<1x32x9xbf16>
    %337 = vector.shape_cast %336 : vector<1x32x9xbf16> to vector<32x9xbf16>
    %338 = vector.shape_cast %335 : vector<32x9xbf16> to vector<1x32x9xbf16>
    tpu.vector_store %arg6[%c4_125, %c0_126, %c0_127], %338 {strides = array<i32>} : memref<8x32x9xbf16, #tpu.memory_space<vmem>>, vector<1x32x9xbf16>,
    %c8_i32_128 = arith.constant 8 : i32
    %339 = arith.muli %arg0, %c8_i32_128 : i32
    %c5_i32 = arith.constant 5 : i32
    %340 = arith.addi %339, %c5_i32 : i32
    %c2_i32_129 = arith.constant 2 : i32
    %341 = arith.muli %340, %c2_i32_129 : i32
    %c0_i32_130 = arith.constant 0 : i32
    %342 = arith.addi %341, %c0_i32_130 : i32
    %343 = arith.index_cast %342 : i32 to index
    %344 = memref.load %arg1[%343] : memref<64xi32, #tpu.memory_space<smem>>
    %c1_i32_131 = arith.constant 1 : i32
    %345 = arith.addi %341, %c1_i32_131 : i32
    %346 = arith.index_cast %345 : i32 to index
    %347 = memref.load %arg1[%346] : memref<64xi32, #tpu.memory_space<smem>>
    %348 = vector.broadcast %344 : i32 to vector<1x9xi32>
    %349 = arith.addi %348, %108 : vector<1x9xi32>
    %350 = vector.broadcast %347 : i32 to vector<1x9xi32>
    %351 = arith.addi %350, %110 : vector<1x9xi32>
    %c0_i32_132 = arith.constant 0 : i32
    %352 = vector.broadcast %c0_i32_132 : i32 to vector<1x9xi32>
    %353 = arith.cmpi sge, %349, %352 : vector<1x9xi32>
    %c16_i32_133 = arith.constant 16 : i32
    %354 = vector.broadcast %c16_i32_133 : i32 to vector<1x9xi32>
    %355 = arith.cmpi slt, %349, %354 : vector<1x9xi32>
    %356 = arith.andi %353, %355 : vector<1x9xi1>
    %c0_i32_134 = arith.constant 0 : i32
    %357 = vector.broadcast %c0_i32_134 : i32 to vector<1x9xi32>
    %358 = arith.cmpi sge, %351, %357 : vector<1x9xi32>
    %359 = arith.andi %356, %358 : vector<1x9xi1>
    %c16_i32_135 = arith.constant 16 : i32
    %360 = vector.broadcast %c16_i32_135 : i32 to vector<1x9xi32>
    %361 = arith.cmpi slt, %351, %360 : vector<1x9xi32>
    %362 = arith.andi %359, %361 : vector<1x9xi1>
    %c16_i32_136 = arith.constant 16 : i32
    %363 = vector.broadcast %c16_i32_136 : i32 to vector<1x9xi32>
    %364 = arith.muli %349, %363 : vector<1x9xi32>
    %365 = arith.addi %364, %351 : vector<1x9xi32>
    %c256_i32_137 = arith.constant 256 : i32
    %366 = vector.broadcast %c256_i32_137 : i32 to vector<1x9xi32>
    %367 = arith.select %362, %365, %366 : vector<1x9xi1>, vector<1x9xi32>
    %368 = vector.broadcast %367 : vector<1x9xi32> to vector<256x9xi32>
    %369 = arith.cmpi eq, %368, %111 : vector<256x9xi32>
    %370 = arith.extui %369 : vector<256x9xi1> to vector<256x9xi32>
    %371 = arith.sitofp %370 : vector<256x9xi32> to vector<256x9xf32>
    %372 = arith.truncf %371 : vector<256x9xf32> to vector<256x9xbf16>
    %373 = vector.extract_strided_slice %28 {offsets = [0, 1280], sizes = [32, 256], strides = [1, 1]} : vector<32x2048xbf16> to vector<32x256xbf16>
    %cst_138 = arith.constant dense<0.000000e+00> : vector<32x9xf32>
    %374 = tpu.matmul %373, %372, %cst_138 {dimension_numbers = #tpu.dot_dimension_numbers<[1], [0], [0], [1], [0, 0, 1, 1], [], []>} : vector<32x256xbf16>, vector<256x9xbf16>, vector<32x9xf32> -> vector<32x9xf32>
    %375 = vector.shape_cast %362 : vector<1x9xi1> to vector<1x9xi1>
    %376 = vector.broadcast %375 : vector<1x9xi1> to vector<32x9xi1>
    %377 = vector.shape_cast %113 : vector<32x1xf32> to vector<32x1xf32>
    %378 = vector.broadcast %377 : vector<32x1xf32> to vector<32x9xf32>
    %379 = arith.select %376, %374, %378 : vector<32x9xi1>, vector<32x9xf32>
    %380 = arith.truncf %379 : vector<32x9xf32> to vector<32x9xbf16>
    %c5_139 = arith.constant 5 : index
    %c0_140 = arith.constant 0 : index
    %c0_141 = arith.constant 0 : index
    %381 = vector.load %arg6[%c5_139, %c0_140, %c0_141] : memref<8x32x9xbf16, #tpu.memory_space<vmem>>, vector<1x32x9xbf16>
    %382 = vector.shape_cast %381 : vector<1x32x9xbf16> to vector<32x9xbf16>
    %383 = vector.shape_cast %380 : vector<32x9xbf16> to vector<1x32x9xbf16>
    tpu.vector_store %arg6[%c5_139, %c0_140, %c0_141], %383 {strides = array<i32>} : memref<8x32x9xbf16, #tpu.memory_space<vmem>>, vector<1x32x9xbf16>,
    %c8_i32_142 = arith.constant 8 : i32
    %384 = arith.muli %arg0, %c8_i32_142 : i32
    %c6_i32_143 = arith.constant 6 : i32
    %385 = arith.addi %384, %c6_i32_143 : i32
    %c2_i32_144 = arith.constant 2 : i32
    %386 = arith.muli %385, %c2_i32_144 : i32
    %c0_i32_145 = arith.constant 0 : i32
    %387 = arith.addi %386, %c0_i32_145 : i32
    %388 = arith.index_cast %387 : i32 to index
    %389 = memref.load %arg1[%388] : memref<64xi32, #tpu.memory_space<smem>>
    %c1_i32_146 = arith.constant 1 : i32
    %390 = arith.addi %386, %c1_i32_146 : i32
    %391 = arith.index_cast %390 : i32 to index
    %392 = memref.load %arg1[%391] : memref<64xi32, #tpu.memory_space<smem>>
    %393 = vector.broadcast %389 : i32 to vector<1x9xi32>
    %394 = arith.addi %393, %108 : vector<1x9xi32>
    %395 = vector.broadcast %392 : i32 to vector<1x9xi32>
    %396 = arith.addi %395, %110 : vector<1x9xi32>
    %c0_i32_147 = arith.constant 0 : i32
    %397 = vector.broadcast %c0_i32_147 : i32 to vector<1x9xi32>
    %398 = arith.cmpi sge, %394, %397 : vector<1x9xi32>
    %c16_i32_148 = arith.constant 16 : i32
    %399 = vector.broadcast %c16_i32_148 : i32 to vector<1x9xi32>
    %400 = arith.cmpi slt, %394, %399 : vector<1x9xi32>
    %401 = arith.andi %398, %400 : vector<1x9xi1>
    %c0_i32_149 = arith.constant 0 : i32
    %402 = vector.broadcast %c0_i32_149 : i32 to vector<1x9xi32>
    %403 = arith.cmpi sge, %396, %402 : vector<1x9xi32>
    %404 = arith.andi %401, %403 : vector<1x9xi1>
    %c16_i32_150 = arith.constant 16 : i32
    %405 = vector.broadcast %c16_i32_150 : i32 to vector<1x9xi32>
    %406 = arith.cmpi slt, %396, %405 : vector<1x9xi32>
    %407 = arith.andi %404, %406 : vector<1x9xi1>
    %c16_i32_151 = arith.constant 16 : i32
    %408 = vector.broadcast %c16_i32_151 : i32 to vector<1x9xi32>
    %409 = arith.muli %394, %408 : vector<1x9xi32>
    %410 = arith.addi %409, %396 : vector<1x9xi32>
    %c256_i32_152 = arith.constant 256 : i32
    %411 = vector.broadcast %c256_i32_152 : i32 to vector<1x9xi32>
    %412 = arith.select %407, %410, %411 : vector<1x9xi1>, vector<1x9xi32>
    %413 = vector.broadcast %412 : vector<1x9xi32> to vector<256x9xi32>
    %414 = arith.cmpi eq, %413, %111 : vector<256x9xi32>
    %415 = arith.extui %414 : vector<256x9xi1> to vector<256x9xi32>
    %416 = arith.sitofp %415 : vector<256x9xi32> to vector<256x9xf32>
    %417 = arith.truncf %416 : vector<256x9xf32> to vector<256x9xbf16>
    %418 = vector.extract_strided_slice %28 {offsets = [0, 1536], sizes = [32, 256], strides = [1, 1]} : vector<32x2048xbf16> to vector<32x256xbf16>
    %cst_153 = arith.constant dense<0.000000e+00> : vector<32x9xf32>
    %419 = tpu.matmul %418, %417, %cst_153 {dimension_numbers = #tpu.dot_dimension_numbers<[1], [0], [0], [1], [0, 0, 1, 1], [], []>} : vector<32x256xbf16>, vector<256x9xbf16>, vector<32x9xf32> -> vector<32x9xf32>
    %420 = vector.shape_cast %407 : vector<1x9xi1> to vector<1x9xi1>
    %421 = vector.broadcast %420 : vector<1x9xi1> to vector<32x9xi1>
    %422 = vector.shape_cast %113 : vector<32x1xf32> to vector<32x1xf32>
    %423 = vector.broadcast %422 : vector<32x1xf32> to vector<32x9xf32>
    %424 = arith.select %421, %419, %423 : vector<32x9xi1>, vector<32x9xf32>
    %425 = arith.truncf %424 : vector<32x9xf32> to vector<32x9xbf16>
    %c6_154 = arith.constant 6 : index
    %c0_155 = arith.constant 0 : index
    %c0_156 = arith.constant 0 : index
    %426 = vector.load %arg6[%c6_154, %c0_155, %c0_156] : memref<8x32x9xbf16, #tpu.memory_space<vmem>>, vector<1x32x9xbf16>
    %427 = vector.shape_cast %426 : vector<1x32x9xbf16> to vector<32x9xbf16>
    %428 = vector.shape_cast %425 : vector<32x9xbf16> to vector<1x32x9xbf16>
    tpu.vector_store %arg6[%c6_154, %c0_155, %c0_156], %428 {strides = array<i32>} : memref<8x32x9xbf16, #tpu.memory_space<vmem>>, vector<1x32x9xbf16>,
    %c8_i32_157 = arith.constant 8 : i32
    %429 = arith.muli %arg0, %c8_i32_157 : i32
    %c7_i32 = arith.constant 7 : i32
    %430 = arith.addi %429, %c7_i32 : i32
    %c2_i32_158 = arith.constant 2 : i32
    %431 = arith.muli %430, %c2_i32_158 : i32
    %c0_i32_159 = arith.constant 0 : i32
    %432 = arith.addi %431, %c0_i32_159 : i32
    %433 = arith.index_cast %432 : i32 to index
    %434 = memref.load %arg1[%433] : memref<64xi32, #tpu.memory_space<smem>>
    %c1_i32_160 = arith.constant 1 : i32
    %435 = arith.addi %431, %c1_i32_160 : i32
    %436 = arith.index_cast %435 : i32 to index
    %437 = memref.load %arg1[%436] : memref<64xi32, #tpu.memory_space<smem>>
    %438 = vector.broadcast %434 : i32 to vector<1x9xi32>
    %439 = arith.addi %438, %108 : vector<1x9xi32>
    %440 = vector.broadcast %437 : i32 to vector<1x9xi32>
    %441 = arith.addi %440, %110 : vector<1x9xi32>
    %c0_i32_161 = arith.constant 0 : i32
    %442 = vector.broadcast %c0_i32_161 : i32 to vector<1x9xi32>
    %443 = arith.cmpi sge, %439, %442 : vector<1x9xi32>
    %c16_i32_162 = arith.constant 16 : i32
    %444 = vector.broadcast %c16_i32_162 : i32 to vector<1x9xi32>
    %445 = arith.cmpi slt, %439, %444 : vector<1x9xi32>
    %446 = arith.andi %443, %445 : vector<1x9xi1>
    %c0_i32_163 = arith.constant 0 : i32
    %447 = vector.broadcast %c0_i32_163 : i32 to vector<1x9xi32>
    %448 = arith.cmpi sge, %441, %447 : vector<1x9xi32>
    %449 = arith.andi %446, %448 : vector<1x9xi1>
    %c16_i32_164 = arith.constant 16 : i32
    %450 = vector.broadcast %c16_i32_164 : i32 to vector<1x9xi32>
    %451 = arith.cmpi slt, %441, %450 : vector<1x9xi32>
    %452 = arith.andi %449, %451 : vector<1x9xi1>
    %c16_i32_165 = arith.constant 16 : i32
    %453 = vector.broadcast %c16_i32_165 : i32 to vector<1x9xi32>
    %454 = arith.muli %439, %453 : vector<1x9xi32>
    %455 = arith.addi %454, %441 : vector<1x9xi32>
    %c256_i32_166 = arith.constant 256 : i32
    %456 = vector.broadcast %c256_i32_166 : i32 to vector<1x9xi32>
    %457 = arith.select %452, %455, %456 : vector<1x9xi1>, vector<1x9xi32>
    %458 = vector.broadcast %457 : vector<1x9xi32> to vector<256x9xi32>
    %459 = arith.cmpi eq, %458, %111 : vector<256x9xi32>
    %460 = arith.extui %459 : vector<256x9xi1> to vector<256x9xi32>
    %461 = arith.sitofp %460 : vector<256x9xi32> to vector<256x9xf32>
    %462 = arith.truncf %461 : vector<256x9xf32> to vector<256x9xbf16>
    %463 = vector.extract_strided_slice %28 {offsets = [0, 1792], sizes = [32, 256], strides = [1, 1]} : vector<32x2048xbf16> to vector<32x256xbf16>
    %cst_167 = arith.constant dense<0.000000e+00> : vector<32x9xf32>
    %464 = tpu.matmul %463, %462, %cst_167 {dimension_numbers = #tpu.dot_dimension_numbers<[1], [0], [0], [1], [0, 0, 1, 1], [], []>} : vector<32x256xbf16>, vector<256x9xbf16>, vector<32x9xf32> -> vector<32x9xf32>
    %465 = vector.shape_cast %452 : vector<1x9xi1> to vector<1x9xi1>
    %466 = vector.broadcast %465 : vector<1x9xi1> to vector<32x9xi1>
    %467 = vector.shape_cast %113 : vector<32x1xf32> to vector<32x1xf32>
    %468 = vector.broadcast %467 : vector<32x1xf32> to vector<32x9xf32>
    %469 = arith.select %466, %464, %468 : vector<32x9xi1>, vector<32x9xf32>
    %470 = arith.truncf %469 : vector<32x9xf32> to vector<32x9xbf16>
    %c7_168 = arith.constant 7 : index
    %c0_169 = arith.constant 0 : index
    %c0_170 = arith.constant 0 : index
    %471 = vector.load %arg6[%c7_168, %c0_169, %c0_170] : memref<8x32x9xbf16, #tpu.memory_space<vmem>>, vector<1x32x9xbf16>
    %472 = vector.shape_cast %471 : vector<1x32x9xbf16> to vector<32x9xbf16>
    %473 = vector.shape_cast %470 : vector<32x9xbf16> to vector<1x32x9xbf16>
    tpu.vector_store %arg6[%c7_168, %c0_169, %c0_170], %473 {strides = array<i32>} : memref<8x32x9xbf16, #tpu.memory_space<vmem>>, vector<1x32x9xbf16>,
    return
  }
  func.func @transform_0(%arg0: i32, %arg1: memref<64xi32, #tpu.memory_space<smem>>) -> (i32, i32, i32) {
    %c0_i32 = arith.constant 0 : i32
    %c0_i32_0 = arith.constant 0 : i32
    %c0_i32_1 = arith.constant 0 : i32
    return %arg0, %c0_i32, %c0_i32_0 : i32, i32, i32
  }
  func.func @transform_1(%arg0: i32, %arg1: memref<64xi32, #tpu.memory_space<smem>>) -> (i32, i32, i32) {
    %c0_i32 = arith.constant 0 : i32
    %c0_i32_0 = arith.constant 0 : i32
    %c0_i32_1 = arith.constant 0 : i32
    return %arg0, %c0_i32, %c0_i32_0 : i32, i32, i32
  }
  func.func @transform_2(%arg0: i32, %arg1: memref<64xi32, #tpu.memory_space<smem>>) -> (i32, i32) {
    %c0_i32 = arith.constant 0 : i32
    %c0_i32_0 = arith.constant 0 : i32
    %c0_i32_1 = arith.constant 0 : i32
    return %c0_i32, %c0_i32_0 : i32, i32
  }
  func.func @transform_3(%arg0: i32, %arg1: memref<64xi32, #tpu.memory_space<smem>>) -> (i32, i32, i32) {
    %c0_i32 = arith.constant 0 : i32
    %c0_i32_0 = arith.constant 0 : i32
    %c0_i32_1 = arith.constant 0 : i32
    return %arg0, %c0_i32, %c0_i32_0 : i32, i32, i32
  }
  func.func @transform_4(%arg0: i32, %arg1: memref<64xi32, #tpu.memory_space<smem>>) -> (i32, i32, i32) {
    %c0_i32 = arith.constant 0 : i32
    %c0_i32_0 = arith.constant 0 : i32
    %c0_i32_1 = arith.constant 0 : i32
    return %arg0, %c0_i32, %c0_i32_0 : i32, i32, i32
  }
  func.func @transform_5(%arg0: i32, %arg1: memref<64xi32, #tpu.memory_space<smem>>) -> (i32, i32, i32) {
    %c0_i32 = arith.constant 0 : i32
    %c0_i32_0 = arith.constant 0 : i32
    %c0_i32_1 = arith.constant 0 : i32
    return %arg0, %c0_i32, %c0_i32_0 : i32, i32, i32
  }
}

</mosaic_0001>

<bundles_post_ra>
// kernel: tpu_custom_call.1
= control target key start
LH: loop header
LB: loop body
LE: loop exit
PB: predicated region body
PF: predicated region fallthrough
CT: control target
= control target key end

     0   :  { %s5250_s21 = smov [#allocation3]   ;;  %s8765_s0 = inlined_call_operand.hbm [shape: s32[64], index: 0, kind: input, shape index: {}]   ;;  %s8766_s1 = inlined_call_operand.hbm [shape: s32[4,1,2048], index: 1, kind: input, shape index: {}]   ;;  %s8767_s2 = inlined_call_operand.hbm [shape: s32[4,1,64], index: 2, kind: input, shape index: {}]   ;;  %s8768_s3 = inlined_call_operand.hbm [shape: bf16[32,64], index: 3, kind: input, shape index: {}]   ;;  %s8769_s4 = inlined_call_operand.hbm [shape: bf16[32,32,256], index: 4, kind: output, shape index: {0}]   ;;  %s8770_s5 = inlined_call_operand.vmem [shape: bf16[32,32,9], index: 5, kind: output, shape index: {1}]   ;;  %s8771_s6 = inlined_call_operand.vmem [shape: bf16[32,32,8], index: 6, kind: output, shape index: {2}]  }
   0x1   :  { %13 = dma.hbm_to_smem %s8765_s0, 16, %s5250_s21, [#allocation2] }
   0x2   :  { %5216 = dma.done.wait [#allocation2], 16 }
   0x3   :  { %5217 = vsyncadd [#allocation2], 4294967280 }
   0x4   :  { %15 = sfence }
   0x5   :  { %16 = vsyncpa [#allocation5], 0 }
   0x6   :  { %18 = vsyncpa [#allocation5 + $0x1], 0 }
   0x7   :  { %19 = vsyncpa [#allocation8], 0 }
   0x8   :  { %21 = vsyncpa [#allocation8 + $0x1], 0 }
   0x9   :  { %22 = vsyncpa [#allocation6], 0 }
   0xa   :  { %24 = vsyncpa [#allocation6 + $0x1], 0  ;;  %s5307_s24 = smov 0   ;;  %s5309_s25 = smov 0  }
   0xb   :  { %s5311_s26 = smov 0   ;;  %s5313_s27 = smov 0  }
   0xc LB: > { %s5328_s0 = sadd.s32 4294967295, %s5248_s27   ;;  %s3656_s28 = sadd.s32 4294967294, %s5248_s27   ;;  %s5248_s27 = sphi %s5313_s27, %s9093_s27   ;;  %s5244_s26 = sphi %s5311_s26, %s9092_s26   ;;  %s5240_s25 = sphi %s5309_s25, %s9091_s25   ;;  %s5236_s24 = sphi %s5307_s24, %s9090_s24  }
   0xd   : > { %p50_p0 = scmp.ne.s32.totalorder %s5240_s25, %s5236_s24  ;;  %p8772_p1 = scmp.eq.s32.totalorder %s5328_s0, 0 }
   0xe   : > { %p127_p3 = scmp.eq.s32.totalorder %s3656_s28, 3  ;;  %p3657_p5 = scmp.ge.s32.totalorder %s5248_s27, 1 }
   0xf   : > { %p5337_p4 = por %p8772_p1, %p50_p0  ;;  %p186_p7 = scmp.lt.s32.totalorder %s5248_s27, 5 }
  0x10   : > { %p5342_p6 = por %p127_p3, %p50_p0  ;;  %s5251_s8 = smov [#allocation9]  }
  0x11   : > { %s8790_s29 = scalar_select %p5337_p4, 1, 0 }
  0x12   : > { %s8791_s30 = scalar_select %p5342_p6, 1, 0 }
  0x13   : > { %p5347_p8 = pnand %p3657_p5, %p186_p7  ;;  %s198_s9 = sshll.u32 %s5251_s8, 4  ;;  %s199_s9 = int_to_ptr.vmem [resolvable:$true] %s198_s9 }
  0x14   : > { %s5360_s11 = sadd.s32 1, %s5248_s27   ;;  %s37_s12 = sadd.s32 1, %s5244_s26 }
  0x15   : > { %s8792_s7 = scalar_select %p5347_p8, 1, 0 }
  0x16   : > { %p5003_p9 = pneg %p5347_p8  ;;  %s34_s13 = ssub.s32 %s5248_s27, %s5360_s11 }
  0x17   : > { %s5103_s14 = scalar_lea.vmem %s199_s9, 256  ;;  %p5111_p3 = scmp.lt.s32.totalorder %s199_s9, %s199_s9 }
  0x18   : > { %p5355_p10 = pnand %p5003_p9, %p8772_p1  ;;  %p5104_p12 = scmp.ne.s32.totalorder %s199_s9, %s5103_s14 }
  0x19   : > { %p5112_p5 = scmp.lt.s32.totalorder %s5103_s14, %s5103_s14 }
  0x1a   : > { %p5094_p11 = pneg %p5355_p10 }
  0x1b   : > { %p5113_p7 = por %p5112_p5, %p5111_p3 }
  0x1c   : > { %p5106_p13 = pnand %p5104_p12, %p5094_p11 }
  0x1e   : > { %p5107_p0 = pneg %p5106_p13 }
  0x20   : > { %p5114_p2 = pnand %p5113_p7, %p5107_p0 }
  0x22   : > { %5117 = shalt.err (!%p5114_p2)
}
  0x23   : > { %s5252_s15 = smov 64   ;;  %s5253_s16 = smov 4  }
  0x24   : > { %5006 = dma.hbm_to_vmem [thread:$0]  (!%p5355_p10), %s8768_s3, 256, %s199_s9, [#allocation8], %s5252_s15, %s5252_s15, %s5253_s16  }
  0x25   : > { %p35_p9 = scmp.eq.s32.totalorder %s34_s13, 0  ;;  %p44_p11 = scmp.ne.s32.totalorder %s5244_s26, %s5240_s25 }
  0x26   : > { %p45_p2 = scmp.eq.s32.totalorder %s5248_s27, 0  ;;  %p5019_p12 = scmp.lt.s32.totalorder %s5248_s27, 4 }
  0x27   : > { %s5377_s19 = scalar_select %p35_p9, %s5244_s26, %s37_s12  }
  0x28   : > { %p46_p13 = por %p45_p2, %p44_p11  ;;  %p8794_p0 = scmp.eq.s32.totalorder %s5328_s0, 3 }
  0x29   : > { %s5386_s21 = sand.u32 1, %s5244_s26   ;;  %s4648_s22 = sshll.u32 %s5248_s27, 8 }
  0x2a   : > { %p5381_p3 = por %p8794_p0, %p44_p11  ;;  %s3660_s23 = sshll.u32 %s5386_s21, 4 }
  0x2b   : > { %s5393_s9 = scalar_lea.hbm %s8766_s1, %s4648_s22  ;;  %s216_s10 = scalar_lea.vmem [#allocation4], %s3660_s23 }
  0x2c   : > { %s8795_s20 = scalar_select %p5381_p3, 1, 0 }
  0x2d   : > { %s224_s12 = sshll.u32 %s216_s10, 4  ;;  %p5395_p10 = pnand %p5019_p12, %p46_p13  ;;  %s225_s12 = int_to_ptr.vmem [resolvable:$true] %s224_s12 }
  0x2e   : > { %s213_s15 = scalar_lea.sflag [#allocation5], %s5386_s21  ;;  %s5118_s16 = scalar_lea.hbm %s5393_s9, 256 }
  0x2f   : > { %p5119_p5 = scmp.ne.s32.totalorder %s5393_s9, %s5118_s16  ;;  %p5120_p7 = pneg %p5395_p10 }
  0x30   : > { %s5123_s22 = scalar_lea.hbm %s8766_s1, 1024  ;;  %p5124_p2 = scmp.lt.s32.totalorder %s5393_s9, %s8766_s1 }
  0x31   : > { %p5121_p9 = pnand %p5120_p7, %p5119_p5  ;;  %p5125_p12 = scmp.lt.s32.totalorder %s5123_s22, %s5118_s16 }
  0x33   : > { %p5122_p11 = pneg %p5121_p9  ;;  %p5126_p13 = por %p5125_p12, %p5124_p2 }
  0x35   : > { %p5127_p0 = pnand %p5126_p13, %p5122_p11 }
  0x37   : > { %5130 = shalt.err (!%p5127_p0)
}
  0x38   : > { %s5131_s8 = scalar_lea.vmem %s225_s12, 256  ;;  %s5254_s10 = smov [#allocation4]  }
  0x39   : > { %p5132_p1 = scmp.ne.s32.totalorder %s225_s12, %s5131_s8  ;;  %s5136_s14 = sshll.u32 %s5254_s10, 4  ;;  %s5137_s14 = int_to_ptr.vmem [resolvable:$false] %s5136_s14 }
  0x3a   : > { %s5138_s17 = scalar_lea.vmem %s5137_s14, 512  ;;  %p5139_p9 = scmp.lt.s32.totalorder %s225_s12, %s5137_s14 }
  0x3b   : > { %p5134_p6 = pnand %p5132_p1, %p5120_p7  ;;  %p5140_p3 = scmp.lt.s32.totalorder %s5138_s17, %s5131_s8 }
  0x3d   : > { %p5135_p5 = pneg %p5134_p6  ;;  %p5141_p4 = por %p5140_p3, %p5139_p9 }
  0x3f   : > { %p5142_p8 = pnand %p5141_p4, %p5135_p5 }
  0x41   : > { %5145 = shalt.err (!%p5142_p8)
}
  0x42   : > { %5010 = dma.hbm_to_vmem [thread:$0]  (!%p5395_p10), %s5393_s9, 256, %s225_s12, %s213_s15  }
  0x43   : > { %s3663_s16 = sshll.u32 %s5248_s27, 4  ;;  %s234_s14 = scalar_lea.vmem [#allocation7], %s5386_s21 }
  0x44   : > { %s5425_s23 = scalar_lea.hbm %s8767_s2, %s3663_s16  ;;  %s241_s28 = sshll.u32 %s234_s14, 4  ;;  %s242_s28 = int_to_ptr.vmem [resolvable:$true] %s241_s28 }
  0x45   : > { %s8797_s8 = sand.u32 1, %s5248_s27   ;;  %s5146_s17 = scalar_lea.hbm %s5425_s23, 16 }
  0x46   : > { %s232_s10 = scalar_lea.sflag [#allocation8], %s8797_s8  ;;  %p5147_p1 = scmp.ne.s32.totalorder %s5425_s23, %s5146_s17 }
  0x47   : > { %s5151_s15 = scalar_lea.hbm %s8767_s2, 64  ;;  %p5152_p8 = scmp.lt.s32.totalorder %s5425_s23, %s8767_s2 }
  0x48   : > { %p5149_p4 = pnand %p5147_p1, %p5120_p7  ;;  %p5153_p3 = scmp.lt.s32.totalorder %s5151_s15, %s5146_s17 }
  0x4a   : > { %p5150_p6 = pneg %p5149_p4  ;;  %p5154_p11 = por %p5153_p3, %p5152_p8 }
  0x4c   : > { %p5155_p2 = pnand %p5154_p11, %p5150_p6 }
  0x4e   : > { %5158 = shalt.err (!%p5155_p2)
}
  0x4f   : > { %s5159_s21 = scalar_lea.vmem %s242_s28, 16  ;;  %s5255_s22 = smov [#allocation7]  }
  0x50   : > { %p5160_p12 = scmp.ne.s32.totalorder %s242_s28, %s5159_s21  ;;  %s5164_s14 = sshll.u32 %s5255_s22, 4  ;;  %s5165_s14 = int_to_ptr.vmem [resolvable:$false] %s5164_s14 }
  0x51   : > { %s5166_s8 = scalar_lea.vmem %s5165_s14, 32  ;;  %p5167_p5 = scmp.lt.s32.totalorder %s242_s28, %s5165_s14 }
  0x52   : > { %p5162_p13 = pnand %p5160_p12, %p5120_p7  ;;  %p5168_p9 = scmp.lt.s32.totalorder %s5166_s8, %s5159_s21 }
  0x54   : > { %p5163_p0 = pneg %p5162_p13  ;;  %p5169_p1 = por %p5168_p9, %p5167_p5 }
  0x56   : > { %p5170_p4 = pnand %p5169_p1, %p5163_p0 }
  0x58   : > { %5173 = shalt.err (!%p5170_p4)
}
  0x59   : > { %5013 = dma.hbm_to_vmem [thread:$0]  (!%p5395_p10), %s5425_s23, 16, %s242_s28, %s232_s10  }
  0x5a   : > { %p8798_p6 = scmp.ne.s32.totalorder %s8792_s7, 0 }
  0x5c   : > { %250 = sbr.rel (%p8798_p6) target bundleno = 646 (0x286), region = 32 }
  0x61   : > { %s5451_s17 = sand.u32 1, %s5240_s25   ;;  %p8799_p7 = scmp.ne.s32.totalorder %s8790_s29, 0 }
  0x62   : > { %s3665_s9 = sshll.u32 %s5451_s17, 4  ;;  %s253_s12 = scalar_lea.sflag [#allocation5], %s5451_s17 }
  0x63   : > { %s5455_s15 = scalar_lea.vmem [#allocation4], %s3665_s9 }
  0x64   : > { %5219 = dma.done.wait (%p8799_p7), %s253_s12, 256  }
  0x65   : > { %5221 = vsyncadd (%p8799_p7), %s253_s12, 4294967040  ;;  %s261_s7 = sand.u32 1, %s5328_s0   ;;  %s264_s23 = scalar_lea.vmem [#allocation7], %s5451_s17 }
  0x66   : > { %s262_s13 = scalar_lea.sflag [#allocation8], %s261_s7 }
  0x67   : > { %5223 = dma.done.wait (%p8799_p7), %s262_s13, 16  }
  0x68   : > { %5225 = vsyncadd (%p8799_p7), %s262_s13, 4294967280  ;;  %p8800_p10 = scmp.eq.s32.totalorder %s5328_s0, 0 }
  0x6a   : > { %5227 = dma.done.wait (%p8800_p10), [#allocation8], 256   ;;  %p8801_p8 = pmov %p8800_p10 }
  0x6b   : > { %v329_v0 = vlaneseq  ;;  %v5256_v1 = vmov 0   ;;  %v5486_v9 = vld [vmem:[%s5455_s15] sm:$0xff]  ;;  %s5497_s29 = sshll.u32 %s5328_s0, 4  ;;  %v5257_v19 = vmov 1.0|1.0   ;;  %v8802_v55 = vmov 0 }
  0x6c   : > { %5229 = vsyncadd (%p8801_p8), [#allocation8], 4294967040  ;;  %903 = vmatprep.mubr.bf16.mxu0 %v5256_v1  ;;  %956 = vmatprep.mubr.bf16.mxu1 %v5256_v1  ;;  %s4710_s28 = sadd.s32 8, %s5497_s29  ;;  %s4716_s10 = sadd.s32 10, %s5497_s29  ;;  %v5699_v33 = vld [vmem:[#allocation9] sm:$0xff]   ;;  %v5718_v42 = vld [vmem:[#allocation9 + $0x8] sm:$0xff]  }
  0x6d   : > { %v5473_v2 = vshrl.u32 %v329_v0, 7  ;;  %v5494_v12 = vand.u32 127, %v329_v0  ;;  %s5545_s16 = sld [smem:[#allocation3 + %s4710_s28]]  ;;  %s4722_s21 = sadd.s32 12, %s5497_s29  ;;  %v8804_v59 = vmov 0  ;;  %v8806_v63 = vmov 0 }
  0x6e   : > { %s5556_s18 = sld [smem:[#allocation3 + %s4716_s10]]  ;;  %s2642_s14 = sadd.s32 1, %s4710_s28 }
  0x6f   : > { %v344_v3 = vsub.s32 1, %v5473_v2  ;;  %v352_v4 = vsub.s32 3, %v5473_v2  ;;  %v340_v5 = vsub.s32 0, %v5473_v2  ;;  %v348_v6 = vsub.s32 2, %v5473_v2  ;;  %s5569_s22 = sld [smem:[#allocation3 + %s4722_s21]]  ;;  %s2849_s8 = sadd.s32 1, %s4716_s10 }
  0x70   : > { %v5480_v7 = vadd.s32 48, %v5473_v2  ;;  %v5483_v8 = vadd.s32 56, %v5473_v2  ;;  %v5489_v10 = vadd.s32 32, %v5473_v2  ;;  %v5492_v11 = vadd.s32 40, %v5473_v2  ;;  %s5642_s9 = sld [smem:[#allocation3 + %s2642_s14]]  ;;  %s3056_s7 = sadd.s32 1, %s4722_s21 }
  0x71   : > { %v5502_v13 = vrot.slane %v5486_v9, %v344_v3  ;;  %v5507_v14 = vrot.slane %v5486_v9, %v352_v4  ;;  %v5512_v15 = vrot.slane %v5486_v9, %v340_v5  ;;  %v5517_v16 = vrot.slane %v5486_v9, %v348_v6  ;;  %s5657_s12 = sld [smem:[#allocation3 + %s2849_s8]]  ;;  %s4728_s13 = sadd.s32 14, %s5497_s29 }
  0x72   : > { %v5521_v17 = vadd.s32 16, %v5473_v2  ;;  %v5524_v18 = vadd.s32 24, %v5473_v2  ;;  %vm1750_vm12 = vcmp.ge.s32.totalorder %v5494_v12, 3  ;;  %vm1752_vm13 = vcmp.ge.s32.totalorder %v5494_v12, 6  ;;  %s3057_s28 = sld [smem:[#allocation3 + %s3056_s7]]  ;;  %s4698_s7 = sadd.s32 4, %s5497_s29 }
  0x73   : > { %vm499_vm0 = vcmp.eq.s32.totalorder %v5502_v13, %v5480_v7  ;;  %vm515_vm1 = vcmp.eq.s32.totalorder %v5502_v13, %v5483_v8  ;;  %vm501_vm2 = vcmp.eq.s32.totalorder %v5507_v14, %v5480_v7  ;;  %vm517_vm3 = vcmp.eq.s32.totalorder %v5507_v14, %v5483_v8  ;;  %s3262_s10 = sld [smem:[#allocation3 + %s4728_s13]]  ;;  %p9053_p2 = scmp.ne.s32.totalorder %s8795_s20, 0 }
  0x74   : > { %vm3804_vm4 = vmpackc.low %vm515_vm1, %vm499_vm0  ;;  %vm498_vm5 = vcmp.eq.s32.totalorder %v5512_v15, %v5480_v7  ;;  %vm514_vm6 = vcmp.eq.s32.totalorder %v5512_v15, %v5483_v8  ;;  %vm500_vm7 = vcmp.eq.s32.totalorder %v5517_v16, %v5480_v7  ;;  %vm516_vm8 = vcmp.eq.s32.totalorder %v5517_v16, %v5483_v8  ;;  %s5764_s21 = sld [smem:[#allocation3 + %s5497_s29]] }
  0x75   : > { %3805 = vmatprep.subr.msk.bf16.mxu0 %vm3804_vm4, %v5257_v19  ;;  %vm3822_vm9 = vmpackc.low %vm517_vm3, %vm501_vm2  ;;  %vm467_vm10 = vcmp.eq.s32.totalorder %v5502_v13, %v5489_v10  ;;  %vm483_vm11 = vcmp.eq.s32.totalorder %v5502_v13, %v5492_v11  ;;  %vm469_vm15 = vcmp.eq.s32.totalorder %v5507_v14, %v5489_v10  ;;  %vm485_vm0 = vcmp.eq.s32.totalorder %v5507_v14, %v5492_v11 }
  0x76   : > { %3823 = vmatprep.subr.msk.bf16.mxu1 %vm3822_vm9, %v5257_v19  ;;  %vm3806_vm14 = vmpackc.low %vm514_vm6, %vm498_vm5  ;;  %vm466_vm2 = vcmp.eq.s32.totalorder %v5512_v15, %v5489_v10  ;;  %vm482_vm3 = vcmp.eq.s32.totalorder %v5512_v15, %v5492_v11  ;;  %vm468_vm5 = vcmp.eq.s32.totalorder %v5517_v16, %v5489_v10  ;;  %vm484_vm6 = vcmp.eq.s32.totalorder %v5517_v16, %v5492_v11 }
  0x77   : > { %3807 = vmatpush1.bf16.msk.msra.mxu0 %vm3806_vm14, %v5257_v19  ;;  %vm3824_vm1 = vmpackc.low %vm516_vm8, %vm500_vm7  ;;  %v1751_v20 = vsel %vm1750_vm12, 1, %v5256_v1  ;;  %v1753_v21 = vsel %vm1752_vm13, 1, %v5256_v1  ;;  %vm435_vm8 = vcmp.eq.s32.totalorder %v5502_v13, %v5521_v17  ;;  %vm451_vm9 = vcmp.eq.s32.totalorder %v5502_v13, %v5524_v18 }
  0x78   : > { %3825 = vmatpush1.bf16.msk.msra.mxu1 %vm3824_vm1, %v5257_v19  ;;  %vm3808_vm4 = vmpackc.low %vm483_vm11, %vm467_vm10  ;;  %v5605_v22 = vadd.s32 8, %v5473_v2  ;;  %vm437_vm11 = vcmp.eq.s32.totalorder %v5507_v14, %v5521_v17  ;;  %vm453_vm12 = vcmp.eq.s32.totalorder %v5507_v14, %v5524_v18  ;;  %vm434_vm14 = vcmp.eq.s32.totalorder %v5512_v15, %v5521_v17 }
  0x79   : > { %3809 = vmatprep.subr.msk.bf16.mxu0 %vm3808_vm4, %v5257_v19  ;;  %vm3826_vm7 = vmpackc.low %vm485_vm0, %vm469_vm15  ;;  %vm450_vm15 = vcmp.eq.s32.totalorder %v5512_v15, %v5524_v18  ;;  %v1754_v23 = vadd.s32 %v1753_v21, %v1751_v20  ;;  %vm436_vm1 = vcmp.eq.s32.totalorder %v5517_v16, %v5521_v17  ;;  %v2644_v24 = vstv %s5545_s16  ;;  %s3263_s16 = sadd.s32 1, %s4728_s13  ;;  %s2228_s13 = sadd.s32 1, %s4698_s7 }
  0x7a   : > { %3827 = vmatprep.subr.msk.bf16.mxu1 %vm3826_vm7, %v5257_v19  ;;  %vm3810_vm10 = vmpackc.low %vm482_vm3, %vm466_vm2  ;;  %vm452_vm2 = vcmp.eq.s32.totalorder %v5517_v16, %v5524_v18  ;;  %vm403_vm3 = vcmp.eq.s32.totalorder %v5502_v13, %v5473_v2  ;;  %v2851_v25 = vstv %s5556_s18  ;;  %v3058_v28 = vstv %s5569_s22  ;;  %s3264_s18 = sld [smem:[#allocation3 + %s3263_s16]]  ;;  %s1793_s22 = sadd.s32 1, %s5497_s29 }
  0x7b   : > { %3811 = vmatpush1.bf16.msk.msra.mxu0 %vm3810_vm10, %v5257_v19  ;;  %vm3828_vm13 = vmpackc.low %vm484_vm6, %vm468_vm5  ;;  %vm419_vm5 = vcmp.eq.s32.totalorder %v5502_v13, %v5605_v22  ;;  %vm405_vm6 = vcmp.eq.s32.totalorder %v5507_v14, %v5473_v2  ;;  %v1755_v26 = vmul.u32 3, %v1754_v23  ;;  %v5655_v27 = vadd.s32 4294967295, %v1754_v23  ;;  %s5838_s14 = sld [smem:[#allocation3 + %s1793_s22]] }
  0x7c   : > { %3829 = vmatpush1.bf16.msk.msra.mxu1 %vm3828_vm13, %v5257_v19  ;;  %vm3812_vm0 = vmpackc.low %vm451_vm9, %vm435_vm8  ;;  %vm421_vm8 = vcmp.eq.s32.totalorder %v5507_v14, %v5605_v22  ;;  %vm402_vm10 = vcmp.eq.s32.totalorder %v5512_v15, %v5473_v2  ;;  %v2646_v34 = vstv %s5642_s9  ;;  %v2853_v36 = vstv %s5657_s12  ;;  %v5836_v14 = vld [vmem:[%s5455_s15 + $0x8] sm:$0xff]  ;;  %s4692_s15 = sadd.s32 2, %s5497_s29 }
  0x7d   : > { %3813 = vmatprep.subr.msk.bf16.mxu0 %vm3812_vm0, %v5257_v19  ;;  %vm3830_vm4 = vmpackc.low %vm453_vm12, %vm437_vm11  ;;  %vm418_vm11 = vcmp.eq.s32.totalorder %v5512_v15, %v5605_v22  ;;  %vm404_vm12 = vcmp.eq.s32.totalorder %v5517_v16, %v5473_v2  ;;  %v2645_v29 = vadd.s32 %v5655_v27, %v2644_v24  ;;  %v2852_v30 = vadd.s32 %v5655_v27, %v2851_v25  ;;  %s5942_s8 = sld [smem:[#allocation3 + %s4692_s15]]  ;;  %s2021_s9 = sadd.s32 1, %s4692_s15 }
  0x7e   : > { %3831 = vmatprep.subr.msk.bf16.mxu1 %vm3830_vm4, %v5257_v19  ;;  %vm3814_vm7 = vmpackc.low %vm450_vm15, %vm434_vm14  ;;  %vm420_vm14 = vcmp.eq.s32.totalorder %v5517_v16, %v5605_v22  ;;  %v5688_v31 = vadd.s32 %v5655_v27, %v3058_v28  ;;  %v1756_v32 = vsub.s32 %v5494_v12, %v1755_v26  ;;  %v3060_v40 = vstv %s3057_s28  ;;  %s6065_s12 = sld [smem:[#allocation3 + %s2021_s9]] }
  0x7f   : > { %3815 = vmatpush1.bf16.msk.msra.mxu0 %vm3814_vm7, %v5257_v19  ;;  %vm3832_vm9 = vmpackc.low %vm452_vm2, %vm436_vm1  ;;  %vm8776_vm2 = vcmask 523264   ;;  %v2655_v38 = vmul.u32 16, %v2645_v29  ;;  %v3265_v41 = vstv %s3262_s10  ;;  %v2862_v44 = vmul.u32 16, %v2852_v30  ;;  %s6160_s28 = sld [smem:[#allocation3 + %s4698_s7]]  ;;  %s4704_s10 = sadd.s32 6, %s5497_s29 }
  0x80   : > { %3833 = vmatpush1.bf16.msk.msra.mxu1 %vm3832_vm9, %v5257_v19  ;;  %vm3816_vm13 = vmpackc.low %vm419_vm5, %vm403_vm3  ;;  %v5707_v35 = vadd.s32 4294967295, %v1756_v32  ;;  %vm2648_vm3 = vcmp.ge.s32.totalorder %v2645_v29, 0  ;;  %v3069_v46 = vmul.u32 16, %v5688_v31  ;;  %vm2649_vm4 = vcmp.lt.s32.totalorder %v2645_v29, 16  ;;  %s6197_s29 = sld [smem:[#allocation3 + %s2228_s13]]  ;;  %s5259_s13 = smov 120  }
  0x81   : > { %3817 = vmatprep.subr.msk.bf16.mxu0 %vm3816_vm13, %v5257_v19  ;;  %vm3834_vm15 = vmpackc.low %vm421_vm8, %vm405_vm6  ;;  %v3266_v48 = vadd.s32 %v5655_v27, %v3265_v41  ;;  %v3267_v49 = vstv %s3264_s18  ;;  %vm2855_vm8 = vcmp.ge.s32.totalorder %v2852_v30, 0  ;;  %vm2856_vm9 = vcmp.lt.s32.totalorder %v2852_v30, 16  ;;  %v6215_v41 = vld [vmem:[%s264_s23] ss:$0 sm:$0xff]  ;;  %s6228_s16 = sld [smem:[#allocation3 + %s4704_s10]]  ;;  %s2435_s23 = sadd.s32 1, %s4704_s10 }
  0x82   : > { %3835 = vmatprep.subr.msk.bf16.mxu1 %vm3834_vm15, %v5257_v19  ;;  %vm3818_vm0 = vmpackc.low %vm418_vm11, %vm402_vm10  ;;  %v2647_v37 = vadd.s32 %v5707_v35, %v2646_v34  ;;  %v2854_v39 = vadd.s32 %v5707_v35, %v2853_v36  ;;  %v3061_v45 = vadd.s32 %v5707_v35, %v3060_v40  ;;  %v3268_v51 = vadd.s32 %v5707_v35, %v3267_v49  ;;  %s6280_s18 = sld [smem:[#allocation3 + %s2435_s23]]  ;;  %s5261_s10 = smov 104  }
  0x83   : > { %3819 = vmatpush1.bf16.msk.msra.mxu0 %vm3818_vm0, %v5257_v19  ;;  %vm3836_vm1 = vmpackc.low %vm420_vm14, %vm404_vm12  ;;  %v3276_v52 = vmul.u32 16, %v3266_v48  ;;  %v360_v54 = vsub.s32 5, %v5473_v2  ;;  %v368_v56 = vsub.s32 7, %v5473_v2  ;;  %vm3062_vm15 = vcmp.ge.s32.totalorder %v5688_v31, 0  ;;  %s5264_s23 = smov 80  }
  0x84   : > { %3837 = vmatpush1.bf16.msk.msra.mxu1 %vm3836_vm1, %v5257_v19  ;;  %v5720_v43 = vadd.s32 %v2655_v38, %v2647_v37  ;;  %v5724_v47 = vadd.s32 %v2862_v44, %v2854_v39  ;;  %vm2651_vm5 = vcmp.ge.s32.totalorder %v2647_v37, 0  ;;  %v5727_v50 = vadd.s32 %v3069_v46, %v3061_v45  ;;  %vm2650_vm7 = vmand %vm2648_vm3, %vm2649_vm4 }
  0x85   : > { %vm2653_vm6 = vcmp.lt.s32.totalorder %v2647_v37, 16  ;;  %vm2652_vm10 = vmand %vm2650_vm7, %vm2651_vm5  ;;  %vm2858_vm11 = vcmp.ge.s32.totalorder %v2854_v39, 0  ;;  %v5737_v53 = vadd.s32 %v3276_v52, %v3268_v51  ;;  %vm2860_vm13 = vcmp.lt.s32.totalorder %v2854_v39, 16 }
  0x86   : > { %3820 = vmatmul.mubr.msk.bf16.vlgmr.msra.gmra.mxu0 %vm8776_vm2, %v5699_v33  ;;  %vm5740_vm12 = vmand %vm2652_vm10, %vm2653_vm6  ;;  %vm3063_vm0 = vcmp.lt.s32.totalorder %v5688_v31, 16  ;;  %v356_v57 = vsub.s32 4, %v5473_v2  ;;  %vm3065_vm3 = vcmp.ge.s32.totalorder %v3061_v45, 0  ;;  %v364_v58 = vsub.s32 6, %v5473_v2 }
  0x87   : > { %3838 = vmatmul.mubr.msk.bf16.vlgmr.msra.gmra.mxu1 %vm8776_vm2, %v5699_v33  ;;  %913 = vmatprep.mubr.bf16.mxu0 %v5256_v1  ;;  %v8803_v55 = vsel %vm5740_vm12, 4294967295, %v8802_v55  ;;  %vm2857_vm14 = vmand %vm2855_vm8, %vm2856_vm9  ;;  %vm3067_vm5 = vcmp.lt.s32.totalorder %v3061_v45, 16  ;;  %v5756_v60 = vrot.slane %v5486_v9, %v360_v54  ;;  %vm3269_vm7 = vcmp.ge.s32.totalorder %v3266_v48, 0 }
  0x88   : > { %966 = vmatprep.mubr.bf16.mxu1 %v5256_v1  ;;  %vm2859_vm1 = vmand %vm2857_vm14, %vm2858_vm11  ;;  %vm3270_vm8 = vcmp.lt.s32.totalorder %v3266_v48, 16  ;;  %v5761_v61 = vrot.slane %v5486_v9, %v368_v56  ;;  %vm3272_vm10 = vcmp.ge.s32.totalorder %v3268_v51, 0  ;;  %v5769_v62 = vrot.slane %v5486_v9, %v356_v57 }
  0x89   : > { %vm5749_vm4 = vmand %vm2859_vm1, %vm2860_vm13  ;;  %vm3274_vm13 = vcmp.lt.s32.totalorder %v3268_v51, 16  ;;  %v5778_v0 = vrot.slane %v5486_v9, %v364_v58  ;;  %v8808_v12 = vmov 0  ;;  %v1795_v9 = vstv %s5764_s21  ;;  %s3667_s21 = sshll.u32 %s5451_s17, 8 }
  0x8a   : > { %v8805_v59 = vsel %vm5749_vm4, 4294967295, %v8804_v59  ;;  %vm3064_vm6 = vmand %vm3062_vm15, %vm3063_vm0  ;;  %vm503_vm15 = vcmp.eq.s32.totalorder %v5756_v60, %v5480_v7  ;;  %vm519_vm0 = vcmp.eq.s32.totalorder %v5756_v60, %v5483_v8  ;;  %v5828_v13 = vadd.s32 %v5655_v27, %v1795_v9  ;;  %s6959_s22 = scalar_lea.vmem [#allocation10], %s3667_s21  ;;  %s4734_s21 = sshll.u32 %s5328_s0, 12 }
  0x8b   : > { %vm3066_vm9 = vmand %vm3064_vm6, %vm3065_vm3  ;;  %vm505_vm3 = vcmp.eq.s32.totalorder %v5761_v61, %v5480_v7  ;;  %v5858_v15 = vrot.slane %v5836_v14, %v344_v3  ;;  %v5869_v16 = vrot.slane %v5836_v14, %v352_v4  ;;  %v5883_v3 = vrot.slane %v5836_v14, %v340_v5 }
  0x8c   : > { %vm5771_vm11 = vmand %vm3066_vm9, %vm3067_vm5  ;;  %vm521_vm5 = vcmp.eq.s32.totalorder %v5761_v61, %v5483_v8  ;;  %v5899_v4 = vrot.slane %v5836_v14, %v348_v6  ;;  %v1797_v6 = vstv %s5838_s14  ;;  %v2023_v23 = vstv %s5942_s8  ;;  %s3668_s14 = sshll.u32 %s5328_s0, 3 }
  0x8d   : > { %v8807_v63 = vsel %vm5771_vm11, 4294967295, %v8806_v63  ;;  %vm3271_vm14 = vmand %vm3269_vm7, %vm3270_vm8  ;;  %vm502_vm7 = vcmp.eq.s32.totalorder %v5769_v62, %v5480_v7  ;;  %vm518_vm8 = vcmp.eq.s32.totalorder %v5769_v62, %v5483_v8  ;;  %v5950_v20 = vadd.s32 %v5707_v35, %v1797_v6  ;;  %p7916_p3 = scmp.lt.s32.totalorder %s3668_s14, 31 }
  0x8e   : > { %3821 = vmatmul.mubr.msk.bf16.gmra.mxu0 %vm8776_vm2, %v5718_v42  ;;  %vm3273_vm1 = vmand %vm3271_vm14, %vm3272_vm10  ;;  %vm504_vm10 = vcmp.eq.s32.totalorder %v5778_v0, %v5480_v7  ;;  %vm520_vm14 = vcmp.eq.s32.totalorder %v5778_v0, %v5483_v8  ;;  %vm445_vm4 = vcmp.eq.s32.totalorder %v5869_v16, %v5521_v17  ;;  %v6015_v24 = vrot.slane %v5836_v14, %v360_v54 }
  0x8f   : > { %3839 = vmatmul.mubr.msk.bf16.gmra.mxu1 %vm8776_vm2, %v5718_v42  ;;  %1009 = vmatprep.mubr.bf16.mxu0 %v5256_v1  ;;  %vm5788_vm6 = vmand %vm3273_vm1, %vm3274_vm13  ;;  %vm471_vm1 = vcmp.eq.s32.totalorder %v5756_v60, %v5489_v10  ;;  %vm487_vm2 = vcmp.eq.s32.totalorder %v5756_v60, %v5492_v11  ;;  %v6035_v25 = vrot.slane %v5836_v14, %v356_v57  ;;  %v8822_v31 = vmov 0  ;;  %s9095_s14 = smov (!%p7916_p3, %s3668_s14), 31 }
  0x90   : > { %1062 = vmatprep.mubr.bf16.mxu1 %v5256_v1  ;;  %v8809_v12 = vsel %vm5788_vm6, 4294967295, %v8808_v12  ;;  %vm3840_vm9 = vmpackc.low %vm519_vm0, %vm503_vm15  ;;  %vm473_vm15 = vcmp.eq.s32.totalorder %v5761_v61, %v5489_v10  ;;  %vm489_vm0 = vcmp.eq.s32.totalorder %v5761_v61, %v5492_v11  ;;  %v6051_v26 = vadd.s32 %v5655_v27, %v2023_v23  ;;  %s4649_s8 = sshll.u32 %s9095_s14, 4 }
  0x91   : > { %8810 = vst [vmem:[#allocation16_spill] sm:$0xff] %v8809_v12  ;;  %3841 = vmatprep.subr.msk.bf16.mxu0 %vm3840_vm9, %v5257_v19  ;;  %vm3858_vm13 = vmpackc.low %vm521_vm5, %vm505_vm3  ;;  %vm470_vm3 = vcmp.eq.s32.totalorder %v5769_v62, %v5489_v10  ;;  %vm486_vm5 = vcmp.eq.s32.totalorder %v5769_v62, %v5492_v11  ;;  %v6108_v28 = vrot.slane %v5836_v14, %v368_v56  ;;  %v2025_v36 = vstv %s6065_s12  ;;  %s8163_s7 = scalar_lea.vmem %s8771_s6, %s4649_s8  ;;  %s8485_s12 = scalar_lea.hbm %s8769_s4, %s4734_s21 }
  0x92   : > { %3859 = vmatprep.subr.msk.bf16.mxu1 %vm3858_vm13, %v5257_v19  ;;  %vm3842_vm6 = vmpackc.low %vm518_vm8, %vm502_vm7  ;;  %vm472_vm8 = vcmp.eq.s32.totalorder %v5778_v0, %v5489_v10  ;;  %vm488_vm13 = vcmp.eq.s32.totalorder %v5778_v0, %v5492_v11  ;;  %v6121_v30 = vrot.slane %v5836_v14, %v364_v58  ;;  %v1806_v39 = vmul.u32 16, %v5828_v13 }
  0x93   : > { %3843 = vmatpush1.bf16.msk.msra.mxu0 %vm3842_vm6, %v5257_v19  ;;  %vm3860_vm9 = vmpackc.low %vm520_vm14, %vm504_vm10  ;;  %vm439_vm10 = vcmp.eq.s32.totalorder %v5756_v60, %v5521_v17  ;;  %vm455_vm14 = vcmp.eq.s32.totalorder %v5756_v60, %v5524_v18  ;;  %v2026_v44 = vadd.s32 %v5707_v35, %v2025_v36  ;;  %v2034_v49 = vmul.u32 16, %v6051_v26 }
  0x94   : > { %3861 = vmatpush1.bf16.msk.msra.mxu1 %vm3860_vm9, %v5257_v19  ;;  %vm3844_vm7 = vmpackc.low %vm487_vm2, %vm471_vm1  ;;  %vm441_vm1 = vcmp.eq.s32.totalorder %v5761_v61, %v5521_v17  ;;  %vm457_vm9 = vcmp.eq.s32.totalorder %v5761_v61, %v5524_v18  ;;  %v1807_v46 = vadd.s32 %v1806_v39, %v5950_v20  ;;  %v2230_v51 = vstv %s6160_s28  ;;  %s5260_s28 = smov 112  }
  0x95   : > { %3845 = vmatprep.subr.msk.bf16.mxu0 %vm3844_vm7, %v5257_v19  ;;  %vm3862_vm6 = vmpackc.low %vm489_vm0, %vm473_vm15  ;;  %vm438_vm0 = vcmp.eq.s32.totalorder %v5769_v62, %v5521_v17  ;;  %vm454_vm7 = vcmp.eq.s32.totalorder %v5769_v62, %v5524_v18  ;;  %v6313_v54 = vadd.s32 240, %v5473_v2  ;;  %v6316_v56 = vadd.s32 248, %v5473_v2 }
  0x96   : > { %3863 = vmatprep.subr.msk.bf16.mxu1 %vm3862_vm6, %v5257_v19  ;;  %vm3846_vm2 = vmpackc.low %vm486_vm5, %vm470_vm3  ;;  %vm440_vm5 = vcmp.eq.s32.totalorder %v5778_v0, %v5521_v17  ;;  %vm456_vm6 = vcmp.eq.s32.totalorder %v5778_v0, %v5524_v18  ;;  %v2035_v9 = vadd.s32 %v2034_v49, %v2026_v44  ;;  %v6413_v5 = vadd.s32 232, %v5473_v2 }
  0x97   : > { %3847 = vmatpush1.bf16.msk.msra.mxu0 %vm3846_vm2, %v5257_v19  ;;  %vm3864_vm15 = vmpackc.low %vm488_vm13, %vm472_vm8  ;;  %vm407_vm8 = vcmp.eq.s32.totalorder %v5756_v60, %v5473_v2  ;;  %vm423_vm13 = vcmp.eq.s32.totalorder %v5756_v60, %v5605_v22  ;;  %vm409_vm2 = vcmp.eq.s32.totalorder %v5761_v61, %v5473_v2  ;;  %v2232_v60 = vstv %s6197_s29  ;;  %s5262_s29 = smov 96  }
  0x98   : > { %3865 = vmatpush1.bf16.msk.msra.mxu1 %vm3864_vm15, %v5257_v19  ;;  %vm3848_vm3 = vmpackc.low %vm455_vm14, %vm439_vm10  ;;  %vm1799_vm10 = vcmp.ge.s32.totalorder %v5828_v13, 0  ;;  %vm406_vm15 = vcmp.eq.s32.totalorder %v5769_v62, %v5473_v2  ;;  %v6458_v23 = vadd.s32 96, %v5473_v2  ;;  %v6545_v36 = vadd.s32 80, %v5473_v2 }
  0x99   : > { %3849 = vmatprep.subr.msk.bf16.mxu0 %vm3848_vm3, %v5257_v19  ;;  %vm3866_vm11 = vmpackc.low %vm457_vm9, %vm441_vm1  ;;  %vm425_vm1 = vcmp.eq.s32.totalorder %v5761_v61, %v5605_v22  ;;  %vm1800_vm9 = vcmp.lt.s32.totalorder %v5828_v13, 16  ;;  %vm408_vm3 = vcmp.eq.s32.totalorder %v5778_v0, %v5473_v2  ;;  %v6348_v61 = vadd.s32 %v5655_v27, %v2230_v51 }
  0x9a   : > { %3867 = vmatprep.subr.msk.bf16.mxu1 %vm3866_vm11, %v5257_v19  ;;  %vm3850_vm14 = vmpackc.low %vm454_vm7, %vm438_vm0  ;;  %vm422_vm0 = vcmp.eq.s32.totalorder %v5769_v62, %v5605_v22  ;;  %v2437_v62 = vstv %s6228_s16  ;;  %v6369_v13 = vadd.s32 %v5707_v35, %v2232_v60  ;;  %v6568_v38 = vadd.s32 192, %v5473_v2  ;;  %s5263_s16 = smov 88  }
  0x9b   : > { %3851 = vmatpush1.bf16.msk.msra.mxu0 %vm3850_vm14, %v5257_v19  ;;  %vm3868_vm11 = vmpackc.low %vm456_vm6, %vm440_vm5  ;;  %vm424_vm5 = vcmp.eq.s32.totalorder %v5778_v0, %v5605_v22  ;;  %v6418_v6 = vadd.s32 %v5655_v27, %v2437_v62  ;;  %v6571_v39 = vadd.s32 200, %v5473_v2  ;;  %v6636_v48 = vadd.s32 184, %v5473_v2 }
  0x9c   : > { %3869 = vmatpush1.bf16.msk.msra.mxu1 %vm3868_vm11, %v5257_v19  ;;  %vm3852_vm7 = vmpackc.low %vm423_vm13, %vm407_vm8  ;;  %vm507_vm8 = vcmp.eq.s32.totalorder %v5858_v15, %v5480_v7  ;;  %vm523_vm13 = vcmp.eq.s32.totalorder %v5858_v15, %v5483_v8  ;;  %vm525_vm11 = vcmp.eq.s32.totalorder %v5869_v16, %v5483_v8  ;;  %v6705_v58 = vadd.s32 160, %v5473_v2 }
  0x9d   : > { %3853 = vmatprep.subr.msk.bf16.mxu0 %vm3852_vm7, %v5257_v19  ;;  %vm3870_vm6 = vmpackc.low %vm425_vm1, %vm409_vm2  ;;  %vm509_vm1 = vcmp.eq.s32.totalorder %v5869_v16, %v5480_v7  ;;  %vm522_vm7 = vcmp.eq.s32.totalorder %v5883_v3, %v5483_v8  ;;  %v6708_v60 = vadd.s32 168, %v5473_v2  ;;  %v8890_v0 = vmov 0 }
  0x9e   : > { %vm5913_vm14 = vmand %vm1799_vm10, %vm1800_vm9  ;;  %3871 = vmatprep.subr.msk.bf16.mxu1 %vm3870_vm6, %v5257_v19  ;;  %vm506_vm9 = vcmp.eq.s32.totalorder %v5883_v3, %v5480_v7  ;;  %vm524_vm6 = vcmp.eq.s32.totalorder %v5899_v4, %v5483_v8  ;;  %v6769_v21 = vadd.s32 152, %v5473_v2  ;;  %v6824_v34 = vadd.s32 136, %v5473_v2 }
  0x9f   : > { %vm3854_vm2 = vmpackc.low %vm422_vm0, %vm406_vm15  ;;  %vm508_vm0 = vcmp.eq.s32.totalorder %v5899_v4, %v5480_v7 }
  0xa0   : > { %3855 = vmatpush1.bf16.msk.msra.mxu0 %vm3854_vm2, %v5257_v19  ;;  %vm3872_vm10 = vmpackc.low %vm424_vm5, %vm408_vm3  ;;  %vm475_vm5 = vcmp.eq.s32.totalorder %v5858_v15, %v5489_v10  ;;  %vm491_vm2 = vcmp.eq.s32.totalorder %v5858_v15, %v5492_v11 }
  0xa1   : > { %3873 = vmatpush1.bf16.msk.msra.mxu1 %vm3872_vm10, %v5257_v19  ;;  %vm3876_vm15 = vmpackc.low %vm523_vm13, %vm507_vm8  ;;  %vm8813_vm8 = vcmask 523264   ;;  %vm477_vm10 = vcmp.eq.s32.totalorder %v5869_v16, %v5489_v10 }
  0xa2   : > { %3877 = vmatprep.subr.msk.bf16.mxu0 %vm3876_vm15, %v5257_v19  ;;  %vm3894_vm3 = vmpackc.low %vm525_vm11, %vm509_vm1  ;;  %vm493_vm1 = vcmp.eq.s32.totalorder %v5869_v16, %v5492_v11 }
  0xa3   : > { %3856 = vmatmul.mubr.msk.bf16.vlgmr.msra.gmra.mxu0 %vm8813_vm8, %v5699_v33  ;;  %3895 = vmatprep.subr.msk.bf16.mxu1 %vm3894_vm3, %v5257_v19  ;;  %vm3878_vm13 = vmpackc.low %vm522_vm7, %vm506_vm9  ;;  %vm490_vm9 = vcmp.eq.s32.totalorder %v5883_v3, %v5492_v11  ;;  %vm476_vm3 = vcmp.eq.s32.totalorder %v5899_v4, %v5489_v10 }
  0xa4   : > { %vm8814_vm11 = vmmov %vm8813_vm8  ;;  %1019 = vmatprep.mubr.bf16.mxu0 %v5256_v1  ;;  %vm474_vm8 = vcmp.eq.s32.totalorder %v5883_v3, %v5489_v10  ;;  %3879 = vmatpush1.bf16.msk.msra.mxu0 %vm3878_vm13, %v5257_v19  ;;  %vm459_vm13 = vcmp.eq.s32.totalorder %v5858_v15, %v5524_v18 }
  0xa5   : > { %3874 = vmatmul.mubr.msk.bf16.vlgmr.msra.gmra.mxu1 %vm8814_vm11, %v5699_v33  ;;  %vm3896_vm15 = vmpackc.low %vm524_vm6, %vm508_vm0  ;;  %vm492_vm0 = vcmp.eq.s32.totalorder %v5899_v4, %v5492_v11  ;;  %vm443_vm11 = vcmp.eq.s32.totalorder %v5858_v15, %v5521_v17 }
  0xa6   : > { %1072 = vmatprep.mubr.bf16.mxu1 %v5256_v1  ;;  %vm3880_vm7 = vmpackc.low %vm491_vm2, %vm475_vm5  ;;  %3897 = vmatpush1.bf16.msk.msra.mxu1 %vm3896_vm15, %v5257_v19  ;;  %vm1802_vm5 = vcmp.ge.s32.totalorder %v5950_v20, 0  ;;  %vm461_vm15 = vcmp.eq.s32.totalorder %v5869_v16, %v5524_v18 }
  0xa7   : > { %3881 = vmatprep.subr.msk.bf16.mxu0 %vm3880_vm7, %v5257_v19  ;;  %vm3898_vm6 = vmpackc.low %vm493_vm1, %vm477_vm10  ;;  %vm442_vm1 = vcmp.eq.s32.totalorder %v5883_v3, %v5521_v17  ;;  %vm458_vm7 = vcmp.eq.s32.totalorder %v5883_v3, %v5524_v18 }
  0xa8   : > { %3899 = vmatprep.subr.msk.bf16.mxu1 %vm3898_vm6, %v5257_v19  ;;  %vm3882_vm2 = vmpackc.low %vm490_vm9, %vm474_vm8  ;;  %vm444_vm8 = vcmp.eq.s32.totalorder %v5899_v4, %v5521_v17  ;;  %vm460_vm9 = vcmp.eq.s32.totalorder %v5899_v4, %v5524_v18 }
  0xa9   : > { %vm3900_vm10 = vmpackc.low %vm492_vm0, %vm476_vm3  ;;  %3883 = vmatpush1.bf16.msk.msra.mxu0 %vm3882_vm2, %v5257_v19  ;;  %vm411_vm0 = vcmp.eq.s32.totalorder %v5858_v15, %v5473_v2 }
  0xaa   : > { %vm3884_vm12 = vmpackc.low %vm459_vm13, %vm443_vm11  ;;  %3901 = vmatpush1.bf16.msk.msra.mxu1 %vm3900_vm10, %v5257_v19  ;;  %vm427_vm11 = vcmp.eq.s32.totalorder %v5858_v15, %v5605_v22  ;;  %vm429_vm13 = vcmp.eq.s32.totalorder %v5869_v16, %v5605_v22  ;;  %vm426_vm10 = vcmp.eq.s32.totalorder %v5883_v3, %v5605_v22  ;;  %v8850_v15 = vmov 0 }
  0xab   : > { %vm6001_vm6 = vmand %vm5913_vm14, %vm1802_vm5  ;;  %3885 = vmatprep.subr.msk.bf16.mxu0 %vm3884_vm12, %v5257_v19  ;;  %vm8817_vm14 = vcmask 523264  }
  0xac   : > { %vm3902_vm3 = vmpackc.low %vm461_vm15, %vm445_vm4  ;;  %3857 = vmatmul.mubr.msk.bf16.gmra.mxu0 %vm8817_vm14, %v5718_v42  ;;  %vm413_vm4 = vcmp.eq.s32.totalorder %v5869_v16, %v5473_v2  ;;  %vm410_vm15 = vcmp.eq.s32.totalorder %v5883_v3, %v5473_v2  ;;  %v6394_v16 = vadd.s32 112, %v5473_v2  ;;  %v6397_v3 = vadd.s32 120, %v5473_v2 }
  0xad   : > { %3903 = vmatprep.subr.msk.bf16.mxu1 %vm3902_vm3, %v5257_v19  ;;  %vm3886_vm12 = vmpackc.low %vm458_vm7, %vm442_vm1  ;;  %1115 = vmatprep.mubr.bf16.mxu0 %v5256_v1  ;;  %vm412_vm7 = vcmp.eq.s32.totalorder %v5899_v4, %v5473_v2  ;;  %vm511_vm3 = vcmp.eq.s32.totalorder %v6015_v24, %v5480_v7 }
  0xae   : > { %vm8818_vm5 = vmmov %vm8817_vm14  ;;  %3887 = vmatpush1.bf16.msk.msra.mxu0 %vm3886_vm12, %v5257_v19  ;;  %vm510_vm14 = vcmp.eq.s32.totalorder %v6035_v25, %v5480_v7  ;;  %vm526_vm12 = vcmp.eq.s32.totalorder %v6035_v25, %v5483_v8 }
  0xaf   : > { %3875 = vmatmul.mubr.msk.bf16.gmra.mxu1 %vm8818_vm5, %v5718_v42  ;;  %vm3904_vm2 = vmpackc.low %vm460_vm9, %vm444_vm8  ;;  %vm428_vm8 = vcmp.eq.s32.totalorder %v5899_v4, %v5605_v22  ;;  %vm495_vm5 = vcmp.eq.s32.totalorder %v6015_v24, %v5492_v11  ;;  %v6410_v4 = vadd.s32 224, %v5473_v2 }
  0xb0   : > { %vm3888_vm1 = vmpackc.low %vm427_vm11, %vm411_vm0  ;;  %1168 = vmatprep.mubr.bf16.mxu1 %v5256_v1  ;;  %3905 = vmatpush1.bf16.msk.msra.mxu1 %vm3904_vm2, %v5257_v19  ;;  %vm527_vm0 = vcmp.eq.s32.totalorder %v6015_v24, %v5483_v8  ;;  %vm2027_vm2 = vcmp.ge.s32.totalorder %v6051_v26, 0 }
  0xb1   : > { %3889 = vmatprep.subr.msk.bf16.mxu0 %vm3888_vm1, %v5257_v19  ;;  %vm3906_vm9 = vmpackc.low %vm429_vm13, %vm413_vm4  ;;  %vm479_vm13 = vcmp.eq.s32.totalorder %v6015_v24, %v5489_v10  ;;  %vm2028_vm1 = vcmp.lt.s32.totalorder %v6051_v26, 16  ;;  %v6480_v26 = vadd.s32 208, %v5473_v2 }
  0xb2   : > { %3907 = vmatprep.subr.msk.bf16.mxu1 %vm3906_vm9, %v5257_v19  ;;  %vm3890_vm11 = vmpackc.low %vm426_vm10, %vm410_vm15  ;;  %vm1804_vm10 = vcmp.lt.s32.totalorder %v5950_v20, 16  ;;  %vm494_vm9 = vcmp.eq.s32.totalorder %v6035_v25, %v5492_v11  ;;  %v2439_v20 = vstv %s6280_s18  ;;  %s5265_s18 = smov 72  }
  0xb3   : > { %vm3908_vm4 = vmpackc.low %vm428_vm8, %vm412_vm7  ;;  %3891 = vmatpush1.bf16.msk.msra.mxu0 %vm3890_vm11, %v5257_v19  ;;  %vm478_vm8 = vcmp.eq.s32.totalorder %v6035_v25, %v5489_v10  ;;  %vm463_vm11 = vcmp.eq.s32.totalorder %v6015_v24, %v5524_v18 }
  0xb4   : > { %vm3912_vm15 = vmpackc.low %vm527_vm0, %vm511_vm3  ;;  %3909 = vmatpush1.bf16.msk.msra.mxu1 %vm3908_vm4, %v5257_v19  ;;  %vm447_vm0 = vcmp.eq.s32.totalorder %v6015_v24, %v5521_v17  ;;  %vm462_vm4 = vcmp.eq.s32.totalorder %v6035_v25, %v5524_v18 }
  0xb5   : > { %3913 = vmatprep.subr.msk.bf16.mxu0 %vm3912_vm15, %v5257_v19  ;;  %vm3914_vm7 = vmpackc.low %vm526_vm12, %vm510_vm14  ;;  %vm8821_vm14 = vcmask 523264   ;;  %vm446_vm12 = vcmp.eq.s32.totalorder %v6035_v25, %v5521_v17 }
  0xb6   : > { %vm6110_vm3 = vmpackc.low %vm495_vm5, %vm479_vm13  ;;  %3892 = vmatmul.mubr.msk.bf16.vlgmr.msra.gmra.mxu0 %vm8821_vm14, %v5699_v33 }
  0xb7   : > { %vm6133_vm13 = vmand %vm6001_vm6, %vm1804_vm10  ;;  %3915 = vmatpush1.bf16.msk.msra.mxu0 %vm3914_vm7, %v5257_v19  ;;  %vm415_vm10 = vcmp.eq.s32.totalorder %v6015_v24, %v5473_v2  ;;  %1125 = vmatprep.mubr.bf16.mxu0 %v5256_v1  ;;  %vm513_vm7 = vcmp.eq.s32.totalorder %v6108_v28, %v5480_v7 }
  0xb8   : > { %v8823_v31 = vsel %vm6133_vm13, 4294967295, %v8822_v31  ;;  %vm6141_vm5 = vmand %vm2027_vm2, %vm2028_vm1  ;;  %vm431_vm2 = vcmp.eq.s32.totalorder %v6015_v24, %v5605_v22  ;;  %3917 = vmatprep.subr.msk.bf16.mxu0 %vm6110_vm3, %v5257_v19  ;;  %vm512_vm3 = vcmp.eq.s32.totalorder %v6121_v30, %v5480_v7  ;;  %v6320_v57 = vsel %vm6133_vm13, %v1807_v46, 256 }
  0xb9   : > { %vm8826_vm15 = vmmov %vm8821_vm14  ;;  %vm414_vm14 = vcmp.eq.s32.totalorder %v6035_v25, %v5473_v2  ;;  %v6461_v24 = vadd.s32 104, %v5473_v2  ;;  %v6633_v46 = vadd.s32 176, %v5473_v2 }
  0xba   : > { %3910 = vmatmul.mubr.msk.bf16.vlgmr.msra.gmra.mxu1 %vm8826_vm15, %v5699_v33  ;;  %vm6151_vm6 = vmpackc.low %vm494_vm9, %vm478_vm8  ;;  %vm529_vm8 = vcmp.eq.s32.totalorder %v6108_v28, %v5483_v8  ;;  %vm481_vm15 = vcmp.eq.s32.totalorder %v6108_v28, %v5489_v10 }
  0xbb   : > { %vm6172_vm1 = vmpackc.low %vm463_vm11, %vm447_vm0  ;;  %1178 = vmatprep.mubr.bf16.mxu1 %v5256_v1  ;;  %vm528_vm0 = vcmp.eq.s32.totalorder %v6121_v30, %v5483_v8  ;;  %3919 = vmatpush1.bf16.msk.msra.mxu0 %vm6151_vm6, %v5257_v19 }
  0xbc   : > { %vm6187_vm9 = vmpackc.low %vm462_vm4, %vm446_vm12  ;;  %vm430_vm12 = vcmp.eq.s32.totalorder %v6035_v25, %v5605_v22  ;;  %3921 = vmatprep.subr.msk.bf16.mxu0 %vm6172_vm1, %v5257_v19  ;;  %v2241_v25 = vmul.u32 16, %v6348_v61 }
  0xbd   : > { %vm6205_vm11 = vmpackc.low %vm431_vm2, %vm415_vm10  ;;  %vm497_vm10 = vcmp.eq.s32.totalorder %v6108_v28, %v5492_v11  ;;  %vm480_vm2 = vcmp.eq.s32.totalorder %v6121_v30, %v5489_v10 }
  0xbe   : > { %vm3930_vm4 = vmpackc.low %vm529_vm8, %vm513_vm7  ;;  %vm496_vm7 = vcmp.eq.s32.totalorder %v6121_v30, %v5492_v11  ;;  %vm1306_vm8 = vcmp.eq.s32.totalorder %v6215_v41, %v5480_v7  ;;  %v2242_v37 = vadd.s32 %v2241_v25, %v6369_v13 }
  0xbf   : > { %3931 = vmatprep.subr.msk.bf16.mxu1 %vm3930_vm4, %v5257_v19  ;;  %vm3932_vm6 = vmpackc.low %vm528_vm0, %vm512_vm3  ;;  %vm8837_vm0 = vcmask 523264   ;;  %vm465_vm4 = vcmp.eq.s32.totalorder %v6108_v28, %v5524_v18  ;;  %3923 = vmatpush1.bf16.msk.msra.mxu0 %vm6187_vm9, %v5257_v19  ;;  %vm8841_vm9 = vcmp.eq.s32.totalorder %v6215_v41, %v5483_v8 }
  0xc0   : > { %vm6247_vm1 = vmpackc.low %vm430_vm12, %vm414_vm14  ;;  %3933 = vmatpush1.bf16.msk.msra.mxu1 %vm3932_vm6, %v5257_v19  ;;  %3893 = vmatmul.mubr.msk.bf16.gmra.mxu0 %vm8837_vm0, %v5718_v42  ;;  %vm449_vm12 = vcmp.eq.s32.totalorder %v6108_v28, %v5521_v17  ;;  %vm2030_vm6 = vcmp.ge.s32.totalorder %v2026_v44, 0 }
  0xc1   : > { %vm3934_vm14 = vmpackc.low %vm497_vm10, %vm481_vm15  ;;  %3925 = vmatprep.subr.msk.bf16.mxu0 %vm6205_vm11, %v5257_v19  ;;  %1221 = vmatprep.mubr.bf16.mxu0 %v5256_v1  ;;  %vm448_vm10 = vcmp.eq.s32.totalorder %v6121_v30, %v5521_v17  ;;  %vm1304_vm11 = vcmp.eq.s32.totalorder %v6215_v41, %v5489_v10 }
  0xc2   : > { %vm8838_vm3 = vmmov %vm8837_vm0  ;;  %3935 = vmatprep.subr.msk.bf16.mxu1 %vm3934_vm14, %v5257_v19  ;;  %vm417_vm14 = vcmp.eq.s32.totalorder %v6108_v28, %v5473_v2 }
  0xc3   : > { %3911 = vmatmul.mubr.msk.bf16.gmra.mxu1 %vm8838_vm3, %v5718_v42  ;;  %vm6274_vm0 = vmpackc.low %vm496_vm7, %vm480_vm2  ;;  %vm464_vm2 = vcmp.eq.s32.totalorder %v6121_v30, %v5524_v18  ;;  %vm1305_vm7 = vcmp.eq.s32.totalorder %v6215_v41, %v5492_v11  ;;  %3927 = vmatpush1.bf16.msk.msra.mxu0 %vm6247_vm1, %v5257_v19 }
  0xc4   : > { %vm6292_vm15 = vmpackc.low %vm8841_vm9, %vm1306_vm8  ;;  %1274 = vmatprep.mubr.bf16.mxu1 %v5256_v1  ;;  %3937 = vmatpush1.bf16.msk.msra.mxu1 %vm6274_vm0, %v5257_v19  ;;  %vm432_vm0 = vcmp.eq.s32.totalorder %v6121_v30, %v5605_v22 }
  0xc5   : > { %vm3938_vm8 = vmpackc.low %vm465_vm4, %vm449_vm12  ;;  %vm433_vm12 = vcmp.eq.s32.totalorder %v6108_v28, %v5605_v22  ;;  %vm2032_vm4 = vcmp.lt.s32.totalorder %v2026_v44, 16  ;;  %4981 = vmatprep.subr.msk.bf16.mxu0 %vm6292_vm15, %v5257_v19  ;;  %v6483_v28 = vadd.s32 216, %v5473_v2  ;;  %v6619_v44 = vadd.s32 72, %v5473_v2 }
  0xc6   : > { %vm6325_vm3 = vmand %vm6141_vm5, %vm2030_vm6  ;;  %3939 = vmatprep.subr.msk.bf16.mxu1 %vm3938_vm8, %v5257_v19  ;;  %vm416_vm6 = vcmp.eq.s32.totalorder %v6121_v30, %v5473_v2  ;;  %vm1302_vm8 = vcmp.eq.s32.totalorder %v6215_v41, %v5521_v17  ;;  %v6501_v30 = vadd.s32 %v5707_v35, %v2439_v20  ;;  %v6766_v20 = vadd.s32 144, %v5473_v2 }
  0xc7   : > { %vm3940_vm5 = vmpackc.low %vm464_vm2, %vm448_vm10  ;;  %vm1839_vm10 = vcmp.eq.s32.totalorder %v6320_v57, %v6313_v54  ;;  %vm1840_vm2 = vcmp.eq.s32.totalorder %v6320_v57, %v6316_v56  ;;  %v6821_v35 = vadd.s32 128, %v5473_v2 }
  0xc8   : > { %vm6360_vm1 = vmpackc.low %vm1305_vm7, %vm1304_vm11  ;;  %vm8852_vm7 = vcmask 523264   ;;  %3941 = vmatpush1.bf16.msk.msra.mxu1 %vm3940_vm5, %v5257_v19  ;;  %vm2237_vm5 = vcmp.ge.s32.totalorder %v6369_v13, 0 }
  0xc9   : > { %vm6371_vm9 = vmpackc.low %vm433_vm12, %vm417_vm14  ;;  %3928 = vmatmul.mubr.msk.bf16.vlgmr.msra.gmra.mxu0 %vm8852_vm7, %v5699_v33  ;;  %vm1303_vm14 = vcmp.eq.s32.totalorder %v6215_v41, %v5524_v18  ;;  %vm2234_vm12 = vcmp.ge.s32.totalorder %v6348_v61, 0 }
  0xca   : > { %vm6382_vm11 = vmand %vm6325_vm3, %vm2032_vm4  ;;  %4982 = vmatpush3.bf16.msk.msra.mxu0 %vm6292_vm15, %v5257_v19  ;;  %1231 = vmatprep.mubr.bf16.mxu0 %v5256_v1  ;;  %vm2235_vm4 = vcmp.lt.s32.totalorder %v6348_v61, 16 }
  0xcb   : > { %v8851_v15 = vsel %vm6382_vm11, 4294967295, %v8850_v15  ;;  %vm3944_vm3 = vmpackc.low %vm432_vm0, %vm416_vm6  ;;  %4983 = vmatprep.subr.msk.bf16.mxu0 %vm6360_vm1, %v5257_v19  ;;  %3943 = vmatprep.subr.msk.bf16.mxu1 %vm6371_vm9, %v5257_v19  ;;  %v6435_v27 = vsel %vm6382_vm11, %v2035_v9, 256  ;;  %vm1300_vm0 = vcmp.eq.s32.totalorder %v6215_v41, %v5473_v2  ;;  %vm1301_vm9 = vcmp.eq.s32.totalorder %v6215_v41, %v5605_v22  ;;  %v4743_v9 = vld [vmem:[#allocation9 + $0x8] sm:$0xff]  }
  0xcc   : > { %vm4110_vm15 = vmpackc.low %vm1840_vm2, %vm1839_vm10  ;;  %3945 = vmatpush1.bf16.msk.msra.mxu1 %vm3944_vm3, %v5257_v19  ;;  %vm1823_vm10 = vcmp.eq.s32.totalorder %v6320_v57, %v6394_v16  ;;  %vm1824_vm2 = vcmp.eq.s32.totalorder %v6320_v57, %v6397_v3  ;;  %vm2068_vm3 = vcmp.eq.s32.totalorder %v6435_v27, %v6316_v56  ;;  %v6616_v41 = vadd.s32 64, %v5473_v2 }
  0xcd   : > { %vm6444_vm6 = vmpackc.low %vm1303_vm14, %vm1302_vm8  ;;  %4757 = vmatprep.subr.msk.bf16.mxu1 %vm4110_vm15, %v5257_v19  ;;  %vm1837_vm8 = vcmp.eq.s32.totalorder %v6320_v57, %v6410_v4  ;;  %vm1838_vm14 = vcmp.eq.s32.totalorder %v6320_v57, %v6413_v5  ;;  %vm2067_vm15 = vcmp.eq.s32.totalorder %v6435_v27, %v6313_v54  ;;  %v4741_v14 = vunpack.c.l.bf16 %v4743_v9 }
  0xce   : > { %vm6467_vm7 = vmand %vm2234_vm12, %vm2235_vm4  ;;  %4984 = vmatpush3.bf16.msk.msra.mxu0 %vm6360_vm1, %v5257_v19  ;;  %vm2442_vm12 = vcmp.lt.s32.totalorder %v6418_v6, 16  ;;  %vm8859_vm4 = vcmask 523264   ;;  %v4742_v25 = vunpack.c.h.bf16 %v4743_v9 }
  0xcf   : > { %4985 = vmatprep.subr.msk.bf16.mxu0 %vm6444_vm6, %v5257_v19  ;;  %vm6496_vm1 = vmpackc.low %vm1301_vm9, %vm1300_vm0  ;;  %3946 = vmatmul.mubr.msk.bf16.vlgmr.msra.gmra.mxu1 %vm8859_vm4, %v5699_v33 }
  0xd0   : > { %vm6515_vm0 = vmpackc.low %vm1824_vm2, %vm1823_vm10  ;;  %1284 = vmatprep.mubr.bf16.mxu1 %v5256_v1  ;;  %v6548_v1 = vadd.s32 88, %v5473_v2  ;;  %vm1836_vm2 = vcmp.eq.s32.totalorder %v6320_v57, %v6483_v28  ;;  %v5077_v29 = vpack.i.bf16 %v4742_v25, %v4741_v14 }
  0xd1   : > { %vm6523_vm9 = vmand %vm6467_vm7, %vm2237_vm5  ;;  %3929 = vmatmul.mubr.msk.bf16.gmra.mxu0 %vm8859_vm4, %v5718_v42  ;;  %vm1821_vm5 = vcmp.eq.s32.totalorder %v6320_v57, %v6458_v23  ;;  %vm8866_vm7 = vcmp.ge.s32.totalorder %v6418_v6, 0  ;;  %4758 = vmatpush3.bf16.msk.msra.mxu1 %vm6515_vm0, %v5257_v19  ;;  %vm8872_vm0 = vcmp.eq.s32.totalorder %v6320_v57, %v6461_v24 }
  0xd2   : > { %vm6536_vm10 = vmpackc.low %vm1838_vm14, %vm1837_vm8  ;;  %4986 = vmatpush3.bf16.msk.msra.mxu0 %vm6444_vm6, %v5257_v19 }
  0xd3   : > { %vm6554_vm8 = vmand %vm8866_vm7, %vm2442_vm12  ;;  %4987 = vmatprep.subr.msk.bf16.mxu0 %vm6496_vm1, %v5257_v19  ;;  %vm2051_vm12 = vcmp.eq.s32.totalorder %v6435_v27, %v6394_v16  ;;  %vm2052_vm7 = vcmp.eq.s32.totalorder %v6435_v27, %v6397_v3  ;;  %4759 = vmatprep.subr.msk.bf16.mxu1 %vm6536_vm10, %v5257_v19  ;;  %vm1819_vm10 = vcmp.eq.s32.totalorder %v6320_v57, %v6545_v36 }
  0xd4   : > { %vm8869_vm14 = vmmov %vm8859_vm4  ;;  %vm1835_vm4 = vcmp.eq.s32.totalorder %v6320_v57, %v6480_v26 }
  0xd5   : > { %4989 = vmatprep.mubr.msk.bf16.mxu0 %vm8869_vm14, %v5699_v33  ;;  %vm6582_vm6 = vmpackc.low %vm2068_vm3, %vm2067_vm15  ;;  %vm2065_vm3 = vcmp.eq.s32.totalorder %v6435_v27, %v6410_v4  ;;  %vm2066_vm15 = vcmp.eq.s32.totalorder %v6435_v27, %v6413_v5  ;;  %vm1820_vm14 = vcmp.eq.s32.totalorder %v6320_v57, %v6548_v1  ;;  %v8902_v33 = vmov 0 }
  0xd6   : > { %vm4096_vm11 = vmpackc.low %vm8872_vm0, %vm1821_vm5  ;;  %4988 = vmatpush3.bf16.msk.msra.mxu0 %vm6496_vm1, %v5257_v19  ;;  %vm8879_vm0 = vcmp.ge.s32.totalorder %v6501_v30, 0 }
  0xd7   : > { %vm6607_vm13 = vmpackc.low %vm1836_vm2, %vm1835_vm4  ;;  %vm1833_vm2 = vcmp.eq.s32.totalorder %v6320_v57, %v6568_v38  ;;  %vm1834_vm4 = vcmp.eq.s32.totalorder %v6320_v57, %v6571_v39  ;;  %4785 = vmatprep.subr.msk.bf16.mxu0 %vm6582_vm6, %v5257_v19  ;;  %4760 = vmatpush3.bf16.msk.msra.mxu1 %vm4096_vm11, %v5257_v19  ;;  %vm1817_vm11 = vcmp.eq.s32.totalorder %v6320_v57, %v6616_v41 }
  0xd8   : > { %vm6624_vm5 = vmpackc.low %vm2052_vm7, %vm2051_vm12  ;;  %vm2049_vm12 = vcmp.eq.s32.totalorder %v6435_v27, %v6458_v23  ;;  %vm2050_vm7 = vcmp.eq.s32.totalorder %v6435_v27, %v6461_v24  ;;  %4761 = vmatprep.subr.msk.bf16.mxu1 %vm6607_vm13, %v5257_v19 }
  0xd9   : > { %vm6644_vm1 = vmpackc.low %vm2066_vm15, %vm2065_vm3  ;;  %vm8882_vm3 = vcmask 523264   ;;  %vm2064_vm15 = vcmp.eq.s32.totalorder %v6435_v27, %v6483_v28 }
  0xda   : > { %vm6657_vm6 = vmand %vm6554_vm8, %vm8879_vm0  ;;  %3947 = vmatmul.mubr.msk.bf16.gmra.mxu1 %vm8882_vm3, %v5718_v42  ;;  %vm2239_vm0 = vcmp.lt.s32.totalorder %v6369_v13, 16  ;;  %4990 = vmatmul.mubr.msk.bf16.vlgmr.msra.gmra.mxu0 %vm8882_vm3, %v5718_v42  ;;  %vm2048_vm3 = vcmp.eq.s32.totalorder %v6435_v27, %v6548_v1  ;;  %v2448_v13 = vmul.u32 16, %v6418_v6 }
  0xdb   : > { %vm4098_vm8 = vmpackc.low %vm1820_vm14, %vm1819_vm10  ;;  %vm1818_vm14 = vcmp.eq.s32.totalorder %v6320_v57, %v6619_v44  ;;  %4786 = vmatpush3.bf16.msk.msra.mxu0 %vm6624_vm5, %v5257_v19  ;;  %vm8887_vm5 = vcmp.eq.s32.totalorder %v6435_v27, %v6480_v26 }
  0xdc   : > { %vm6685_vm13 = vmpackc.low %vm1834_vm4, %vm1833_vm2  ;;  %vm1831_vm2 = vcmp.eq.s32.totalorder %v6320_v57, %v6633_v46  ;;  %vm1832_vm4 = vcmp.eq.s32.totalorder %v6320_v57, %v6636_v48  ;;  %4787 = vmatprep.subr.msk.bf16.mxu0 %vm6644_vm1, %v5257_v19  ;;  %4762 = vmatpush3.bf16.msk.msra.mxu1 %vm4098_vm8, %v5257_v19  ;;  %vm2062_vm8 = vcmp.eq.s32.totalorder %v6435_v27, %v6571_v39 }
  0xdd   : > { %vm6696_vm10 = vmpackc.low %vm2050_vm7, %vm2049_vm12  ;;  %vm2047_vm7 = vcmp.eq.s32.totalorder %v6435_v27, %v6545_v36  ;;  %4763 = vmatprep.subr.msk.bf16.mxu1 %vm6685_vm13, %v5257_v19  ;;  %vm1815_vm13 = vcmp.eq.s32.totalorder %v6320_v57, %v5480_v7  ;;  %v2449_v51 = vadd.s32 %v2448_v13, %v6501_v30 }
  0xde   : > { %vm6716_vm12 = vmpackc.low %vm2064_vm15, %vm8887_vm5  ;;  %vm2061_vm15 = vcmp.eq.s32.totalorder %v6435_v27, %v6568_v38  ;;  %vm1816_vm5 = vcmp.eq.s32.totalorder %v6320_v57, %v5483_v8 }
  0xdf   : > { %vm6729_vm1 = vmand %vm6523_vm9, %vm2239_vm0  ;;  %4788 = vmatpush3.bf16.msk.msra.mxu0 %vm6696_vm10, %v5257_v19 }
  0xe0   : > { %v8891_v0 = vsel %vm6729_vm1, 4294967295, %v8890_v0  ;;  %vm4100_vm9 = vmpackc.low %vm1818_vm14, %vm1817_vm11  ;;  %vm1829_vm11 = vcmp.eq.s32.totalorder %v6320_v57, %v6705_v58  ;;  %vm1830_vm14 = vcmp.eq.s32.totalorder %v6320_v57, %v6708_v60  ;;  %4789 = vmatprep.subr.msk.bf16.mxu0 %vm6716_vm12, %v5257_v19 }
  0xe1   : > { %vm6746_vm0 = vmpackc.low %vm1832_vm4, %vm1831_vm2  ;;  %4764 = vmatpush3.bf16.msk.msra.mxu1 %vm4100_vm9, %v5257_v19  ;;  %vm2045_vm2 = vcmp.eq.s32.totalorder %v6435_v27, %v6616_v41  ;;  %vm2046_vm4 = vcmp.eq.s32.totalorder %v6435_v27, %v6619_v44  ;;  %vm1813_vm9 = vcmp.eq.s32.totalorder %v6320_v57, %v5489_v10 }
  0xe2   : > { %vm6757_vm1 = vmpackc.low %vm2048_vm3, %vm2047_vm7  ;;  %vm2446_vm7 = vcmp.lt.s32.totalorder %v6501_v30, 16  ;;  %4765 = vmatprep.subr.msk.bf16.mxu1 %vm6746_vm0, %v5257_v19  ;;  %vm2060_vm3 = vcmp.eq.s32.totalorder %v6435_v27, %v6636_v48  ;;  %vm1814_vm0 = vcmp.eq.s32.totalorder %v6320_v57, %v5492_v11  ;;  %v5258_v30 = vmov 63  }
  0xe3   : > { %vm6775_vm10 = vmpackc.low %vm2062_vm8, %vm2061_vm15  ;;  %4790 = vmatpush3.bf16.msk.msra.mxu0 %vm6757_vm1, %v5257_v19  ;;  %5070 = vset.pattern.permute.xlu1 %v5258_v30 }
  0xe4   : > { %vm4102_vm15 = vmpackc.low %vm1816_vm5, %vm1815_vm13  ;;  %vm1827_vm13 = vcmp.eq.s32.totalorder %v6320_v57, %v6766_v20  ;;  %vm1828_vm5 = vcmp.eq.s32.totalorder %v6320_v57, %v6769_v21  ;;  %4791 = vmatprep.subr.msk.bf16.mxu0 %vm6775_vm10, %v5257_v19  ;;  %vm2057_vm10 = vcmp.eq.s32.totalorder %v6435_v27, %v6705_v58  ;;  %5076 = vset.pattern.permute.xlu0 %v5258_v30 }
  0xe5   : > { %vm6801_vm8 = vmpackc.low %vm1830_vm14, %vm1829_vm11  ;;  %vm8904_vm11 = vcmp.eq.s32.totalorder %v6435_v27, %v6633_v46  ;;  %4766 = vmatpush3.bf16.msk.msra.mxu1 %vm4102_vm15, %v5257_v19  ;;  %vm1811_vm15 = vcmp.eq.s32.totalorder %v6320_v57, %v5521_v17  ;;  %5078 = vperm.xlu0 %5076, %v5077_v29  }
  0xe6   : > { %vm6812_vm12 = vmpackc.low %vm2046_vm4, %vm2045_vm2  ;;  %vm2043_vm2 = vcmp.eq.s32.totalorder %v6435_v27, %v5480_v7  ;;  %4767 = vmatprep.subr.msk.bf16.mxu1 %vm6801_vm8, %v5257_v19  ;;  %vm2058_vm4 = vcmp.eq.s32.totalorder %v6435_v27, %v6708_v60  ;;  %vm1812_vm8 = vcmp.eq.s32.totalorder %v6320_v57, %v5524_v18 }
  0xe7   : > { %vm6831_vm1 = vmand %vm6657_vm6, %vm2446_vm7  ;;  %vm2044_vm6 = vcmp.eq.s32.totalorder %v6435_v27, %v5483_v8  ;;  %4792 = vmatpush3.bf16.msk.msra.mxu0 %vm6812_vm12, %v5257_v19  ;;  %vm2041_vm12 = vcmp.eq.s32.totalorder %v6435_v27, %v5489_v10 }
  0xe8   : > { %v8903_v33 = vsel %vm6831_vm1, 4294967295, %v8902_v33  ;;  %vm6841_vm14 = vmpackc.low %vm2060_vm3, %vm8904_vm11 }
  0xe9   : > { %vm4104_vm7 = vmpackc.low %vm1814_vm0, %vm1813_vm9  ;;  %vm1825_vm9 = vcmp.eq.s32.totalorder %v6320_v57, %v6821_v35  ;;  %vm1826_vm0 = vcmp.eq.s32.totalorder %v6320_v57, %v6824_v34  ;;  %4793 = vmatprep.subr.msk.bf16.mxu0 %vm6841_vm14, %v5257_v19  ;;  %vm2056_vm14 = vcmp.eq.s32.totalorder %v6435_v27, %v6769_v21 }
  0xea   : > { %vm4122_vm3 = vmpackc.low %vm1828_vm5, %vm1827_vm13  ;;  %vm8909_vm13 = vnez %v8891_v0  ;;  %4768 = vmatpush3.bf16.msk.msra.mxu1 %vm4104_vm7, %v5257_v19  ;;  %vm1809_vm7 = vcmp.eq.s32.totalorder %v6320_v57, %v5473_v2 }
  0xeb   : > { %vm6874_vm11 = vmpackc.low %vm2044_vm6, %vm2043_vm2  ;;  %v6884_v49 = vsel %vm8909_vm13, %v2242_v37, 256  ;;  %vm2042_vm2 = vcmp.eq.s32.totalorder %v6435_v27, %v5492_v11  ;;  %4769 = vmatprep.subr.msk.bf16.mxu1 %vm4122_vm3, %v5257_v19  ;;  %vm2055_vm6 = vcmp.eq.s32.totalorder %v6435_v27, %v6766_v20  ;;  %vm1810_vm3 = vcmp.eq.s32.totalorder %v6320_v57, %v5605_v22 }
  0xec   : > { %vm6889_vm5 = vmpackc.low %vm2058_vm4, %vm2057_vm10  ;;  %4794 = vmatpush3.bf16.msk.msra.mxu0 %vm6874_vm11, %v5257_v19  ;;  %vm2274_vm1 = vcmp.eq.s32.totalorder %v6884_v49, %v6313_v54  ;;  %vm2040_vm11 = vcmp.eq.s32.totalorder %v6435_v27, %v5524_v18 }
  0xed   : > { %vm4106_vm10 = vmpackc.low %vm1812_vm8, %vm1811_vm15  ;;  %vm2275_vm15 = vcmp.eq.s32.totalorder %v6884_v49, %v6316_v56  ;;  %4795 = vmatprep.subr.msk.bf16.mxu0 %vm6889_vm5, %v5257_v19 }
  0xee   : > { %vm4124_vm4 = vmpackc.low %vm1826_vm0, %vm1825_vm9  ;;  %4770 = vmatpush3.bf16.msk.msra.mxu1 %vm4106_vm10, %v5257_v19  ;;  %vm2039_vm9 = vcmp.eq.s32.totalorder %v6435_v27, %v5521_v17 }
  0xef   : > { %vm4174_vm13 = vmpackc.low %vm2042_vm2, %vm2041_vm12  ;;  %4771 = vmatprep.subr.msk.bf16.mxu1 %vm4124_vm4, %v5257_v19  ;;  %vm2053_vm12 = vcmp.eq.s32.totalorder %v6435_v27, %v6821_v35  ;;  %vm2054_vm2 = vcmp.eq.s32.totalorder %v6435_v27, %v6824_v34  ;;  %vm2037_vm4 = vcmp.eq.s32.totalorder %v6435_v27, %v5473_v2 }
  0xf0   : > { %vm4192_vm8 = vmpackc.low %vm2056_vm14, %vm2055_vm6  ;;  %vm8912_vm6 = vnez %v8903_v33  ;;  %4796 = vmatpush3.bf16.msk.msra.mxu0 %vm4174_vm13, %v5257_v19 }
  0xf1   : > { %vm4108_vm0 = vmpackc.low %vm1810_vm3, %vm1809_vm7  ;;  %v6936_v57 = vsel %vm8912_vm6, %v2449_v51, 256  ;;  %4797 = vmatprep.subr.msk.bf16.mxu0 %vm4192_vm8, %v5257_v19  ;;  %vm2038_vm7 = vcmp.eq.s32.totalorder %v6435_v27, %v5605_v22  ;;  %v4736_v27 = vld [vmem:[#allocation9] sm:$0xff]   ;;  %vm2258_vm8 = vcmp.eq.s32.totalorder %v6884_v49, %v6394_v16  ;;  %vm2264_vm6 = vcmp.eq.s32.totalorder %v6884_v49, %v6705_v58 }
  0xf2   : > { %vm4253_vm5 = vmpackc.low %vm2275_vm15, %vm2274_vm1  ;;  %4772 = vmatpush3.bf16.msk.msra.mxu1 %vm4108_vm0, %v5257_v19  ;;  %vm2481_vm1 = vcmp.eq.s32.totalorder %v6936_v57, %v6313_v54  ;;  %vm2482_vm13 = vcmp.eq.s32.totalorder %v6936_v57, %v6316_v56  ;;  %v4737_v52 = vunpack.c.l.bf16 %v4736_v27  ;;  %v4738_v42 = vunpack.c.h.bf16 %v4736_v27 }
  0xf3   : > { %vm4176_vm14 = vmpackc.low %vm2040_vm11, %vm2039_vm9  ;;  %4813 = vmatprep.subr.msk.bf16.mxu1 %vm4253_vm5, %v5257_v19  ;;  %vm2259_vm9 = vcmp.eq.s32.totalorder %v6884_v49, %v6397_v3  ;;  %vm2465_vm11 = vcmp.eq.s32.totalorder %v6936_v57, %v6394_v16  ;;  %vm2466_vm0 = vcmp.eq.s32.totalorder %v6936_v57, %v6397_v3  ;;  %vm2479_vm5 = vcmp.eq.s32.totalorder %v6936_v57, %v6410_v4 }
  0xf4   : > { %vm4194_vm10 = vmpackc.low %vm2054_vm2, %vm2053_vm12  ;;  %4798 = vmatpush3.bf16.msk.msra.mxu0 %vm4176_vm14, %v5257_v19  ;;  %v5071_v62 = vpack.i.bf16 %v4738_v42, %v4737_v52  ;;  %vm2272_vm12 = vcmp.eq.s32.totalorder %v6884_v49, %v6410_v4  ;;  %vm2273_vm2 = vcmp.eq.s32.totalorder %v6884_v49, %v6413_v5 }
  0xf5   : > { %4799 = vmatprep.subr.msk.bf16.mxu0 %vm4194_vm10, %v5257_v19  ;;  %vm4178_vm3 = vmpackc.low %vm2038_vm7, %vm2037_vm4  ;;  %vm2480_vm10 = vcmp.eq.s32.totalorder %v6936_v57, %v6413_v5  ;;  %vm2256_vm4 = vcmp.eq.s32.totalorder %v6884_v49, %v6458_v23 }
  0xf6   : > { %vm4326_vm15 = vmpackc.low %vm2482_vm13, %vm2481_vm1  ;;  %5072 = vperm.xlu1 %5070, %v5071_v62   ;;  %vm2257_vm1 = vcmp.eq.s32.totalorder %v6884_v49, %v6461_v24 }
  0xf7   : > { %vm6976_vm14 = vmpackc.low %vm2259_vm9, %vm2258_vm8  ;;  %vm2270_vm9 = vcmp.eq.s32.totalorder %v6884_v49, %v6480_v26 }
  0xf8   : > { %4800 = vmatpush3.bf16.msk.msra.mxu0 %vm4178_vm3, %v5257_v19  ;;  %vm6990_vm7 = vmpackc.low %vm2466_vm0, %vm2465_vm11  ;;  %vm2463_vm3 = vcmp.eq.s32.totalorder %v6936_v57, %v6458_v23  ;;  %vm2271_vm11 = vcmp.eq.s32.totalorder %v6884_v49, %v6483_v28 }
  0xf9   : > { %4841 = vmatprep.subr.msk.bf16.mxu0 %vm4326_vm15, %v5257_v19  ;;  %vm7007_vm13 = vmpackc.low %vm2273_vm2, %vm2272_vm12  ;;  %vm2464_vm15 = vcmp.eq.s32.totalorder %v6936_v57, %v6461_v24  ;;  %vm2477_vm12 = vcmp.eq.s32.totalorder %v6936_v57, %v6480_v26  ;;  %vm2478_vm2 = vcmp.eq.s32.totalorder %v6936_v57, %v6483_v28 }
  0xfa   : > { %vm7022_vm8 = vmpackc.low %vm2480_vm10, %vm2479_vm5  ;;  %vm2255_vm10 = vcmp.eq.s32.totalorder %v6884_v49, %v6548_v1 }
  0xfb   : > { %vm7040_vm0 = vmpackc.low %vm2257_vm1, %vm2256_vm4  ;;  %vm2462_vm1 = vcmp.eq.s32.totalorder %v6936_v57, %v6548_v1 }
  0xfc   : > { %vm7061_vm5 = vmpackc.low %vm2464_vm15, %vm2463_vm3  ;;  %vm2269_vm15 = vcmp.eq.s32.totalorder %v6884_v49, %v6571_v39 }
  0xfd   : > { %vm7079_vm4 = vmpackc.low %vm2271_vm11, %vm2270_vm9  ;;  %vm2476_vm9 = vcmp.eq.s32.totalorder %v6936_v57, %v6571_v39 }
  0xfe   : > { %vm7097_vm3 = vmpackc.low %vm2478_vm2, %vm2477_vm12  ;;  %vm2252_vm12 = vcmp.eq.s32.totalorder %v6884_v49, %v6616_v41  ;;  %vm2253_vm2 = vcmp.eq.s32.totalorder %v6884_v49, %v6619_v44 }
 0x146   : > { %v905_v61 = vpop.f32.mrf.mxu0 }
 0x147   : > { %v958_v32 = vpop.f32.mrf.mxu1 }
 0x148   : > { %v907_v37 = vpop.f32.mrf.mxu0 }
 0x149   : > { %v4651_v40 = vpack.c.bf16 %v907_v37, %v905_v61  ;;  %v960_v13 = vpop.f32.mrf.mxu1 }
 0x14a   : > { %v4659_v45 = vpack.c.bf16 %v960_v13, %v958_v32  ;;  %v909_v6 = vpop.f32.mrf.mxu0 }
 0x14b   : > { %1431 = vst [vmem:[%s6959_s22] sm:$0xff] %v4651_v40  ;;  %v962_v51 = vpop.f32.mrf.mxu1  ;;  %v1377_v9 = vpack.c.bf16 %v909_v6, %v905_v61 }
 0x14c   : > { %3979 = vst [vmem:[%s6959_s22 + $0x20] sm:$0xff] %v4659_v45  ;;  %v911_v27 = vpop.f32.mrf.mxu0  ;;  %v1379_v40 = vpack.c.bf16 %v962_v51, %v958_v32 }
 0x14d   : > { %v1378_v30 = vpack.c.bf16 %v911_v27, %v907_v37  ;;  %v4652_v52 = vpack.c.bf16 %v911_v27, %v909_v6  ;;  %v964_v42 = vpop.f32.mrf.mxu1 }
 0x14e   : > { %v1380_v14 = vpack.c.bf16 %v964_v42, %v960_v13  ;;  %v4660_v25 = vpack.c.bf16 %v964_v42, %v962_v51  ;;  %v6994_v37 = vpop.f32.mrf.mxu0 }
 0x14f   : > { %1432 = vst [vmem:[%s6959_s22 + $0x8] sm:$0xff] %v4652_v52  ;;  %1953 = vmatprep.mubr.bf16.mxu1 %v1378_v30  ;;  %v6999_v61 = vpop.f32.mrf.mxu1 }
 0x150   : > { %3980 = vst [vmem:[%s6959_s22 + $0x28] sm:$0xff] %v4660_v25  ;;  %2181 = vmatprep.mubr.bf16.mxu0 %v1380_v14  ;;  %1954 = vmatmul.mubr.bf16.vlgmr.msra.gmra.mxu1 %v1377_v9  ;;  %v917_v32 = vpop.f32.mrf.mxu0 }
 0x151   : > { %2182 = vmatmul.mubr.bf16.vlgmr.msra.gmra.mxu0 %v1379_v40  ;;  %4814 = vmatpush3.bf16.msk.msra.mxu1 %vm6976_vm14, %v5257_v19  ;;  %v4653_v6 = vpack.c.bf16 %v917_v32, %v6994_v37  ;;  %v970_v51 = vpop.f32.mrf.mxu1  ;;  %vm2254_vm14 = vcmp.eq.s32.totalorder %v6884_v49, %v6545_v36 }
 0x152   : > { %4842 = vmatpush3.bf16.msk.msra.mxu0 %vm6990_vm7, %v5257_v19  ;;  %v4661_v30 = vpack.c.bf16 %v970_v51, %v6999_v61  ;;  %4815 = vmatprep.subr.msk.bf16.mxu1 %vm7007_vm13, %v5257_v19  ;;  %v919_v42 = vpop.f32.mrf.mxu0  ;;  %vm2461_vm7 = vcmp.eq.s32.totalorder %v6936_v57, %v6545_v36  ;;  %vm2268_vm13 = vcmp.eq.s32.totalorder %v6884_v49, %v6568_v38  ;;  %vm7117_vm11 = vmpackc.low %vm2255_vm10, %vm2254_vm14 }
 0x153   : > { %1433 = vst [vmem:[%s6959_s22 + $0x10] sm:$0xff] %v4653_v6  ;;  %4843 = vmatprep.subr.msk.bf16.mxu0 %vm7022_vm8, %v5257_v19  ;;  %v972_v62 = vpop.f32.mrf.mxu1  ;;  %v1393_v14 = vpack.c.bf16 %v919_v42, %v6994_v37  ;;  %vm2475_vm8 = vcmp.eq.s32.totalorder %v6936_v57, %v6568_v38  ;;  %vm2459_vm14 = vcmp.eq.s32.totalorder %v6936_v57, %v6616_v41 }
 0x154   : > { %3981 = vst [vmem:[%s6959_s22 + $0x30] sm:$0xff] %v4661_v30  ;;  %v921_v25 = vpop.f32.mrf.mxu0  ;;  %v1395_v37 = vpack.c.bf16 %v972_v62, %v6999_v61  ;;  %vm2460_vm10 = vcmp.eq.s32.totalorder %v6936_v57, %v6619_v44 }
 0x155   : > { %4816 = vmatpush3.bf16.msk.msra.mxu1 %vm7040_vm0, %v5257_v19  ;;  %v1394_v40 = vpack.c.bf16 %v921_v25, %v917_v32  ;;  %v4654_v13 = vpack.c.bf16 %v921_v25, %v919_v42  ;;  %v974_v45 = vpop.f32.mrf.mxu1  ;;  %vm7135_vm0 = vmpackc.low %vm2462_vm1, %vm2461_vm7  ;;  %vm2266_vm7 = vcmp.eq.s32.totalorder %v6884_v49, %v6633_v46  ;;  %vm2267_vm1 = vcmp.eq.s32.totalorder %v6884_v49, %v6636_v48 }
 0x156   : > { %4844 = vmatpush3.bf16.msk.msra.mxu0 %vm7061_vm5, %v5257_v19  ;;  %v1396_v61 = vpack.c.bf16 %v974_v45, %v970_v51  ;;  %v4662_v32 = vpack.c.bf16 %v974_v45, %v972_v62  ;;  %4817 = vmatprep.subr.msk.bf16.mxu1 %vm7079_vm4, %v5257_v19  ;;  %vm4259_vm5 = vmpackc.low %vm2269_vm15, %vm2268_vm13  ;;  %vm2474_vm15 = vcmp.eq.s32.totalorder %v6936_v57, %v6636_v48  ;;  %v8938_v42 = vmov 0 }
 0x157   : > { %1434 = vst [vmem:[%s6959_s22 + $0x18] sm:$0xff] %v4654_v13  ;;  %4845 = vmatprep.subr.msk.bf16.mxu0 %vm7097_vm3, %v5257_v19  ;;  %1961 = vmatprep.mubr.bf16.mxu1 %v1394_v40  ;;  %vm4332_vm4 = vmpackc.low %vm2476_vm9, %vm2475_vm8  ;;  %vm2473_vm3 = vcmp.eq.s32.totalorder %v6936_v57, %v6633_v46  ;;  %vm2250_vm9 = vcmp.eq.s32.totalorder %v6884_v49, %v5480_v7 }
 0x158   : > { %3982 = vst [vmem:[%s6959_s22 + $0x38] sm:$0xff] %v4662_v32  ;;  %2189 = vmatprep.mubr.bf16.mxu0 %v1396_v61  ;;  %1962 = vmatmul.mubr.bf16.gmra.mxu1 %v1393_v14  ;;  %vm4243_vm13 = vmpackc.low %vm2253_vm2, %vm2252_vm12  ;;  %vm2457_vm2 = vcmp.eq.s32.totalorder %v6936_v57, %v5480_v7 }
 0x159   : > { %4818 = vmatpush3.bf16.msk.msra.mxu1 %vm7117_vm11, %v5257_v19  ;;  %2190 = vmatmul.mubr.bf16.gmra.mxu0 %v1395_v37  ;;  %vm4316_vm8 = vmpackc.low %vm2460_vm10, %vm2459_vm14  ;;  %vm2251_vm11 = vcmp.eq.s32.totalorder %v6884_v49, %v5483_v8  ;;  %vm2265_vm14 = vcmp.eq.s32.totalorder %v6884_v49, %v6708_v60 }
 0x15a   : > { %4846 = vmatpush3.bf16.msk.msra.mxu0 %vm7135_vm0, %v5257_v19  ;;  %4819 = vmatprep.subr.msk.bf16.mxu1 %vm4259_vm5, %v5257_v19  ;;  %vm4261_vm12 = vmpackc.low %vm2267_vm1, %vm2266_vm7  ;;  %vm2458_vm0 = vcmp.eq.s32.totalorder %v6936_v57, %v5483_v8  ;;  %vm2472_vm7 = vcmp.eq.s32.totalorder %v6936_v57, %v6708_v60 }
 0x15b   : > { %4847 = vmatprep.subr.msk.bf16.mxu0 %vm4332_vm4, %v5257_v19  ;;  %vm4334_vm5 = vmpackc.low %vm2474_vm15, %vm2473_vm3  ;;  %vm2471_vm4 = vcmp.eq.s32.totalorder %v6936_v57, %v6705_v58  ;;  %vm2248_vm3 = vcmp.eq.s32.totalorder %v6884_v49, %v5489_v10  ;;  %vm2249_vm15 = vcmp.eq.s32.totalorder %v6884_v49, %v5492_v11 }
 0x15c   : > { %vm4245_vm10 = vmpackc.low %vm2251_vm11, %vm2250_vm9  ;;  %vm2455_vm9 = vcmp.eq.s32.totalorder %v6936_v57, %v5489_v10  ;;  %vm2456_vm11 = vcmp.eq.s32.totalorder %v6936_v57, %v5492_v11 }
 0x15d   : > { %4820 = vmatpush3.bf16.msk.msra.mxu1 %vm4243_vm13, %v5257_v19  ;;  %vm4318_vm1 = vmpackc.low %vm2458_vm0, %vm2457_vm2  ;;  %vm2263_vm2 = vcmp.eq.s32.totalorder %v6884_v49, %v6769_v21 }
 0x15e   : > { %4848 = vmatpush3.bf16.msk.msra.mxu0 %vm4316_vm8, %v5257_v19  ;;  %4821 = vmatprep.subr.msk.bf16.mxu1 %vm4261_vm12, %v5257_v19  ;;  %vm4263_vm13 = vmpackc.low %vm2265_vm14, %vm2264_vm6  ;;  %vm2262_vm12 = vcmp.eq.s32.totalorder %v6884_v49, %v6766_v20  ;;  %vm2469_vm6 = vcmp.eq.s32.totalorder %v6936_v57, %v6766_v20 }
 0x15f   : > { %4849 = vmatprep.subr.msk.bf16.mxu0 %vm4334_vm5, %v5257_v19  ;;  %vm4336_vm8 = vmpackc.low %vm2472_vm7, %vm2471_vm4  ;;  %vm2470_vm5 = vcmp.eq.s32.totalorder %v6936_v57, %v6769_v21  ;;  %vm2247_vm4 = vcmp.eq.s32.totalorder %v6884_v49, %v5524_v18 }
 0x160   : > { %vm7220_vm0 = vmpackc.low %vm2249_vm15, %vm2248_vm3  ;;  %vm2453_vm3 = vcmp.eq.s32.totalorder %v6936_v57, %v5521_v17 }
 0x161   : > { %4822 = vmatpush3.bf16.msk.msra.mxu1 %vm4245_vm10, %v5257_v19  ;;  %vm7230_vm14 = vmpackc.low %vm2456_vm11, %vm2455_vm9  ;;  %vm2246_vm10 = vcmp.eq.s32.totalorder %v6884_v49, %v5521_v17  ;;  %vm2261_vm9 = vcmp.eq.s32.totalorder %v6884_v49, %v6824_v34  ;;  %vm8937_vm11 = vnez %v8803_v55 }
 0x162   : > { %4850 = vmatpush3.bf16.msk.msra.mxu0 %vm4318_vm1, %v5257_v19  ;;  %4823 = vmatprep.subr.msk.bf16.mxu1 %vm4263_vm13, %v5257_v19  ;;  %vm4265_vm7 = vmpackc.low %vm2263_vm2, %vm2262_vm12  ;;  %vm2454_vm1 = vcmp.eq.s32.totalorder %v6936_v57, %v5524_v18  ;;  %vm2260_vm13 = vcmp.eq.s32.totalorder %v6884_v49, %v6821_v35  ;;  %v7250_v52 = vsel %vm8937_vm11, %v5720_v43, 256  ;;  %vm2467_vm12 = vcmp.eq.s32.totalorder %v6936_v57, %v6821_v35 }
 0x163   : > { %4851 = vmatprep.subr.msk.bf16.mxu0 %vm4336_vm8, %v5257_v19  ;;  %vm4338_vm15 = vmpackc.low %vm2470_vm5, %vm2469_vm6  ;;  %vm2468_vm2 = vcmp.eq.s32.totalorder %v6936_v57, %v6824_v34  ;;  %vm8940_vm6 = vnez %v8805_v59  ;;  %vm2244_vm5 = vcmp.eq.s32.totalorder %v6884_v49, %v5473_v2  ;;  %vm2452_vm11 = vcmp.eq.s32.totalorder %v6936_v57, %v5605_v22  ;;  %v1011_v43 = vpop.f32.mrf.mxu0 }
 0x164   : > { %vm7255_vm8 = vmpackc.low %vm2247_vm4, %vm2246_vm10  ;;  %v7266_v62 = vsel %vm8940_vm6, %v5724_v47, 256  ;;  %vm2245_vm10 = vcmp.eq.s32.totalorder %v6884_v49, %v5605_v22  ;;  %vm2451_vm6 = vcmp.eq.s32.totalorder %v6936_v57, %v5473_v2 }
 0x165   : > { %4824 = vmatpush3.bf16.msk.msra.mxu1 %vm7220_vm0, %v5257_v19  ;;  %v8939_v42 = vsel %vm7255_vm8, 4294967295, %v8938_v42  ;;  %vm4322_vm0 = vmpackc.low %vm2454_vm1, %vm2453_vm3  ;;  %v1064_v47 = vpop.f32.mrf.mxu1  ;;  %v1013_v49 = vpop.f32.mrf.mxu0 }
 0x166   : > { %4852 = vmatpush3.bf16.msk.msra.mxu0 %vm7230_vm14, %v5257_v19  ;;  %4825 = vmatprep.subr.msk.bf16.mxu1 %vm4265_vm7, %v5257_v19  ;;  %vm4267_vm4 = vmpackc.low %vm2261_vm9, %vm2260_vm13  ;;  %vm2688_vm14 = vcmp.eq.s32.totalorder %v7250_v52, %v6313_v54  ;;  %vm2689_vm7 = vcmp.eq.s32.totalorder %v7250_v52, %v6316_v56  ;;  %vm8941_vm3 = vnez %v8939_v42  ;;  %vm2896_vm13 = vcmp.eq.s32.totalorder %v7266_v62, %v6316_v56 }
 0x167   : > { %4853 = vmatprep.subr.msk.bf16.mxu0 %vm4338_vm15, %v5257_v19  ;;  %vm4340_vm8 = vmpackc.low %vm2468_vm2, %vm2467_vm12  ;;  %vm2895_vm15 = vcmp.eq.s32.totalorder %v7266_v62, %v6313_v54  ;;  %v4663_v57 = vpack.c.bf16 %v1013_v49, %v1011_v43  ;;  %v1066_v9 = vpop.f32.mrf.mxu1  ;;  %v1015_v25 = vpop.f32.mrf.mxu0 }
 0x168   : > { %vm4251_vm1 = vmpackc.low %vm2245_vm10, %vm2244_vm5  ;;  %v4667_v14 = vpack.c.bf16 %v1066_v9, %v1064_v47  ;;  %vm2686_vm5 = vcmp.eq.s32.totalorder %v7250_v52, %v6410_v4  ;;  %vm2687_vm10 = vcmp.eq.s32.totalorder %v7250_v52, %v6413_v5  ;;  %v1381_v61 = vpack.c.bf16 %v1015_v25, %v1011_v43 }
 0x169   : > { %4826 = vmatpush3.bf16.msk.msra.mxu1 %vm8941_vm3, %v5257_v19  ;;  %vm4324_vm9 = vmpackc.low %vm2452_vm11, %vm2451_vm6  ;;  %vm2672_vm11 = vcmp.eq.s32.totalorder %v7250_v52, %v6394_v16  ;;  %3991 = vst [vmem:[%s6959_s22 + $0x40] sm:$0xff] %v4663_v57  ;;  %v1068_v29 = vpop.f32.mrf.mxu1  ;;  %vm2879_vm6 = vcmp.eq.s32.totalorder %v7266_v62, %v6394_v16  ;;  %v1017_v37 = vpop.f32.mrf.mxu0  ;;  %vm2670_vm3 = vcmp.eq.s32.totalorder %v7250_v52, %v6458_v23 }
 0x16a   : > { %4854 = vmatpush3.bf16.msk.msra.mxu0 %vm4322_vm0, %v5257_v19  ;;  %4827 = vmatprep.subr.msk.bf16.mxu1 %vm4267_vm4, %v5257_v19  ;;  %vm4399_vm12 = vmpackc.low %vm2689_vm7, %vm2688_vm14  ;;  %vm2880_vm0 = vcmp.eq.s32.totalorder %v7266_v62, %v6397_v3  ;;  %4003 = vst [vmem:[%s6959_s22 + $0x60] sm:$0xff] %v4667_v14  ;;  %vm2893_vm4 = vcmp.eq.s32.totalorder %v7266_v62, %v6410_v4 }
 0x16b   : > { %4855 = vmatprep.subr.msk.bf16.mxu0 %vm4340_vm8, %v5257_v19  ;;  %vm4472_vm2 = vmpackc.low %vm2896_vm13, %vm2895_vm15  ;;  %vm2673_vm8 = vcmp.eq.s32.totalorder %v7250_v52, %v6397_v3  ;;  %v1382_v40 = vpack.c.bf16 %v1017_v37, %v1013_v49  ;;  %v4664_v13 = vpack.c.bf16 %v1017_v37, %v1015_v25  ;;  %v1070_v45 = vpop.f32.mrf.mxu1  ;;  %vm2894_vm7 = vcmp.eq.s32.totalorder %v7266_v62, %v6413_v5 }
 0x16c   : > { %vm7315_vm14 = vmpackc.low %vm2673_vm8, %vm2672_vm11  ;;  %v1384_v32 = vpack.c.bf16 %v1070_v45, %v1066_v9  ;;  %v4668_v27 = vpack.c.bf16 %v1070_v45, %v1068_v29  ;;  %v7333_v30 = vpop.f32.mrf.mxu0  ;;  %vm2671_vm15 = vcmp.eq.s32.totalorder %v7250_v52, %v6461_v24  ;;  %v1383_v42 = vpack.c.bf16 %v1068_v29, %v1064_v47 }
 0x16d   : > { %4828 = vmatpush3.bf16.msk.msra.mxu1 %vm4251_vm1, %v5257_v19  ;;  %vm7329_vm1 = vmpackc.low %vm2880_vm0, %vm2879_vm6  ;;  %3992 = vst [vmem:[%s6959_s22 + $0x48] sm:$0xff] %v4664_v13  ;;  %2388 = vmatprep.mubr.bf16.mxu1 %v1382_v40  ;;  %vm2684_vm11 = vcmp.eq.s32.totalorder %v7250_v52, %v6480_v26  ;;  %vm2685_vm8 = vcmp.eq.s32.totalorder %v7250_v52, %v6483_v28 }
 0x16e   : > { %4856 = vmatpush3.bf16.msk.msra.mxu0 %vm4324_vm9, %v5257_v19  ;;  %4869 = vmatprep.subr.msk.bf16.mxu1 %vm4399_vm12, %v5257_v19  ;;  %vm7346_vm13 = vmpackc.low %vm2687_vm10, %vm2686_vm5  ;;  %vm2877_vm9 = vcmp.eq.s32.totalorder %v7266_v62, %v6458_v23  ;;  %vm2878_vm12 = vcmp.eq.s32.totalorder %v7266_v62, %v6461_v24  ;;  %4004 = vst [vmem:[%s6959_s22 + $0x68] sm:$0xff] %v4668_v27  ;;  %v1023_v47 = vpop.f32.mrf.mxu0 }
 0x16f   : > { %4897 = vmatprep.subr.msk.bf16.mxu0 %vm4472_vm2, %v5257_v19  ;;  %v7338_v43 = vpop.f32.mrf.mxu1  ;;  %2595 = vmatprep.mubr.bf16.mxu0 %v1384_v32  ;;  %vm7361_vm2 = vmpackc.low %vm2894_vm7, %vm2893_vm4  ;;  %v4665_v9 = vpack.c.bf16 %v1023_v47, %v7333_v30  ;;  %vm2891_vm0 = vcmp.eq.s32.totalorder %v7266_v62, %v6480_v26  ;;  %vm2892_vm5 = vcmp.eq.s32.totalorder %v7266_v62, %v6483_v28 }
 0x170   : > { %2389 = vmatmul.mubr.bf16.vlgmr.msra.gmra.mxu1 %v1381_v61  ;;  %vm7379_vm6 = vmpackc.low %vm2671_vm15, %vm2670_vm3  ;;  %v1025_v40 = vpop.f32.mrf.mxu0  ;;  %vm2668_vm4 = vcmp.eq.s32.totalorder %v7250_v52, %v6545_v36  ;;  %vm2875_vm3 = vcmp.eq.s32.totalorder %v7266_v62, %v6545_v36  ;;  %vm2682_vm15 = vcmp.eq.s32.totalorder %v7250_v52, %v6568_v38 }
 0x171   : > { %2596 = vmatmul.mubr.bf16.vlgmr.msra.gmra.mxu0 %v1383_v42  ;;  %4870 = vmatpush3.bf16.msk.msra.mxu1 %vm7315_vm14, %v5257_v19  ;;  %v1076_v14 = vpop.f32.mrf.mxu1  ;;  %vm7400_vm10 = vmpackc.low %vm2878_vm12, %vm2877_vm9  ;;  %vm2669_vm14 = vcmp.eq.s32.totalorder %v7250_v52, %v6548_v1  ;;  %3993 = vst [vmem:[%s6959_s22 + $0x50] sm:$0xff] %v4665_v9  ;;  %v1397_v6 = vpack.c.bf16 %v1025_v40, %v7333_v30 }
 0x172   : > { %4898 = vmatpush3.bf16.msk.msra.mxu0 %vm7329_vm1, %v5257_v19  ;;  %v4669_v29 = vpack.c.bf16 %v1076_v14, %v7338_v43  ;;  %4871 = vmatprep.subr.msk.bf16.mxu1 %vm7346_vm13, %v5257_v19  ;;  %vm7418_vm7 = vmpackc.low %vm2685_vm8, %vm2684_vm11  ;;  %vm2876_vm1 = vcmp.eq.s32.totalorder %v7266_v62, %v6548_v1  ;;  %v1027_v61 = vpop.f32.mrf.mxu0  ;;  %vm2683_vm9 = vcmp.eq.s32.totalorder %v7250_v52, %v6571_v39 }
 0x173   : > { %4899 = vmatprep.subr.msk.bf16.mxu0 %vm7361_vm2, %v5257_v19  ;;  %v1078_v13 = vpop.f32.mrf.mxu1  ;;  %vm7436_vm13 = vmpackc.low %vm2892_vm5, %vm2891_vm0  ;;  %vm2889_vm12 = vcmp.eq.s32.totalorder %v7266_v62, %v6568_v38  ;;  %vm2890_vm2 = vcmp.eq.s32.totalorder %v7266_v62, %v6571_v39  ;;  %v1398_v51 = vpack.c.bf16 %v1027_v61, %v1023_v47  ;;  %v4666_v30 = vpack.c.bf16 %v1027_v61, %v1025_v40 }
 0x174   : > { %4005 = vst [vmem:[%s6959_s22 + $0x70] sm:$0xff] %v4669_v29  ;;  %v1399_v27 = vpack.c.bf16 %v1078_v13, %v7338_v43  ;;  %vm7456_vm11 = vmpackc.low %vm2669_vm14, %vm2668_vm4  ;;  %vm2666_vm8 = vcmp.eq.s32.totalorder %v7250_v52, %v6616_v41  ;;  %vm2667_vm0 = vcmp.eq.s32.totalorder %v7250_v52, %v6619_v44  ;;  %vm2874_vm4 = vcmp.eq.s32.totalorder %v7266_v62, %v6619_v44 }
 0x175   : > { %4872 = vmatpush3.bf16.msk.msra.mxu1 %vm7379_vm6, %v5257_v19  ;;  %v1080_v42 = vpop.f32.mrf.mxu1  ;;  %vm7474_vm6 = vmpackc.low %vm2876_vm1, %vm2875_vm3  ;;  %3994 = vst [vmem:[%s6959_s22 + $0x58] sm:$0xff] %v4666_v30  ;;  %2396 = vmatprep.mubr.bf16.mxu1 %v1398_v51  ;;  %vm2681_vm3 = vcmp.eq.s32.totalorder %v7250_v52, %v6636_v48 }
 0x176   : > { %4900 = vmatpush3.bf16.msk.msra.mxu0 %vm7400_vm10, %v5257_v19  ;;  %v1400_v43 = vpack.c.bf16 %v1080_v42, %v1076_v14  ;;  %v4670_v47 = vpack.c.bf16 %v1080_v42, %v1078_v13  ;;  %4873 = vmatprep.subr.msk.bf16.mxu1 %vm7418_vm7, %v5257_v19  ;;  %vm7490_vm5 = vmpackc.low %vm2683_vm9, %vm2682_vm15  ;;  %vm2873_vm10 = vcmp.eq.s32.totalorder %v7266_v62, %v6616_v41  ;;  %v7498_v14 = vpop.f32.mrf.mxu0 }
 0x177   : > { %4901 = vmatprep.subr.msk.bf16.mxu0 %vm7436_vm13, %v5257_v19  ;;  %vm7507_vm14 = vmpackc.low %vm2890_vm2, %vm2889_vm12  ;;  %vm2680_vm7 = vcmp.eq.s32.totalorder %v7250_v52, %v6633_v46  ;;  %vm2887_vm15 = vcmp.eq.s32.totalorder %v7266_v62, %v6633_v46  ;;  %vm2888_vm13 = vcmp.eq.s32.totalorder %v7266_v62, %v6636_v48  ;;  %vm2664_vm12 = vcmp.eq.s32.totalorder %v7250_v52, %v5480_v7 }
 0x178   : > { %4006 = vst [vmem:[%s6959_s22 + $0x78] sm:$0xff] %v4670_v47  ;;  %2603 = vmatprep.mubr.bf16.mxu0 %v1400_v43  ;;  %2397 = vmatmul.mubr.bf16.gmra.mxu1 %v1397_v6  ;;  %vm7526_vm1 = vmpackc.low %vm2667_vm0, %vm2666_vm8  ;;  %v1119_v40 = vpop.f32.mrf.mxu0  ;;  %vm2665_vm2 = vcmp.eq.s32.totalorder %v7250_v52, %v5483_v8  ;;  %vm2871_vm8 = vcmp.eq.s32.totalorder %v7266_v62, %v5480_v7 }
 0x179   : > { %4874 = vmatpush3.bf16.msk.msra.mxu1 %vm7456_vm11, %v5257_v19  ;;  %2604 = vmatmul.mubr.bf16.gmra.mxu0 %v1399_v27  ;;  %vm7546_vm9 = vmpackc.low %vm2874_vm4, %vm2873_vm10  ;;  %v4671_v45 = vpack.c.bf16 %v1119_v40, %v7498_v14  ;;  %vm2679_vm10 = vcmp.eq.s32.totalorder %v7250_v52, %v6708_v60 }
 0x17a   : > { %v7515_v29 = vpop.f32.mrf.mxu1  ;;  %4902 = vmatpush3.bf16.msk.msra.mxu0 %vm7474_vm6, %v5257_v19  ;;  %4875 = vmatprep.subr.msk.bf16.mxu1 %vm7490_vm5, %v5257_v19  ;;  %vm7564_vm11 = vmpackc.low %vm2681_vm3, %vm2680_vm7  ;;  %vm2872_vm6 = vcmp.eq.s32.totalorder %v7266_v62, %v5483_v8  ;;  %v7573_v27 = vpop.f32.mrf.mxu0  ;;  %vm2678_vm5 = vcmp.eq.s32.totalorder %v7250_v52, %v6705_v58  ;;  %vm2886_vm7 = vcmp.eq.s32.totalorder %v7266_v62, %v6708_v60 }
 0x17b   : > { %4903 = vmatprep.subr.msk.bf16.mxu0 %vm7507_vm14, %v5257_v19  ;;  %vm7581_vm0 = vmpackc.low %vm2888_vm13, %vm2887_vm15  ;;  %4015 = vst [vmem:[%s6959_s22 + $0x80] sm:$0xff] %v4671_v45  ;;  %vm2885_vm14 = vcmp.eq.s32.totalorder %v7266_v62, %v6705_v58  ;;  %vm2662_vm3 = vcmp.eq.s32.totalorder %v7250_v52, %v5489_v10  ;;  %vm2663_vm15 = vcmp.eq.s32.totalorder %v7250_v52, %v5492_v11 }
 0x17c   : > { %v1172_v6 = vpop.f32.mrf.mxu1  ;;  %vm7601_vm4 = vmpackc.low %vm2665_vm2, %vm2664_vm12  ;;  %v1123_v49 = vpop.f32.mrf.mxu0  ;;  %vm2870_vm12 = vcmp.eq.s32.totalorder %v7266_v62, %v5492_v11 }
 0x17d   : > { %v4675_v32 = vpack.c.bf16 %v1172_v6, %v7515_v29  ;;  %4876 = vmatpush3.bf16.msk.msra.mxu1 %vm7526_vm1, %v5257_v19  ;;  %vm7624_vm1 = vmpackc.low %vm2872_vm6, %vm2871_vm8  ;;  %v1386_v47 = vpack.c.bf16 %v1123_v49, %v1119_v40  ;;  %v4672_v57 = vpack.c.bf16 %v1123_v49, %v7573_v27  ;;  %vm2677_vm8 = vcmp.eq.s32.totalorder %v7250_v52, %v6769_v21 }
 0x17e   : > { %v7590_v30 = vpop.f32.mrf.mxu1  ;;  %4904 = vmatpush3.bf16.msk.msra.mxu0 %vm7546_vm9, %v5257_v19  ;;  %4877 = vmatprep.subr.msk.bf16.mxu1 %vm7564_vm11, %v5257_v19  ;;  %vm7640_vm13 = vmpackc.low %vm2679_vm10, %vm2678_vm5  ;;  %vm2869_vm9 = vcmp.eq.s32.totalorder %v7266_v62, %v5489_v10  ;;  %vm2676_vm11 = vcmp.eq.s32.totalorder %v7250_v52, %v6766_v20  ;;  %vm2884_vm5 = vcmp.eq.s32.totalorder %v7266_v62, %v6769_v21 }
 0x17f   : > { %4027 = vst [vmem:[%s6959_s22 + $0xa0] sm:$0xff] %v4675_v32  ;;  %4905 = vmatprep.subr.msk.bf16.mxu0 %vm7581_vm0, %v5257_v19  ;;  %vm7657_vm2 = vmpackc.low %vm2886_vm7, %vm2885_vm14  ;;  %2802 = vmatprep.mubr.bf16.mxu1 %v1386_v47  ;;  %vm2883_vm0 = vcmp.eq.s32.totalorder %v7266_v62, %v6766_v20  ;;  %vm2661_vm14 = vcmp.eq.s32.totalorder %v7250_v52, %v5524_v18 }
 0x180   : > { %v1176_v9 = vpop.f32.mrf.mxu1  ;;  %v7649_v13 = vpop.f32.mrf.mxu0  ;;  %4016 = vst [vmem:[%s6959_s22 + $0x88] sm:$0xff] %v4672_v57  ;;  %vm7677_vm6 = vmpackc.low %vm2663_vm15, %vm2662_vm3  ;;  %vm2867_vm3 = vcmp.eq.s32.totalorder %v7266_v62, %v5521_v17 }
 0x181   : > { %v1388_v37 = vpack.c.bf16 %v1176_v9, %v1172_v6  ;;  %v4676_v40 = vpack.c.bf16 %v1176_v9, %v7590_v30  ;;  %4878 = vmatpush3.bf16.msk.msra.mxu1 %vm7601_vm4, %v5257_v19  ;;  %vm7700_vm10 = vmpackc.low %vm2870_vm12, %vm2869_vm9  ;;  %vm2660_vm4 = vcmp.eq.s32.totalorder %v7250_v52, %v5521_v17  ;;  %vm2675_vm9 = vcmp.eq.s32.totalorder %v7250_v52, %v6824_v34 }
 0x182   : > { %v7686_v32 = vpop.f32.mrf.mxu0  ;;  %4906 = vmatpush3.bf16.msk.msra.mxu0 %vm7624_vm1, %v5257_v19  ;;  %4879 = vmatprep.subr.msk.bf16.mxu1 %vm7640_vm13, %v5257_v19  ;;  %vm7721_vm7 = vmpackc.low %vm2677_vm8, %vm2676_vm11  ;;  %vm2868_vm1 = vcmp.eq.s32.totalorder %v7266_v62, %v5524_v18  ;;  %vm2674_vm13 = vcmp.eq.s32.totalorder %v7250_v52, %v6821_v35  ;;  %vm8990_vm12 = vnez %v8807_v63  ;;  %vm2881_vm11 = vcmp.eq.s32.totalorder %v7266_v62, %v6821_v35 }
 0x183   : > { %v7666_v6 = vpop.f32.mrf.mxu1  ;;  %4028 = vst [vmem:[%s6959_s22 + $0xa8] sm:$0xff] %v4676_v40  ;;  %3009 = vmatprep.mubr.bf16.mxu0 %v1388_v37  ;;  %v4673_v42 = vpack.c.bf16 %v7686_v32, %v7649_v13  ;;  %4907 = vmatprep.subr.msk.bf16.mxu0 %vm7657_vm2, %v5257_v19  ;;  %vm7739_vm15 = vmpackc.low %vm2884_vm5, %vm2883_vm0  ;;  %v7753_v37 = vsel %vm8990_vm12, %v5727_v50, 256  ;;  %vm2882_vm8 = vcmp.eq.s32.totalorder %v7266_v62, %v6824_v34 }
 0x184   : > { %v7729_v47 = vpop.f32.mrf.mxu0  ;;  %vm7764_vm2 = vmpackc.low %vm2661_vm14, %vm2660_vm4  ;;  %vm2658_vm5 = vcmp.eq.s32.totalorder %v7250_v52, %v5473_v2  ;;  %vm2865_vm14 = vcmp.eq.s32.totalorder %v7266_v62, %v5473_v2 }
 0x185   : > { %v7710_v49 = vpop.f32.mrf.mxu1  ;;  %4017 = vst [vmem:[%s6959_s22 + $0x90] sm:$0xff] %v4673_v42  ;;  %4880 = vmatpush3.bf16.msk.msra.mxu1 %vm7677_vm6, %v5257_v19  ;;  %vm8993_vm6 = vnez %v8809_v12  ;;  %vm7792_vm0 = vmpackc.low %vm2868_vm1, %vm2867_vm3  ;;  %vm3102_vm1 = vcmp.eq.s32.totalorder %v7753_v37, %v6313_v54 }
 0x186   : > { %v4677_v57 = vpack.c.bf16 %v7710_v49, %v7666_v6  ;;  %v7772_v50 = vpop.f32.mrf.mxu0  ;;  %v7778_v45 = vsel %vm8993_vm6, %v5737_v53, 256  ;;  %4908 = vmatpush3.bf16.msk.msra.mxu0 %vm7700_vm10, %v5257_v19  ;;  %4881 = vmatprep.subr.msk.bf16.mxu1 %vm7721_vm7, %v5257_v19  ;;  %vm2659_vm10 = vcmp.eq.s32.totalorder %v7250_v52, %v5605_v22  ;;  %vm7813_vm4 = vmpackc.low %vm2675_vm9, %vm2674_vm13  ;;  %vm2866_vm7 = vcmp.eq.s32.totalorder %v7266_v62, %v5605_v22 }
 0x187   : > { %v7748_v25 = vpop.f32.mrf.mxu1  ;;  %v4674_v53 = vpack.c.bf16 %v7772_v50, %v7729_v47  ;;  %4909 = vmatprep.subr.msk.bf16.mxu0 %vm7739_vm15, %v5257_v19  ;;  %vm7831_vm3 = vmpackc.low %vm2882_vm8, %vm2881_vm11  ;;  %vm3103_vm15 = vcmp.eq.s32.totalorder %v7753_v37, %v6316_v56  ;;  %vm3309_vm9 = vcmp.eq.s32.totalorder %v7778_v45, %v6313_v54  ;;  %vm3310_vm11 = vcmp.eq.s32.totalorder %v7778_v45, %v6316_v56 }
 0x188   : > { %4029 = vst [vmem:[%s6959_s22 + $0xb0] sm:$0xff] %v4677_v57  ;;  %vm7846_vm13 = vmpackc.low %vm2659_vm10, %vm2658_vm5  ;;  %vm3086_vm8 = vcmp.eq.s32.totalorder %v7753_v37, %v6394_v16  ;;  %vm3293_vm10 = vcmp.eq.s32.totalorder %v7778_v45, %v6394_v16  ;;  %v1387_v16 = vpack.c.bf16 %v7590_v30, %v7515_v29  ;;  %v1401_v62 = vpack.c.bf16 %v7729_v47, %v7649_v13 }
 0x189   : > { %v7802_v51 = vpop.f32.mrf.mxu1  ;;  %v7821_v43 = vpop.f32.mrf.mxu0  ;;  %4018 = vst [vmem:[%s6959_s22 + $0x98] sm:$0xff] %v4674_v53  ;;  %4882 = vmatpush3.bf16.msk.msra.mxu1 %vm7764_vm2, %v5257_v19  ;;  %vm7870_vm2 = vmpackc.low %vm2866_vm7, %vm2865_vm14  ;;  %vm3100_vm7 = vcmp.eq.s32.totalorder %v7753_v37, %v6410_v4  ;;  %vm3089_vm6 = vcmp.eq.s32.totalorder %v7753_v37, %v6824_v34 }
 0x18a   : > { %v4678_v57 = vpack.c.bf16 %v7802_v51, %v7748_v25  ;;  %4910 = vmatpush3.bf16.msk.msra.mxu0 %vm7792_vm0, %v5257_v19  ;;  %4883 = vmatprep.subr.msk.bf16.mxu1 %vm7813_vm4, %v5257_v19  ;;  %vm3087_vm0 = vcmp.eq.s32.totalorder %v7753_v37, %v6397_v3  ;;  %vm7889_vm5 = vmpackc.low %vm3103_vm15, %vm3102_vm1  ;;  %vm3294_vm4 = vcmp.eq.s32.totalorder %v7778_v45, %v6397_v3 }
 0x18b   : > { %v7855_v53 = vpop.f32.mrf.mxu0  ;;  %4911 = vmatprep.subr.msk.bf16.mxu0 %vm7831_vm3, %v5257_v19  ;;  %vm7905_vm14 = vmpackc.low %vm3310_vm11, %vm3309_vm9  ;;  %vm3101_vm3 = vcmp.eq.s32.totalorder %v7753_v37, %v6413_v5  ;;  %vm3307_vm15 = vcmp.eq.s32.totalorder %v7778_v45, %v6410_v4  ;;  %vm3308_vm9 = vcmp.eq.s32.totalorder %v7778_v45, %v6413_v5  ;;  %vm3084_vm11 = vcmp.eq.s32.totalorder %v7753_v37, %v6458_v23 }
 0x18c   : > { %4030 = vst [vmem:[%s6959_s22 + $0xb8] sm:$0xff] %v4678_v57  ;;  %v4679_v40 = vpack.c.bf16 %v7855_v53, %v7821_v43  ;;  %vm7923_vm1 = vmpackc.low %vm3087_vm0, %vm3086_vm8  ;;  %v1385_v57 = vpack.c.bf16 %v7573_v27, %v7498_v14  ;;  %vm3085_vm8 = vcmp.eq.s32.totalorder %v7753_v37, %v6461_v24  ;;  %v1402_v3 = vpack.c.bf16 %v7772_v50, %v7686_v32 }
 0x18d   : > { %v7897_v61 = vpop.f32.mrf.mxu0  ;;  %4884 = vmatpush3.bf16.msk.msra.mxu1 %vm7846_vm13, %v5257_v19  ;;  %vm7949_vm13 = vmpackc.low %vm3294_vm4, %vm3293_vm10  ;;  %vm3291_vm0 = vcmp.eq.s32.totalorder %v7778_v45, %v6458_v23  ;;  %v1404_v30 = vpack.c.bf16 %v7802_v51, %v7710_v49  ;;  %vm3098_vm4 = vcmp.eq.s32.totalorder %v7753_v37, %v6480_v26 }
 0x18e   : > { %4039 = vst [vmem:[%s6959_s22 + $0xc0] sm:$0xff] %v4679_v40  ;;  %4912 = vmatpush3.bf16.msk.msra.mxu0 %vm7870_vm2, %v5257_v19  ;;  %4925 = vmatprep.subr.msk.bf16.mxu1 %vm7889_vm5, %v5257_v19  ;;  %vm7972_vm2 = vmpackc.low %vm3101_vm3, %vm3100_vm7  ;;  %vm3292_vm5 = vcmp.eq.s32.totalorder %v7778_v45, %v6461_v24  ;;  %vm3305_vm3 = vcmp.eq.s32.totalorder %v7778_v45, %v6480_v26 }
 0x18f   : > { %v7933_v56 = vpop.f32.mrf.mxu0  ;;  %v7957_v27 = vpop.f32.mrf.mxu1  ;;  %4953 = vmatprep.subr.msk.bf16.mxu0 %vm7905_vm14, %v5257_v19  ;;  %vm7990_vm10 = vmpackc.low %vm3308_vm9, %vm3307_vm15  ;;  %vm3099_vm14 = vcmp.eq.s32.totalorder %v7753_v37, %v6483_v28  ;;  %vm3306_vm15 = vcmp.eq.s32.totalorder %v7778_v45, %v6483_v28  ;;  %vm3082_vm9 = vcmp.eq.s32.totalorder %v7753_v37, %v6545_v36  ;;  %v1403_v26 = vpack.c.bf16 %v7748_v25, %v7666_v6 }
 0x190   : > { %v4680_v14 = vpack.c.bf16 %v7933_v56, %v7897_v61  ;;  %2803 = vmatmul.mubr.bf16.vlgmr.msra.gmra.mxu1 %v1385_v57  ;;  %vm8016_vm7 = vmpackc.low %vm3085_vm8, %vm3084_vm11  ;;  %vm3083_vm11 = vcmp.eq.s32.totalorder %v7753_v37, %v6548_v1  ;;  %vm3289_vm8 = vcmp.eq.s32.totalorder %v7778_v45, %v6545_v36  ;;  %v1390_v12 = vpack.c.bf16 %v7933_v56, %v7855_v53 }
 0x191   : > { %v7980_v29 = vpop.f32.mrf.mxu0  ;;  %v7999_v50 = vpop.f32.mrf.mxu1  ;;  %3010 = vmatmul.mubr.bf16.vlgmr.msra.gmra.mxu0 %v1387_v16  ;;  %4926 = vmatpush3.bf16.msk.msra.mxu1 %vm7923_vm1, %v5257_v19  ;;  %vm8040_vm1 = vmpackc.low %vm3292_vm5, %vm3291_vm0  ;;  %vm3096_vm5 = vcmp.eq.s32.totalorder %v7753_v37, %v6568_v38 }
 0x192   : > { %4040 = vst [vmem:[%s6959_s22 + $0xc8] sm:$0xff] %v4680_v14  ;;  %v4683_v49 = vpack.c.bf16 %v7999_v50, %v7957_v27  ;;  %4954 = vmatpush3.bf16.msk.msra.mxu0 %vm7949_vm13, %v5257_v19  ;;  %4927 = vmatprep.subr.msk.bf16.mxu1 %vm7972_vm2, %v5257_v19  ;;  %vm8061_vm13 = vmpackc.low %vm3099_vm14, %vm3098_vm4  ;;  %vm3290_vm2 = vcmp.eq.s32.totalorder %v7778_v45, %v6548_v1 }
 0x193   : > { %v8024_v5 = vpop.f32.mrf.mxu0  ;;  %v8050_v40 = vpop.f32.mrf.mxu1  ;;  %4955 = vmatprep.subr.msk.bf16.mxu0 %vm7990_vm10, %v5257_v19  ;;  %2810 = vmatprep.mubr.bf16.mxu1 %v1402_v3  ;;  %vm8080_vm0 = vmpackc.low %vm3306_vm15, %vm3305_vm3  ;;  %vm3097_vm10 = vcmp.eq.s32.totalorder %v7753_v37, %v6571_v39  ;;  %vm3303_vm14 = vcmp.eq.s32.totalorder %v7778_v45, %v6568_v38  ;;  %vm3304_vm3 = vcmp.eq.s32.totalorder %v7778_v45, %v6571_v39 }
 0x194   : > { %v4681_v52 = vpack.c.bf16 %v8024_v5, %v7980_v29  ;;  %4051 = vst [vmem:[%s6959_s22 + $0xe0] sm:$0xff] %v4683_v49  ;;  %3017 = vmatprep.mubr.bf16.mxu0 %v1404_v30  ;;  %vm8103_vm4 = vmpackc.low %vm3083_vm11, %vm3082_vm9  ;;  %vm3080_vm15 = vcmp.eq.s32.totalorder %v7753_v37, %v6616_v41  ;;  %vm3287_vm11 = vcmp.eq.s32.totalorder %v7778_v45, %v6616_v41 }
 0x195   : > { %v8069_v24 = vpop.f32.mrf.mxu0  ;;  %v8090_v13 = vpop.f32.mrf.mxu1  ;;  %4928 = vmatpush3.bf16.msk.msra.mxu1 %vm8016_vm7, %v5257_v19  ;;  %vm8127_vm7 = vmpackc.low %vm3290_vm2, %vm3289_vm8  ;;  %vm3094_vm8 = vcmp.eq.s32.totalorder %v7753_v37, %v6633_v46  ;;  %vm8789_vm2 = vcmask 60416  }
 0x196   : > { %4041 = vst [vmem:[%s6959_s22 + $0xd0] sm:$0xff] %v4681_v52  ;;  %v4684_v47 = vpack.c.bf16 %v8090_v13, %v8050_v40  ;;  %4956 = vmatpush3.bf16.msk.msra.mxu0 %vm8040_vm1, %v5257_v19  ;;  %4929 = vmatprep.subr.msk.bf16.mxu1 %vm8061_vm13, %v5257_v19  ;;  %vm3081_vm1 = vcmp.eq.s32.totalorder %v7753_v37, %v6619_v44  ;;  %vm8148_vm9 = vmpackc.low %vm3097_vm10, %vm3096_vm5 }
 0x197   : > { %v8111_v6 = vpop.f32.mrf.mxu0  ;;  %4957 = vmatprep.subr.msk.bf16.mxu0 %vm8080_vm0, %v5257_v19  ;;  %vm3288_vm13 = vcmp.eq.s32.totalorder %v7778_v45, %v6619_v44  ;;  %vm8174_vm0 = vmpackc.low %vm3304_vm3, %vm3303_vm14  ;;  %vm3095_vm5 = vcmp.eq.s32.totalorder %v7753_v37, %v6636_v48  ;;  %vm3301_vm10 = vcmp.eq.s32.totalorder %v7778_v45, %v6633_v46  ;;  %vm3302_vm3 = vcmp.eq.s32.totalorder %v7778_v45, %v6636_v48 }
 0x198   : > { %v4682_v54 = vpack.c.bf16 %v8111_v6, %v8069_v24  ;;  %4052 = vst [vmem:[%s6959_s22 + $0xe8] sm:$0xff] %v4684_v47  ;;  %2811 = vmatmul.mubr.bf16.gmra.mxu1 %v1401_v62  ;;  %vm8196_vm14 = vmpackc.low %vm3081_vm1, %vm3080_vm15  ;;  %v1392_v16 = vpack.c.bf16 %v8090_v13, %v7999_v50  ;;  %vm3078_vm15 = vcmp.eq.s32.totalorder %v7753_v37, %v5480_v7 }
 0x199   : > { %3018 = vmatmul.mubr.bf16.gmra.mxu0 %v1403_v26  ;;  %4930 = vmatpush3.bf16.msk.msra.mxu1 %vm8103_vm4, %v5257_v19  ;;  %vm8218_vm4 = vmpackc.low %vm3288_vm13, %vm3287_vm11  ;;  %vm3286_vm11 = vcmp.eq.s32.totalorder %v7778_v45, %v5483_v8 }
 0x19a   : > { %v8137_v57 = vpop.f32.mrf.mxu1  ;;  %v4991_v1 = vpop.f32.mrf.mxu0  ;;  %4042 = vst [vmem:[%s6959_s22 + $0xd8] sm:$0xff] %v4682_v54  ;;  %4958 = vmatpush3.bf16.msk.msra.mxu0 %vm8127_vm7, %v5257_v19  ;;  %4931 = vmatprep.subr.msk.bf16.mxu1 %vm8148_vm9, %v5257_v19  ;;  %vm3079_vm7 = vcmp.eq.s32.totalorder %v7753_v37, %v5483_v8  ;;  %vm8242_vm1 = vmpackc.low %vm3095_vm5, %vm3094_vm8  ;;  %vm3285_vm9 = vcmp.eq.s32.totalorder %v7778_v45, %v5480_v7 }
 0x19b   : > { %v8183_v53 = vpack.c.bf16 %v4991_v1, %v4991_v1  ;;  %4959 = vmatprep.subr.msk.bf16.mxu0 %vm8174_vm0, %v5257_v19  ;;  %vm8259_vm13 = vmpackc.low %vm3302_vm3, %vm3301_vm10  ;;  %vm3092_vm8 = vcmp.eq.s32.totalorder %v7753_v37, %v6705_v58  ;;  %vm3093_vm0 = vcmp.eq.s32.totalorder %v7753_v37, %v6708_v60  ;;  %3216 = vmatprep.mubr.bf16.mxu1 %v1390_v12 }
 0x19c   : > { %v8185_v56 = vpop.f32.mrf.mxu1  ;;  %v1362_v39 = vpop.f32.mrf.mxu0  ;;  %vm8285_vm5 = vmpackc.low %vm3079_vm7, %vm3078_vm15  ;;  %vm3299_vm10 = vcmp.eq.s32.totalorder %v7778_v45, %v6705_v58  ;;  %vm3300_vm3 = vcmp.eq.s32.totalorder %v7778_v45, %v6708_v60  ;;  %3423 = vmatprep.mubr.bf16.mxu0 %v1392_v16  ;;  %vm3076_vm15 = vcmp.eq.s32.totalorder %v7753_v37, %v5489_v10 }
 0x19d   : > { %v4685_v3 = vpack.c.bf16 %v8185_v56, %v8137_v57  ;;  %1452 = vst.msk [vmem:[%s8163_s7 + $0x8] sm:$0xf] %vm8789_vm2, %v8183_v53  ;;  %v8229_v30 = vpack.c.bf16 %v1362_v39, %v1362_v39  ;;  %1483 = vrot.lane.b32.xlu1 %v8183_v53, %s5259_s13  ;;  %4932 = vmatpush3.bf16.msk.msra.mxu1 %vm8196_vm14, %v5257_v19  ;;  %vm8307_vm14 = vmpackc.low %vm3286_vm11, %vm3285_vm9  ;;  %v5073_v60 = vpop.permute.xlu1 %5072 }
 0x19e   : > { %v8231_v41 = vpop.f32.mrf.mxu1  ;;  %v4992_v32 = vpop.f32.mrf.mxu0  ;;  %4960 = vmatpush3.bf16.msk.msra.mxu0 %vm8218_vm4, %v5257_v19  ;;  %4933 = vmatprep.subr.msk.bf16.mxu1 %vm8242_vm1, %v5257_v19  ;;  %vm3077_vm4 = vcmp.eq.s32.totalorder %v7753_v37, %v5492_v11  ;;  %vm8329_vm7 = vmpackc.low %vm3093_vm0, %vm3092_vm8  ;;  %vm3283_vm1 = vcmp.eq.s32.totalorder %v7778_v45, %v5489_v10  ;;  %vm3284_vm9 = vcmp.eq.s32.totalorder %v7778_v45, %v5492_v11 }
 0x19f   : > { %4053 = vst [vmem:[%s6959_s22 + $0xf0] sm:$0xff] %v4685_v3  ;;  %1450 = vst.msk [vmem:[%s8163_s7] sm:$0xf] %vm8789_vm2, %v8229_v30  ;;  %1479 = vrot.lane.b32.xlu0 %v8229_v30, %s5259_s13  ;;  %v8272_v46 = vpack.c.bf16 %v4992_v32, %v4992_v32  ;;  %4961 = vmatprep.subr.msk.bf16.mxu0 %vm8259_vm13, %v5257_v19  ;;  %vm3090_vm13 = vcmp.eq.s32.totalorder %v7753_v37, %v6766_v20 }
 0x1a0   : > { %v8274_v48 = vpop.f32.mrf.mxu1  ;;  %v1365_v51 = vpop.f32.mrf.mxu0  ;;  %vm4628_vm11 = vmpackc.low %vm3300_vm3, %vm3299_vm10  ;;  %vm3091_vm8 = vcmp.eq.s32.totalorder %v7753_v37, %v6769_v21  ;;  %vm3297_vm10 = vcmp.eq.s32.totalorder %v7778_v45, %v6766_v20  ;;  %vm3298_vm3 = vcmp.eq.s32.totalorder %v7778_v45, %v6769_v21  ;;  %v1389_v11 = vpack.c.bf16 %v7897_v61, %v7821_v43 }
 0x1a1   : > { %v4686_v49 = vpack.c.bf16 %v8274_v48, %v8231_v41  ;;  %1453 = vst.msk [vmem:[%s8163_s7 + $0xc] sm:$0xf] %vm8789_vm2, %v8272_v46  ;;  %v8318_v23 = vpack.c.bf16 %v1365_v51, %v1365_v51  ;;  %1525 = vrot.lane.b32.xlu1 %v8183_v53, %s5260_s28  ;;  %4934 = vmatpush3.bf16.msk.msra.mxu1 %vm8285_vm5, %v5257_v19  ;;  %vm8364_vm0 = vmpackc.low %vm3077_vm4, %vm3076_vm15  ;;  %v8490_v21 = vpop.permute.xlu0 %5078 }
 0x1a2   : > { %4962 = vmatpush3.bf16.msk.msra.mxu0 %vm8307_vm14, %v5257_v19  ;;  %4935 = vmatprep.subr.msk.bf16.mxu1 %vm8329_vm7, %v5257_v19  ;;  %vm8384_vm5 = vmpackc.low %vm3284_vm9, %vm3283_vm1  ;;  %vm3074_vm15 = vcmp.eq.s32.totalorder %v7753_v37, %v5521_v17  ;;  %vm3075_vm14 = vcmp.eq.s32.totalorder %v7753_v37, %v5524_v18  ;;  %vm3281_vm7 = vcmp.eq.s32.totalorder %v7778_v45, %v5521_v17 }
 0x1a3   : > { %4054 = vst [vmem:[%s6959_s22 + $0xf8] sm:$0xff] %v4686_v49  ;;  %1527 = vrot.lane.b32.xlu0 %v8272_v46, %s5260_s28  ;;  %1451 = vst.msk [vmem:[%s8163_s7 + $0x4] sm:$0xf] %vm8789_vm2, %v8318_v23  ;;  %4963 = vmatprep.subr.msk.bf16.mxu0 %vm4628_vm11, %v5257_v19  ;;  %vm3282_vm2 = vcmp.eq.s32.totalorder %v7778_v45, %v5524_v18  ;;  %vm3088_vm9 = vcmp.eq.s32.totalorder %v7753_v37, %v6821_v35 }
 0x1a4   : > { %vm4557_vm4 = vmpackc.low %vm3091_vm8, %vm3090_vm13  ;;  %vm3295_vm13 = vcmp.eq.s32.totalorder %v7778_v45, %v6821_v35  ;;  %vm3296_vm8 = vcmp.eq.s32.totalorder %v7778_v45, %v6824_v34  ;;  %v1408_v17 = vpack.c.bf16 %v8274_v48, %v8185_v56  ;;  %v1391_v18 = vpack.c.bf16 %v8050_v40, %v7957_v27 }
 0x1a5   : > { %1567 = vrot.lane.b32.xlu1 %v8183_v53, %s5261_s10  ;;  %vm4630_vm1 = vmpackc.low %vm3298_vm3, %vm3297_vm10  ;;  %4936 = vmatpush3.bf16.msk.msra.mxu1 %vm8364_vm0, %v5257_v19  ;;  %vm3072_vm3 = vcmp.eq.s32.totalorder %v7753_v37, %v5473_v2  ;;  %v8492_v34 = vunpack.i.l.bf16 %v5073_v60 }
 0x1a6   : > { %vm8408_vm11 = vmpackc.low %vm3075_vm14, %vm3074_vm15  ;;  %4964 = vmatpush3.bf16.msk.msra.mxu0 %vm8384_vm5, %v5257_v19  ;;  %4937 = vmatprep.subr.msk.bf16.mxu1 %vm4557_vm4, %v5257_v19  ;;  %vm3073_vm15 = vcmp.eq.s32.totalorder %v7753_v37, %v5605_v22  ;;  %vm3279_vm5 = vcmp.eq.s32.totalorder %v7778_v45, %v5473_v2  ;;  %v1406_v2 = vpack.c.bf16 %v8111_v6, %v8024_v5 }
 0x1a7   : > { %1569 = vrot.lane.b32.xlu0 %v8272_v46, %s5261_s10  ;;  %vm4614_vm10 = vmpackc.low %vm3282_vm2, %vm3281_vm7  ;;  %4965 = vmatprep.subr.msk.bf16.mxu0 %vm4630_vm1, %v5257_v19  ;;  %vm3280_vm2 = vcmp.eq.s32.totalorder %v7778_v45, %v5605_v22  ;;  %v1407_v22 = vpack.c.bf16 %v8231_v41, %v8137_v57 }
 0x1a8   : > { %vm4559_vm0 = vmpackc.low %vm3089_vm6, %vm3088_vm9 }
 0x1a9   : > { %1609 = vrot.lane.b32.xlu1 %v8183_v53, %s5262_s29  ;;  %vm4632_vm14 = vmpackc.low %vm3296_vm8, %vm3295_vm13  ;;  %4938 = vmatpush3.bf16.msk.msra.mxu1 %vm8408_vm11, %v5257_v19 }
 0x1aa   : > { %4966 = vmatpush3.bf16.msk.msra.mxu0 %vm4614_vm10, %v5257_v19  ;;  %4939 = vmatprep.subr.msk.bf16.mxu1 %vm4559_vm0, %v5257_v19  ;;  %vm4543_vm6 = vmpackc.low %vm3073_vm15, %vm3072_vm3 }
 0x1ab   : > { %1611 = vrot.lane.b32.xlu0 %v8272_v46, %s5262_s29  ;;  %4967 = vmatprep.subr.msk.bf16.mxu0 %vm4632_vm14, %v5257_v19  ;;  %vm4616_vm4 = vmpackc.low %vm3280_vm2, %vm3279_vm5 }
 0x1ad   : > { %1651 = vrot.lane.b32.xlu1 %v8183_v53, %s5263_s16  ;;  %4940 = vmatpush3.bf16.msk.msra.mxu1 %vm4543_vm6, %v5257_v19 }
 0x1ae   : > { %4968 = vmatpush3.bf16.msk.msra.mxu0 %vm4616_vm4, %v5257_v19  ;;  %v1405_v19 = vpack.c.bf16 %v8069_v24, %v7980_v29 }
 0x1af   : > { %1653 = vrot.lane.b32.xlu0 %v8272_v46, %s5263_s16 }
 0x1b0   : > { %3217 = vmatmul.mubr.bf16.vlgmr.msra.gmra.mxu1 %v1389_v11 }
 0x1b1   : > { %1693 = vrot.lane.b32.xlu1 %v8183_v53, %s5264_s23  ;;  %3424 = vmatmul.mubr.bf16.vlgmr.msra.gmra.mxu0 %v1391_v18 }
 0x1b2   : > { %3224 = vmatprep.mubr.bf16.mxu1 %v1406_v2  ;;  %3431 = vmatprep.mubr.bf16.mxu0 %v1408_v17 }
 0x1b3   : > { %1695 = vrot.lane.b32.xlu0 %v8272_v46, %s5264_s23 }
 0x1b5   : > { %1521 = vrot.lane.b32.xlu1 %v8229_v30, %s5260_s28 }
 0x1b7   : > { %1481 = vrot.lane.b32.xlu0 %v8318_v23, %s5259_s13 }
 0x1b8   : > { %3225 = vmatmul.mubr.bf16.gmra.mxu1 %v1405_v19 }
 0x1b9   : > { %1563 = vrot.lane.b32.xlu1 %v8229_v30, %s5261_s10  ;;  %3432 = vmatmul.mubr.bf16.gmra.mxu0 %v1407_v22 }
 0x1bb   : > { %1523 = vrot.lane.b32.xlu0 %v8318_v23, %s5260_s28  ;;  %s3494_s28 = sshll.u32 %s6959_s22, 4  ;;  %s8488_s28 = int_to_ptr.vmem [resolvable:$true] %s3494_s28 }
 0x1bc   : > { %s5174_s0 = scalar_lea.vmem %s8488_s28, 4096 }
 0x1bd   : > { %1605 = vrot.lane.b32.xlu1 %v8229_v30, %s5262_s29  ;;  %p5175_p11 = scmp.ne.s32.totalorder %s8488_s28, %s5174_s0 }
 0x1bf   : > { %1565 = vrot.lane.b32.xlu0 %v8318_v23, %s5261_s10  ;;  %p5176_p12 = pnand %p5175_p11, %p9053_p2  ;;  %s5266_s10 = smov [#allocation10]  }
 0x1c1   : > { %1647 = vrot.lane.b32.xlu1 %v8229_v30, %s5263_s16  ;;  %p5177_p13 = pneg %p5176_p12 }
 0x1c3   : > { %1607 = vrot.lane.b32.xlu0 %v8318_v23, %s5262_s29  ;;  %s5178_s29 = sshll.u32 %s5266_s10, 4  ;;  %s5179_s29 = int_to_ptr.vmem [resolvable:$false] %s5178_s29 }
 0x1c4   : > { %s5180_s22 = scalar_lea.vmem %s5179_s29, 8192  ;;  %p5181_p0 = scmp.lt.s32.totalorder %s8488_s28, %s5179_s29 }
 0x1c5   : > { %1689 = vrot.lane.b32.xlu1 %v8229_v30, %s5264_s23  ;;  %p5182_p5 = scmp.lt.s32.totalorder %s5180_s22, %s5174_s0 }
 0x1c7   : > { %1649 = vrot.lane.b32.xlu0 %v8318_v23, %s5263_s16  ;;  %p5183_p9 = por %p5182_p5, %p5181_p0 }
 0x1c9   : > { %1731 = vrot.lane.b32.xlu1 %v8229_v30, %s5265_s18  ;;  %p5184_p1 = pnand %p5183_p9, %p5177_p13 }
 0x1cb   : > { %1691 = vrot.lane.b32.xlu0 %v8318_v23, %s5264_s23 }
 0x1cd   : > { %1485 = vrot.lane.b32.xlu1 %v8272_v46, %s5259_s13  ;;  %s3468_s13 = scalar_lea.sflag [#allocation6], %s5451_s17 }
 0x1cf   : > { %1733 = vrot.lane.b32.xlu0 %v8318_v23, %s5265_s18 }
 0x1d1   : > { %1735 = vrot.lane.b32.xlu1 %v8183_v53, %s5265_s18 }
 0x1d3   : > { %1737 = vrot.lane.b32.xlu0 %v8272_v46, %s5265_s18 }
 0x210   : > { %v4773_v20 = vpop.f32.mrf.mxu1 }
 0x211   : > { %v4801_v35 = vpop.f32.mrf.mxu0 }
 0x212   : > { %5187 = shalt.err (!%p5184_p1)
}
 0x213   : > { %s5188_s16 = scalar_lea.hbm %s8485_s12, 4096  ;;  %s5192_s21 = scalar_lea.hbm %s8769_s4, 16384 }
 0x214   : > { %p5189_p4 = scmp.ne.s32.totalorder %s8485_s12, %s5188_s16  ;;  %p5193_p10 = scmp.lt.s32.totalorder %s8485_s12, %s8769_s4 }
 0x215   : > { %p5194_p8 = scmp.lt.s32.totalorder %s5192_s21, %s5188_s16 }
 0x216   : > { %p5190_p6 = pnand %p5189_p4, %p9053_p2 }
 0x217   : > { %p5195_p3 = por %p5194_p8, %p5193_p10 }
 0x218   : > { %p5191_p7 = pneg %p5190_p6 }
 0x21a   : > { %p5196_p11 = pnand %p5195_p3, %p5191_p7 }
 0x21c   : > { %5199 = shalt.err (!%p5196_p11)
}
 0x21d   : > { %s5267_s0 = smov 128   ;;  %s5268_s10 = smov 8   ;;  %v4774_v37 = vpop.f32.mrf.mxu1  ;;  %v4802_v43 = vpop.f32.mrf.mxu0  ;;  %v8517_v29 = vunpack.i.h.bf16 %v5073_v60  ;;  %vm9054_vm7 = vnez %v8823_v31  ;;  %vm2012_vm1 = vcmask 68608   ;;  %vm9055_vm9 = vnez %v8851_v15 }
 0x21e   : > { %5001 = dma.vmem_to_hbm [thread:$0]  (%p9053_p2), %s8488_s28, 4096, %s8485_s12, %s3468_s13, %s5267_s0, %s5267_s0, %s5268_s10   ;;  %v4775_v45 = vadd.f32 %v4774_v37, %v4773_v20  ;;  %v4803_v61 = vadd.f32 %v4802_v43, %v4801_v35  ;;  %v1484_v24 = vpop.permute.xlu1 %1483  ;;  %vm9056_vm11 = vcmask 60416   ;;  %v1480_v26 = vpop.permute.xlu0 %1479  ;;  %v8541_v57 = vunpack.i.l.bf16 %v8490_v21 }
 0x21f   : > { %v4776_v27 = vpop.f32.mrf.mxu1  ;;  %s8524_s16 = scalar_lea.vmem %s8770_s5, %s4649_s8  ;;  %v4804_v40 = vpop.f32.mrf.mxu0  ;;  %3985 = vst.msk [vmem:[%s8163_s7 + $0x18] sm:$0xf] %vm9056_vm11, %v1484_v24  ;;  %vm9057_vm13 = vmmov %vm9056_vm11  ;;  %v8556_v41 = vunpack.i.h.bf16 %v8490_v21 }
 0x220   : > { %v1992_v5 = vsel %vm9054_vm7, %v4775_v45, %v8492_v34  ;;  %v2200_v42 = vsel %vm9055_vm9, %v4803_v61, %v8492_v34  ;;  %3983 = vst.msk [vmem:[%s8163_s7 + $0x10] sm:$0xf] %vm9057_vm13, %v1480_v26  ;;  %vm9058_vm8 = vmmov %vm9056_vm11 }
 0x221   : > { %v4687_v62 = vpack.c.bf16 %v1992_v5, %v1992_v5  ;;  %v4777_v13 = vpop.f32.mrf.mxu1  ;;  %v4693_v28 = vpack.c.bf16 %v2200_v42, %v2200_v42  ;;  %v4805_v47 = vpop.f32.mrf.mxu0  ;;  %vm9059_vm10 = vmmov %vm9058_vm8 }
 0x222   : > { %v4778_v6 = vadd.f32 %v4777_v13, %v4776_v27  ;;  %v4806_v25 = vadd.f32 %v4805_v47, %v4804_v40  ;;  %v1526_v12 = vpop.permute.xlu1 %1525  ;;  %v1528_v56 = vpop.permute.xlu0 %1527  ;;  %vm9060_vm0 = vmmov %vm9058_vm8 }
 0x223   : > { %2013 = vst.msk [vmem:[%s8524_s16] sm:$0xf] %vm2012_vm1, %v4687_v62  ;;  %v4779_v54 = vpop.f32.mrf.mxu1  ;;  %4200 = vst.msk [vmem:[%s8524_s16 + $0x10] sm:$0xf] %vm2012_vm1, %v4693_v28  ;;  %v4807_v1 = vpop.f32.mrf.mxu0 }
 0x224   : > { %v1993_v36 = vsel %vm9054_vm7, %v4778_v6, %v8517_v29  ;;  %v2201_v53 = vsel %vm9055_vm9, %v4806_v25, %v8517_v29  ;;  %3997 = vst.msk [vmem:[%s8163_s7 + $0x28] sm:$0xf] %vm9058_vm8, %v1526_v12  ;;  %vm9061_vm3 = vmmov %vm9060_vm0 }
 0x225   : > { %v4688_v14 = vpack.c.bf16 %v1993_v36, %v1993_v36  ;;  %v4780_v38 = vpop.f32.mrf.mxu1  ;;  %v4694_v39 = vpack.c.bf16 %v2201_v53, %v2201_v53  ;;  %3998 = vst.msk [vmem:[%s8163_s7 + $0x2c] sm:$0xf] %vm9059_vm10, %v1528_v56  ;;  %v4808_v3 = vpop.f32.mrf.mxu0  ;;  %vm9062_vm15 = vmmov %vm9060_vm0 }
 0x226   : > { %v4781_v16 = vadd.f32 %v4780_v38, %v4779_v54  ;;  %v4809_v9 = vadd.f32 %v4808_v3, %v4807_v1  ;;  %v1568_v50 = vpop.permute.xlu1 %1567  ;;  %v1570_v4 = vpop.permute.xlu0 %1569  ;;  %vm9063_vm14 = vmmov %vm9060_vm0 }
 0x227   : > { %2014 = vst.msk [vmem:[%s8524_s16 + $0x4] sm:$0xf] %vm2012_vm1, %v4688_v14  ;;  %v4782_v30 = vpop.f32.mrf.mxu1  ;;  %4201 = vst.msk [vmem:[%s8524_s16 + $0x14] sm:$0xf] %vm2012_vm1, %v4694_v39  ;;  %v4810_v32 = vpop.f32.mrf.mxu0 }
 0x228   : > { %v1994_v44 = vsel %vm9054_vm7, %v4781_v16, %v8541_v57  ;;  %v2202_v48 = vsel %vm9055_vm9, %v4809_v9, %v8541_v57  ;;  %4009 = vst.msk [vmem:[%s8163_s7 + $0x38] sm:$0xf] %vm9060_vm0, %v1568_v50  ;;  %vm9064_vm5 = vmmov %vm9060_vm0 }
 0x229   : > { %v4689_v46 = vpack.c.bf16 %v1994_v44, %v1994_v44  ;;  %v4783_v49 = vpop.f32.mrf.mxu1  ;;  %v4695_v51 = vpack.c.bf16 %v2202_v48, %v2202_v48  ;;  %4010 = vst.msk [vmem:[%s8163_s7 + $0x3c] sm:$0xf] %vm9061_vm3, %v1570_v4  ;;  %v4811_v23 = vpop.f32.mrf.mxu0  ;;  %vm9065_vm2 = vmmov %vm9060_vm0 }
 0x22a   : > { %v4784_v52 = vadd.f32 %v4783_v49, %v4782_v30  ;;  %v4812_v7 = vadd.f32 %v4811_v23, %v4810_v32  ;;  %v1610_v58 = vpop.permute.xlu1 %1609  ;;  %v1612_v11 = vpop.permute.xlu0 %1611  ;;  %vm9066_vm6 = vmmov %vm9060_vm0 }
 0x22b   : > { %2015 = vst.msk [vmem:[%s8524_s16 + $0x8] sm:$0xf] %vm2012_vm1, %v4689_v46  ;;  %4202 = vst.msk [vmem:[%s8524_s16 + $0x18] sm:$0xf] %vm2012_vm1, %v4695_v51 }
 0x22c   : > { %v1995_v8 = vsel %vm9054_vm7, %v4784_v52, %v8556_v41  ;;  %v2203_v2 = vsel %vm9055_vm9, %v4812_v7, %v8556_v41  ;;  %4021 = vst.msk [vmem:[%s8163_s7 + $0x48] sm:$0xf] %vm9062_vm15, %v1610_v58  ;;  %vm9067_vm4 = vmmov %vm9060_vm0  ;;  %vm9075_vm15 = vnez %v8891_v0 }
 0x22d   : > { %v4690_v10 = vpack.c.bf16 %v1995_v8, %v1995_v8  ;;  %v4696_v17 = vpack.c.bf16 %v2203_v2, %v2203_v2  ;;  %4022 = vst.msk [vmem:[%s8163_s7 + $0x4c] sm:$0xf] %vm9063_vm14, %v1612_v11  ;;  %vm9068_vm7 = vmmov %vm9060_vm0  ;;  %vm9076_vm14 = vnez %v8903_v33 }
 0x22e   : > { %v1652_v31 = vpop.permute.xlu1 %1651  ;;  %v1654_v15 = vpop.permute.xlu0 %1653  ;;  %vm9069_vm9 = vmmov %vm9060_vm0 }
 0x22f   : > { %2016 = vst.msk [vmem:[%s8524_s16 + $0xc] sm:$0xf] %vm2012_vm1, %v4690_v10  ;;  %4203 = vst.msk [vmem:[%s8524_s16 + $0x1c] sm:$0xf] %vm2012_vm1, %v4696_v17 }
 0x230   : > { %4033 = vst.msk [vmem:[%s8163_s7 + $0x58] sm:$0xf] %vm9064_vm5, %v1652_v31  ;;  %vm9070_vm11 = vmmov %vm9060_vm0  ;;  %v4829_v45 = vpop.f32.mrf.mxu1 }
 0x231   : > { %4034 = vst.msk [vmem:[%s8163_s7 + $0x5c] sm:$0xf] %vm9065_vm2, %v1654_v15  ;;  %vm9071_vm13 = vmmov %vm9060_vm0  ;;  %v4857_v43 = vpop.f32.mrf.mxu0 }
 0x232   : > { %v1694_v18 = vpop.permute.xlu1 %1693  ;;  %v1696_v19 = vpop.permute.xlu0 %1695  ;;  %vm9072_vm8 = vmmov %vm9060_vm0 }
 0x233   : > { %4045 = vst.msk [vmem:[%s8163_s7 + $0x68] sm:$0xf] %vm9066_vm6, %v1694_v18  ;;  %vm9073_vm10 = vmmov %vm9060_vm0  ;;  %v4830_v27 = vpop.f32.mrf.mxu1  ;;  %v4858_v24 = vpop.f32.mrf.mxu0 }
 0x234   : > { %4046 = vst.msk [vmem:[%s8163_s7 + $0x6c] sm:$0xf] %vm9067_vm4, %v1696_v19  ;;  %v4831_v40 = vadd.f32 %v4830_v27, %v4829_v45  ;;  %vm9074_vm3 = vmmov %vm9060_vm0  ;;  %v4859_v62 = vadd.f32 %v4858_v24, %v4857_v43 }
 0x235   : > { %v4832_v42 = vpop.f32.mrf.mxu1  ;;  %v4860_v26 = vpop.f32.mrf.mxu0  ;;  %vm9077_vm5 = vmmov %vm9060_vm0 }
 0x236   : > { %v1522_v22 = vpop.permute.xlu1 %1521  ;;  %v1482_v60 = vpop.permute.xlu0 %1481  ;;  %v2407_v13 = vsel %vm9075_vm15, %v4831_v40, %v8492_v34  ;;  %v2614_v47 = vsel %vm9076_vm14, %v4859_v62, %v8492_v34  ;;  %vm9078_vm2 = vmmov %vm9060_vm0 }
 0x237   : > { %3995 = vst.msk [vmem:[%s8163_s7 + $0x20] sm:$0xf] %vm9068_vm7, %v1522_v22  ;;  %v4699_v6 = vpack.c.bf16 %v2407_v13, %v2407_v13  ;;  %v4833_v25 = vpop.f32.mrf.mxu1  ;;  %v4705_v36 = vpack.c.bf16 %v2614_v47, %v2614_v47  ;;  %v4861_v12 = vpop.f32.mrf.mxu0  ;;  %vm9079_vm6 = vmmov %vm9060_vm0 }
 0x238   : > { %3984 = vst.msk [vmem:[%s8163_s7 + $0x14] sm:$0xf] %vm9069_vm9, %v1482_v60  ;;  %v4834_v1 = vadd.f32 %v4833_v25, %v4832_v42  ;;  %v4862_v14 = vadd.f32 %v4861_v12, %v4860_v26  ;;  %vm9080_vm4 = vmmov %vm9060_vm0 }
 0x239   : > { %4273 = vst.msk [vmem:[%s8524_s16 + $0x20] sm:$0xf] %vm2012_vm1, %v4699_v6  ;;  %v4835_v53 = vpop.f32.mrf.mxu1  ;;  %4346 = vst.msk [vmem:[%s8524_s16 + $0x30] sm:$0xf] %vm2012_vm1, %v4705_v36  ;;  %v4863_v38 = vpop.f32.mrf.mxu0 }
 0x23a   : > { %v1564_v20 = vpop.permute.xlu1 %1563  ;;  %v1524_v21 = vpop.permute.xlu0 %1523  ;;  %v2408_v56 = vsel %vm9075_vm15, %v4834_v1, %v8517_v29  ;;  %v2615_v3 = vsel %vm9076_vm14, %v4862_v14, %v8517_v29  ;;  %vm9081_vm7 = vmmov %vm9060_vm0 }
 0x23b   : > { %4007 = vst.msk [vmem:[%s8163_s7 + $0x30] sm:$0xf] %vm9070_vm11, %v1564_v20  ;;  %v4700_v16 = vpack.c.bf16 %v2408_v56, %v2408_v56  ;;  %v4836_v9 = vpop.f32.mrf.mxu1  ;;  %v4706_v44 = vpack.c.bf16 %v2615_v3, %v2615_v3  ;;  %v4864_v50 = vpop.f32.mrf.mxu0  ;;  %vm9082_vm9 = vmmov %vm9060_vm0 }
 0x23c   : > { %3996 = vst.msk [vmem:[%s8163_s7 + $0x24] sm:$0xf] %vm9071_vm13, %v1524_v21  ;;  %v4837_v32 = vadd.f32 %v4836_v9, %v4835_v53  ;;  %v4865_v46 = vadd.f32 %v4864_v50, %v4863_v38  ;;  %vm9083_vm11 = vmmov %vm9060_vm0 }
 0x23d   : > { %4274 = vst.msk [vmem:[%s8524_s16 + $0x24] sm:$0xf] %vm2012_vm1, %v4700_v16  ;;  %v4838_v48 = vpop.f32.mrf.mxu1  ;;  %4347 = vst.msk [vmem:[%s8524_s16 + $0x34] sm:$0xf] %vm2012_vm1, %v4706_v44  ;;  %v4866_v49 = vpop.f32.mrf.mxu0 }
 0x23e   : > { %v1606_v35 = vpop.permute.xlu1 %1605  ;;  %v1566_v37 = vpop.permute.xlu0 %1565  ;;  %v2409_v4 = vsel %vm9075_vm15, %v4837_v32, %v8541_v57  ;;  %v2616_v23 = vsel %vm9076_vm14, %v4865_v46, %v8541_v57  ;;  %vm9084_vm13 = vmmov %vm9060_vm0 }
 0x23f   : > { %4019 = vst.msk [vmem:[%s8163_s7 + $0x40] sm:$0xf] %vm9072_vm8, %v1606_v35  ;;  %v4701_v52 = vpack.c.bf16 %v2409_v4, %v2409_v4  ;;  %v4839_v7 = vpop.f32.mrf.mxu1  ;;  %v4707_v58 = vpack.c.bf16 %v2616_v23, %v2616_v23  ;;  %v4867_v2 = vpop.f32.mrf.mxu0  ;;  %vm9085_vm8 = vnez %v8803_v55 }
 0x240   : > { %4008 = vst.msk [vmem:[%s8163_s7 + $0x34] sm:$0xf] %vm9073_vm10, %v1566_v37  ;;  %v4840_v10 = vadd.f32 %v4839_v7, %v4838_v48  ;;  %v4868_v11 = vadd.f32 %v4867_v2, %v4866_v49  ;;  %vm9086_vm10 = vnez %v8805_v59 }
 0x241   : > { %4275 = vst.msk [vmem:[%s8524_s16 + $0x28] sm:$0xf] %vm2012_vm1, %v4701_v52  ;;  %4348 = vst.msk [vmem:[%s8524_s16 + $0x38] sm:$0xf] %vm2012_vm1, %v4707_v58 }
 0x242   : > { %v1648_v61 = vpop.permute.xlu1 %1647  ;;  %v1608_v5 = vpop.permute.xlu0 %1607  ;;  %v2410_v17 = vsel %vm9075_vm15, %v4840_v10, %v8556_v41  ;;  %v2617_v18 = vsel %vm9076_vm14, %v4868_v11, %v8556_v41  ;;  %v9087_v10 = vld [vmem:[#allocation16_spill] sm:$0xff] }
 0x243   : > { %4031 = vst.msk [vmem:[%s8163_s7 + $0x50] sm:$0xf] %vm9060_vm0, %v1648_v61  ;;  %v4702_v15 = vpack.c.bf16 %v2410_v17, %v2410_v17  ;;  %v4708_v22 = vpack.c.bf16 %v2617_v18, %v2617_v18  ;;  %vm9088_vm0 = vnez %v9087_v10 }
 0x244   : > { %4020 = vst.msk [vmem:[%s8163_s7 + $0x44] sm:$0xf] %vm9074_vm3, %v1608_v5 }
 0x245   : > { %4276 = vst.msk [vmem:[%s8524_s16 + $0x2c] sm:$0xf] %vm2012_vm1, %v4702_v15  ;;  %4349 = vst.msk [vmem:[%s8524_s16 + $0x3c] sm:$0xf] %vm2012_vm1, %v4708_v22 }
 0x246   : > { %v1690_v28 = vpop.permute.xlu1 %1689  ;;  %v1650_v54 = vpop.permute.xlu0 %1649 }
 0x247   : > { %4043 = vst.msk [vmem:[%s8163_s7 + $0x60] sm:$0xf] %vm9077_vm5, %v1690_v28 }
 0x248   : > { %4032 = vst.msk [vmem:[%s8163_s7 + $0x54] sm:$0xf] %vm9078_vm2, %v1650_v54 }
 0x24a   : > { %v1732_v39 = vpop.permute.xlu1 %1731  ;;  %v1692_v30 = vpop.permute.xlu0 %1691 }
 0x24b   : > { %4055 = vst.msk [vmem:[%s8163_s7 + $0x70] sm:$0xf] %vm9079_vm6, %v1732_v39 }
 0x24c   : > { %4044 = vst.msk [vmem:[%s8163_s7 + $0x64] sm:$0xf] %vm9080_vm4, %v1692_v30 }
 0x24e   : > { %v1486_v51 = vpop.permute.xlu1 %1485  ;;  %v1734_v8 = vpop.permute.xlu0 %1733 }
 0x24f   : > { %3986 = vst.msk [vmem:[%s8163_s7 + $0x1c] sm:$0xf] %vm9081_vm7, %v1486_v51 }
 0x250   : > { %4056 = vst.msk [vmem:[%s8163_s7 + $0x74] sm:$0xf] %vm9082_vm9, %v1734_v8  ;;  %v4885_v60 = vpop.f32.mrf.mxu1 }
 0x251   : > { %v4913_v0 = vpop.f32.mrf.mxu0 }
 0x252   : > { %v1736_v31 = vpop.permute.xlu1 %1735  ;;  %v1738_v19 = vpop.permute.xlu0 %1737 }
 0x253   : > { %4057 = vst.msk [vmem:[%s8163_s7 + $0x78] sm:$0xf] %vm9083_vm11, %v1736_v31  ;;  %v4886_v20 = vpop.f32.mrf.mxu1  ;;  %v4914_v35 = vpop.f32.mrf.mxu0 }
 0x254   : > { %4058 = vst.msk [vmem:[%s8163_s7 + $0x7c] sm:$0xf] %vm9084_vm13, %v1738_v19  ;;  %v4887_v21 = vadd.f32 %v4886_v20, %v4885_v60  ;;  %v4915_v37 = vadd.f32 %v4914_v35, %v4913_v0 }
 0x255   : > { %v4888_v33 = vpop.f32.mrf.mxu1  ;;  %v4916_v43 = vpop.f32.mrf.mxu0 }
 0x256   : > { %v2821_v45 = vsel %vm9085_vm8, %v4887_v21, %v8492_v34  ;;  %v3028_v27 = vsel %vm9086_vm10, %v4915_v37, %v8492_v34 }
 0x257   : > { %v4711_v61 = vpack.c.bf16 %v2821_v45, %v2821_v45  ;;  %v4889_v5 = vpop.f32.mrf.mxu1  ;;  %v4717_v40 = vpack.c.bf16 %v3028_v27, %v3028_v27  ;;  %v4917_v62 = vpop.f32.mrf.mxu0 }
 0x258   : > { %v4890_v24 = vadd.f32 %v4889_v5, %v4888_v33  ;;  %v4918_v42 = vadd.f32 %v4917_v62, %v4916_v43 }
 0x259   : > { %4419 = vst.msk [vmem:[%s8524_s16 + $0x40] sm:$0xf] %vm2012_vm1, %v4711_v61  ;;  %v4891_v13 = vpop.f32.mrf.mxu1  ;;  %4492 = vst.msk [vmem:[%s8524_s16 + $0x50] sm:$0xf] %vm2012_vm1, %v4717_v40  ;;  %v4919_v28 = vpop.f32.mrf.mxu0 }
 0x25a   : > { %v2822_v26 = vsel %vm9085_vm8, %v4890_v24, %v8517_v29  ;;  %v3029_v47 = vsel %vm9086_vm10, %v4918_v42, %v8517_v29 }
 0x25b   : > { %v4712_v6 = vpack.c.bf16 %v2822_v26, %v2822_v26  ;;  %v4892_v25 = vpop.f32.mrf.mxu1  ;;  %v4718_v54 = vpack.c.bf16 %v3029_v47, %v3029_v47  ;;  %v4920_v1 = vpop.f32.mrf.mxu0 }
 0x25c   : > { %v4893_v36 = vadd.f32 %v4892_v25, %v4891_v13  ;;  %v4921_v12 = vadd.f32 %v4920_v1, %v4919_v28 }
 0x25d   : > { %4420 = vst.msk [vmem:[%s8524_s16 + $0x44] sm:$0xf] %vm2012_vm1, %v4712_v6  ;;  %v4894_v14 = vpop.f32.mrf.mxu1  ;;  %4493 = vst.msk [vmem:[%s8524_s16 + $0x54] sm:$0xf] %vm2012_vm1, %v4718_v54  ;;  %v4922_v56 = vpop.f32.mrf.mxu0 }
 0x25e   : > { %v2823_v53 = vsel %vm9085_vm8, %v4893_v36, %v8541_v57  ;;  %v3030_v39 = vsel %vm9086_vm10, %v4921_v12, %v8541_v57 }
 0x25f   : > { %v4713_v38 = vpack.c.bf16 %v2823_v53, %v2823_v53  ;;  %v4895_v16 = vpop.f32.mrf.mxu1  ;;  %v4719_v3 = vpack.c.bf16 %v3030_v39, %v3030_v39  ;;  %v4923_v30 = vpop.f32.mrf.mxu0 }
 0x260   : > { %v4896_v9 = vadd.f32 %v4895_v16, %v4894_v14  ;;  %v4924_v44 = vadd.f32 %v4923_v30, %v4922_v56 }
 0x261   : > { %4421 = vst.msk [vmem:[%s8524_s16 + $0x48] sm:$0xf] %vm2012_vm1, %v4713_v38  ;;  %4494 = vst.msk [vmem:[%s8524_s16 + $0x58] sm:$0xf] %vm2012_vm1, %v4719_v3 }
 0x262   : > { %v2824_v32 = vsel %vm9085_vm8, %v4896_v9, %v8556_v41  ;;  %v3031_v46 = vsel %vm9086_vm10, %v4924_v44, %v8556_v41 }
 0x263   : > { %v4714_v50 = vpack.c.bf16 %v2824_v32, %v2824_v32  ;;  %v4720_v48 = vpack.c.bf16 %v3031_v46, %v3031_v46 }
 0x265   : > { %4422 = vst.msk [vmem:[%s8524_s16 + $0x4c] sm:$0xf] %vm2012_vm1, %v4714_v50  ;;  %4495 = vst.msk [vmem:[%s8524_s16 + $0x5c] sm:$0xf] %vm2012_vm1, %v4720_v48 }
 0x270   : > { %v4941_v4 = vpop.f32.mrf.mxu1 }
 0x271   : > { %v4969_v49 = vpop.f32.mrf.mxu0 }
 0x272   : > { %v4942_v51 = vpop.f32.mrf.mxu1 }
 0x273   : > { %v4943_v52 = vadd.f32 %v4942_v51, %v4941_v4  ;;  %v4970_v23 = vpop.f32.mrf.mxu0 }
 0x274   : > { %v4971_v7 = vadd.f32 %v4970_v23, %v4969_v49  ;;  %v4944_v55 = vpop.f32.mrf.mxu1 }
 0x275   : > { %v3235_v8 = vsel %vm8990_vm12, %v4943_v52, %v8492_v34  ;;  %v4972_v59 = vpop.f32.mrf.mxu0 }
 0x276   : > { %v4723_v58 = vpack.c.bf16 %v3235_v8, %v3235_v8  ;;  %v3442_v2 = vsel %vm9088_vm0, %v4971_v7, %v8492_v34  ;;  %v4945_v11 = vpop.f32.mrf.mxu1 }
 0x277   : > { %v4729_v17 = vpack.c.bf16 %v3442_v2, %v3442_v2  ;;  %v4946_v31 = vadd.f32 %v4945_v11, %v4944_v55  ;;  %v4973_v15 = vpop.f32.mrf.mxu0 }
 0x278   : > { %4565 = vst.msk [vmem:[%s8524_s16 + $0x60] sm:$0xf] %vm2012_vm1, %v4723_v58  ;;  %v4974_v18 = vadd.f32 %v4973_v15, %v4972_v59  ;;  %v4947_v19 = vpop.f32.mrf.mxu1 }
 0x279   : > { %4638 = vst.msk [vmem:[%s8524_s16 + $0x70] sm:$0xf] %vm2012_vm1, %v4729_v17  ;;  %v3236_v22 = vsel %vm8990_vm12, %v4946_v31, %v8517_v29  ;;  %v4975_v60 = vpop.f32.mrf.mxu0 }
 0x27a   : > { %v4724_v0 = vpack.c.bf16 %v3236_v22, %v3236_v22  ;;  %v3443_v34 = vsel %vm9088_vm0, %v4974_v18, %v8517_v29  ;;  %v4948_v20 = vpop.f32.mrf.mxu1 }
 0x27b   : > { %v4730_v21 = vpack.c.bf16 %v3443_v34, %v3443_v34  ;;  %v4949_v35 = vadd.f32 %v4948_v20, %v4947_v19  ;;  %v4976_v37 = vpop.f32.mrf.mxu0 }
 0x27c   : > { %4566 = vst.msk [vmem:[%s8524_s16 + $0x64] sm:$0xf] %vm2012_vm1, %v4724_v0  ;;  %v4977_v33 = vadd.f32 %v4976_v37, %v4975_v60  ;;  %v4950_v45 = vpop.f32.mrf.mxu1 }
 0x27d   : > { %4639 = vst.msk [vmem:[%s8524_s16 + $0x74] sm:$0xf] %vm2012_vm1, %v4730_v21  ;;  %v3237_v43 = vsel %vm8990_vm12, %v4949_v35, %v8541_v57  ;;  %v4978_v61 = vpop.f32.mrf.mxu0 }
 0x27e   : > { %v4725_v29 = vpack.c.bf16 %v3237_v43, %v3237_v43  ;;  %v3444_v27 = vsel %vm9088_vm0, %v4977_v33, %v8541_v57  ;;  %v4951_v5 = vpop.f32.mrf.mxu1 }
 0x27f   : > { %v4731_v40 = vpack.c.bf16 %v3444_v27, %v3444_v27  ;;  %v4952_v24 = vadd.f32 %v4951_v5, %v4950_v45  ;;  %v4979_v62 = vpop.f32.mrf.mxu0 }
 0x280   : > { %4567 = vst.msk [vmem:[%s8524_s16 + $0x68] sm:$0xf] %vm2012_vm1, %v4725_v29  ;;  %v4980_v42 = vadd.f32 %v4979_v62, %v4978_v61 }
 0x281   : > { %4640 = vst.msk [vmem:[%s8524_s16 + $0x78] sm:$0xf] %vm2012_vm1, %v4731_v40  ;;  %v3238_v13 = vsel %vm8990_vm12, %v4952_v24, %v8556_v41 }
 0x282   : > { %v4726_v26 = vpack.c.bf16 %v3238_v13, %v3238_v13  ;;  %v3445_v28 = vsel %vm9088_vm0, %v4980_v42, %v8556_v41 }
 0x283   : > { %v4732_v6 = vpack.c.bf16 %v3445_v28, %v3445_v28 }
 0x284   : > { %4568 = vst.msk [vmem:[%s8524_s16 + $0x6c] sm:$0xf] %vm2012_vm1, %v4726_v26 }
 0x285   : > { %4641 = vst.msk [vmem:[%s8524_s16 + $0x7c] sm:$0xf] %vm2012_vm1, %v4732_v6 }
 0x286 PF: > { %p5021_p2 = scmp.ge.s32.totalorder %s5248_s27, 2  ;;  %s3517_s20 = sand.u32 1, %s5236_s24  }
 0x287   : > { %p9089_p12 = scmp.ne.s32.totalorder %s8791_s30, 0  ;;  %s3518_s17 = scalar_lea.sflag [#allocation6], %s3517_s20 }
 0x289   : > { %p5015_p13 = pnand %p5021_p2, %p9089_p12 }
 0x28b   : > { %p5016_p0 = pneg %p5015_p13 }
 0x28d   : > { %5231 = dma.done.wait (%p5016_p0), %s3518_s17, 4096  }
 0x28e   : > { %5233 = vsyncadd (%p5016_p0), %s3518_s17, 4294963200  ;;  %p27_p5 = scmp.ge.s32.totalorder %s5360_s11, 6   ;;  %s9090_s24 = smov %s5240_s25 }
 0x28f   : > { %s9091_s25 = smov %s5244_s26  ;;  %s9092_s26 = smov %s5377_s19 }
 0x290   : > { %s9093_s27 = smov %s5360_s11  ;;  %29 = sbr.rel (!%p27_p5) target bundleno = 12 (0xc), region = 139 }
 0x295   :  { %3541 = vsyncpa [#allocation5], 1 }
 0x296   :  { %3543 = vsyncpa [#allocation5 + $0x1], 1 }
 0x297   :  { %3544 = vsyncpa [#allocation8], 1 }
 0x298   :  { %3546 = vsyncpa [#allocation8 + $0x1], 1 }
 0x299   :  { %3547 = vsyncpa [#allocation6], 1 }
 0x29a   :  { %3549 = vsyncpa [#allocation6 + $0x1], 1 }

</bundles_post_ra>
